<compile_context>
chip_gen: v5e
topology: v5e:2x2
jax: 0.10.0
libtpu: 0.0.40
codegen_flags: <defaults>
</compile_context>

<pallas_src>
import functools

import jax
import jax.numpy as jnp
from jax.experimental import pallas as pl
from jax.experimental.pallas import tpu as pltpu

D_IN = 1025                          # logical input / output feature dim
D_PAD = pl.cdiv(D_IN, 128) * 128     # 1152: lane-dense padded feature dim
H1 = 512                             # first hidden dim
H2 = 256                             # bottleneck dim


def autoencoder_kernel(x_ref,
                       w1_ref, b1_ref, w2_ref, b2_ref,
                       w3_ref, b3_ref, w4_ref, b4_ref,
                       o_ref):
    """Fused encoder+decoder MLP on one batch tile. Weights are (in, out)."""
    x = x_ref[...]                                                    # (tb, 1152)

    h = jnp.dot(x, w1_ref[...], preferred_element_type=jnp.float32) + b1_ref[...]
    h = jnp.maximum(h, 0.0)                                           # (tb, 512)

    h = jnp.dot(h, w2_ref[...], preferred_element_type=jnp.float32) + b2_ref[...]
    h = jnp.maximum(h, 0.0)                                           # (tb, 256)

    h = jnp.dot(h, w3_ref[...], preferred_element_type=jnp.float32) + b3_ref[...]
    h = jnp.maximum(h, 0.0)                                           # (tb, 512)

    h = jnp.dot(h, w4_ref[...], preferred_element_type=jnp.float32) + b4_ref[...]
    o_ref[...] = jax.nn.sigmoid(h).astype(o_ref.dtype)                # (tb, 1152)


@functools.partial(jax.jit, static_argnames=("block_b",))
def autoencoder_forward(x, w1, b1, w2, b2, w3, b3, w4, b4, *, block_b=128):
    """x: (B, 1025). Weights pre-transposed to (in, out); biases (1, out)."""
    B, D = x.shape
    assert D == D_IN

    pad_f = D_PAD - D_IN
    # Lane-dense feature padding (zeros are mathematically inert).
    x = jnp.pad(x, ((0, 0), (0, pad_f)))
    w1p = jnp.pad(w1, ((0, pad_f), (0, 0)))        # extra input rows are zero
    w4p = jnp.pad(w4, ((0, 0), (0, pad_f)))        # extra output cols sliced off
    b4p = jnp.pad(b4, ((0, 0), (0, pad_f)))

    # Batch tiling: tile of up to `block_b` rows, kept a multiple of 8 (f32 sublanes).
    Bp8 = pl.cdiv(B, 8) * 8
    tb = min(block_b, Bp8)
    Bp = pl.cdiv(B, tb) * tb
    if Bp != B:
        x = jnp.pad(x, ((0, Bp - B), (0, 0)))

    const = lambda i: (0, 0)   # weights/biases: same (resident) block every grid step

    grid_spec = pltpu.PrefetchScalarGridSpec(
        num_scalar_prefetch=0,
        grid=(Bp // tb,),
        in_specs=[
            pl.BlockSpec((tb, D_PAD), lambda i: (i, 0)),   # x batch tile
            pl.BlockSpec((D_PAD, H1), const), pl.BlockSpec((1, H1), const),
            pl.BlockSpec((H1, H2), const), pl.BlockSpec((1, H2), const),
            pl.BlockSpec((H2, H1), const), pl.BlockSpec((1, H1), const),
            pl.BlockSpec((H1, D_PAD), const), pl.BlockSpec((1, D_PAD), const),
        ],
        out_specs=pl.BlockSpec((tb, D_PAD), lambda i: (i, 0)),
    )

    out = pl.pallas_call(
        autoencoder_kernel,
        out_shape=jax.ShapeDtypeStruct((Bp, D_PAD), x.dtype),
        grid_spec=grid_spec,
        compiler_params=pltpu.CompilerParams(
            dimension_semantics=("parallel",),     # batch tiles independent -> megacore
            vmem_limit_bytes=64 * 1024 * 1024,     # weights + double-buffered tiles
        ),
    )(x, w1p, b1, w2, b2, w3, b3, w4p, b4p)

    return out[:B, :D_IN]


def init_linear(key, fan_in, fan_out):
    """PyTorch nn.Linear-style init: U(-1/sqrt(fan_in), 1/sqrt(fan_in)).
    Returns weight pre-transposed to (fan_in, fan_out) and bias as (1, fan_out)."""
    k_w, k_b = jax.random.split(key)
    bound = 1.0 / jnp.sqrt(jnp.float32(fan_in))
    w = jax.random.uniform(k_w, (fan_out, fan_in), jnp.float32, -bound, bound)
    b = jax.random.uniform(k_b, (fan_out,), jnp.float32, -bound, bound)
    return w.T, b[None, :]


# ---------------- pure-JAX reference (for correctness check) ----------------
def autoencoder_ref(x, w1, b1, w2, b2, w3, b3, w4, b4):
    h = jnp.maximum(x @ w1 + b1, 0.0)
    h = jnp.maximum(h @ w2 + b2, 0.0)
    h = jnp.maximum(h @ w3 + b3, 0.0)
    return jax.nn.sigmoid(h @ w4 + b4)


if __name__ == "__main__":
    B = 16  # small batch for the smoke test (ragged vs the 128-row tile is handled)

    key = jax.random.PRNGKey(0)
    key, kx, k1, k2, k3, k4 = jax.random.split(key, 6)
    x = jax.random.normal(kx, (B, D_IN), jnp.float32)

    w1, b1 = init_linear(k1, D_IN, H1)   # encoder Linear(1025, 512)
    w2, b2 = init_linear(k2, H1, H2)     # encoder Linear(512, 256)
    w3, b3 = init_linear(k3, H2, H1)     # decoder Linear(256, 512)
    w4, b4 = init_linear(k4, H1, D_IN)   # decoder Linear(512, 1025)

    out = autoencoder_forward(x, w1, b1, w2, b2, w3, b3, w4, b4)
    out = jax.block_until_ready(out)

    ref = autoencoder_ref(x, w1, b1, w2, b2, w3, b3, w4, b4)
    err = float(jnp.max(jnp.abs(out - ref)))
    assert out.shape == (B, D_IN), out.shape
    assert err < 2e-3, f"max abs error {err}"

    print("KERNEL_OK")
</pallas_src>

<mosaic_0001>
module attributes {stable_mosaic.version = 11 : i64} {
  func.func @autoencoder_kernel(%arg0: i32, %arg1: memref<16x1152xf32, #tpu.memory_space<vmem>>, %arg2: memref<1152x512xf32, #tpu.memory_space<vmem>>, %arg3: memref<1x512xf32, #tpu.memory_space<vmem>>, %arg4: memref<512x256xf32, #tpu.memory_space<vmem>>, %arg5: memref<1x256xf32, #tpu.memory_space<vmem>>, %arg6: memref<256x512xf32, #tpu.memory_space<vmem>>, %arg7: memref<1x512xf32, #tpu.memory_space<vmem>>, %arg8: memref<512x1152xf32, #tpu.memory_space<vmem>>, %arg9: memref<1x1152xf32, #tpu.memory_space<vmem>>, %arg10: memref<16x1152xf32, #tpu.memory_space<vmem>>) attributes {dimension_semantics = [#tpu.dimension_semantics<parallel>], iteration_bounds = array<i64: 1>, scalar_prefetch = 0 : i64, scratch_operands = 0 : i64, tpu.core_type = #tpu.core_type<tc>, window_params = [{transform_indices = @transform_0, window_bounds = array<i64: 16, 1152>}, {pipeline_mode = #tpu.pipeline_mode<synchronous>, transform_indices = @transform_1, window_bounds = array<i64: 1152, 512>}, {pipeline_mode = #tpu.pipeline_mode<synchronous>, transform_indices = @transform_2, window_bounds = array<i64: 1, 512>}, {pipeline_mode = #tpu.pipeline_mode<synchronous>, transform_indices = @transform_3, window_bounds = array<i64: 512, 256>}, {pipeline_mode = #tpu.pipeline_mode<synchronous>, transform_indices = @transform_4, window_bounds = array<i64: 1, 256>}, {pipeline_mode = #tpu.pipeline_mode<synchronous>, transform_indices = @transform_5, window_bounds = array<i64: 256, 512>}, {pipeline_mode = #tpu.pipeline_mode<synchronous>, transform_indices = @transform_6, window_bounds = array<i64: 1, 512>}, {pipeline_mode = #tpu.pipeline_mode<synchronous>, transform_indices = @transform_7, window_bounds = array<i64: 512, 1152>}, {pipeline_mode = #tpu.pipeline_mode<synchronous>, transform_indices = @transform_8, window_bounds = array<i64: 1, 1152>}, {transform_indices = @transform_9, window_bounds = array<i64: 16, 1152>}]} {
    %c0 = arith.constant 0 : index
    %c0_0 = arith.constant 0 : index
    %0 = vector.load %arg1[%c0, %c0_0] : memref<16x1152xf32, #tpu.memory_space<vmem>>, vector<16x1152xf32>
    %c0_1 = arith.constant 0 : index
    %c0_2 = arith.constant 0 : index
    %1 = vector.load %arg2[%c0_1, %c0_2] : memref<1152x512xf32, #tpu.memory_space<vmem>>, vector<1152x512xf32>
    %cst = arith.constant dense<0.000000e+00> : vector<16x512xf32>
    %2 = tpu.matmul %0, %1, %cst {dimension_numbers = #tpu.dot_dimension_numbers<[1], [0], [0], [1], [0, 0, 1, 1], [], []>} : vector<16x1152xf32>, vector<1152x512xf32>, vector<16x512xf32> -> vector<16x512xf32>
    %c0_3 = arith.constant 0 : index
    %c0_4 = arith.constant 0 : index
    %3 = vector.load %arg3[%c0_3, %c0_4] : memref<1x512xf32, #tpu.memory_space<vmem>>, vector<1x512xf32>
    %4 = vector.broadcast %3 : vector<1x512xf32> to vector<16x512xf32>
    %5 = arith.addf %2, %4 : vector<16x512xf32>
    %cst_5 = arith.constant 0.000000e+00 : f32
    %6 = vector.broadcast %cst_5 : f32 to vector<16x512xf32>
    %7 = arith.maximumf %5, %6 : vector<16x512xf32>
    %c0_6 = arith.constant 0 : index
    %c0_7 = arith.constant 0 : index
    %8 = vector.load %arg4[%c0_6, %c0_7] : memref<512x256xf32, #tpu.memory_space<vmem>>, vector<512x256xf32>
    %cst_8 = arith.constant dense<0.000000e+00> : vector<16x256xf32>
    %9 = tpu.matmul %7, %8, %cst_8 {dimension_numbers = #tpu.dot_dimension_numbers<[1], [0], [0], [1], [0, 0, 1, 1], [], []>} : vector<16x512xf32>, vector<512x256xf32>, vector<16x256xf32> -> vector<16x256xf32>
    %c0_9 = arith.constant 0 : index
    %c0_10 = arith.constant 0 : index
    %10 = vector.load %arg5[%c0_9, %c0_10] : memref<1x256xf32, #tpu.memory_space<vmem>>, vector<1x256xf32>
    %11 = vector.broadcast %10 : vector<1x256xf32> to vector<16x256xf32>
    %12 = arith.addf %9, %11 : vector<16x256xf32>
    %cst_11 = arith.constant 0.000000e+00 : f32
    %13 = vector.broadcast %cst_11 : f32 to vector<16x256xf32>
    %14 = arith.maximumf %12, %13 : vector<16x256xf32>
    %c0_12 = arith.constant 0 : index
    %c0_13 = arith.constant 0 : index
    %15 = vector.load %arg6[%c0_12, %c0_13] : memref<256x512xf32, #tpu.memory_space<vmem>>, vector<256x512xf32>
    %cst_14 = arith.constant dense<0.000000e+00> : vector<16x512xf32>
    %16 = tpu.matmul %14, %15, %cst_14 {dimension_numbers = #tpu.dot_dimension_numbers<[1], [0], [0], [1], [0, 0, 1, 1], [], []>} : vector<16x256xf32>, vector<256x512xf32>, vector<16x512xf32> -> vector<16x512xf32>
    %c0_15 = arith.constant 0 : index
    %c0_16 = arith.constant 0 : index
    %17 = vector.load %arg7[%c0_15, %c0_16] : memref<1x512xf32, #tpu.memory_space<vmem>>, vector<1x512xf32>
    %18 = vector.broadcast %17 : vector<1x512xf32> to vector<16x512xf32>
    %19 = arith.addf %16, %18 : vector<16x512xf32>
    %cst_17 = arith.constant 0.000000e+00 : f32
    %20 = vector.broadcast %cst_17 : f32 to vector<16x512xf32>
    %21 = arith.maximumf %19, %20 : vector<16x512xf32>
    %c0_18 = arith.constant 0 : index
    %c0_19 = arith.constant 0 : index
    %22 = vector.load %arg8[%c0_18, %c0_19] : memref<512x1152xf32, #tpu.memory_space<vmem>>, vector<512x1152xf32>
    %cst_20 = arith.constant dense<0.000000e+00> : vector<16x1152xf32>
    %23 = tpu.matmul %21, %22, %cst_20 {dimension_numbers = #tpu.dot_dimension_numbers<[1], [0], [0], [1], [0, 0, 1, 1], [], []>} : vector<16x512xf32>, vector<512x1152xf32>, vector<16x1152xf32> -> vector<16x1152xf32>
    %c0_21 = arith.constant 0 : index
    %c0_22 = arith.constant 0 : index
    %24 = vector.load %arg9[%c0_21, %c0_22] : memref<1x1152xf32, #tpu.memory_space<vmem>>, vector<1x1152xf32>
    %25 = vector.broadcast %24 : vector<1x1152xf32> to vector<16x1152xf32>
    %26 = arith.addf %23, %25 : vector<16x1152xf32>
    %27 = arith.negf %26 : vector<16x1152xf32>
    %28 = math.exp %27 : vector<16x1152xf32>
    %cst_23 = arith.constant 1.000000e+00 : f32
    %29 = vector.broadcast %cst_23 : f32 to vector<16x1152xf32>
    %30 = arith.addf %29, %28 : vector<16x1152xf32>
    %31 = arith.divf %29, %30 : vector<16x1152xf32>
    %c0_24 = arith.constant 0 : index
    %c0_25 = arith.constant 0 : index
    %32 = vector.load %arg10[%c0_24, %c0_25] : memref<16x1152xf32, #tpu.memory_space<vmem>>, vector<16x1152xf32>
    tpu.vector_store %arg10[%c0_24, %c0_25], %31 {strides = array<i32>} : memref<16x1152xf32, #tpu.memory_space<vmem>>, vector<16x1152xf32>,
    return
  }
  func.func @transform_0(%arg0: i32) -> (i32, i32) {
    %c0_i32 = arith.constant 0 : i32
    %c0_i32_0 = arith.constant 0 : i32
    return %arg0, %c0_i32 : i32, i32
  }
  func.func @transform_1(%arg0: i32) -> (i32, i32) {
    %c0_i32 = arith.constant 0 : i32
    %c0_i32_0 = arith.constant 0 : i32
    %c0_i32_1 = arith.constant 0 : i32
    return %c0_i32, %c0_i32_0 : i32, i32
  }
  func.func @transform_2(%arg0: i32) -> (i32, i32) {
    %c0_i32 = arith.constant 0 : i32
    %c0_i32_0 = arith.constant 0 : i32
    %c0_i32_1 = arith.constant 0 : i32
    return %c0_i32, %c0_i32_0 : i32, i32
  }
  func.func @transform_3(%arg0: i32) -> (i32, i32) {
    %c0_i32 = arith.constant 0 : i32
    %c0_i32_0 = arith.constant 0 : i32
    %c0_i32_1 = arith.constant 0 : i32
    return %c0_i32, %c0_i32_0 : i32, i32
  }
  func.func @transform_4(%arg0: i32) -> (i32, i32) {
    %c0_i32 = arith.constant 0 : i32
    %c0_i32_0 = arith.constant 0 : i32
    %c0_i32_1 = arith.constant 0 : i32
    return %c0_i32, %c0_i32_0 : i32, i32
  }
  func.func @transform_5(%arg0: i32) -> (i32, i32) {
    %c0_i32 = arith.constant 0 : i32
    %c0_i32_0 = arith.constant 0 : i32
    %c0_i32_1 = arith.constant 0 : i32
    return %c0_i32, %c0_i32_0 : i32, i32
  }
  func.func @transform_6(%arg0: i32) -> (i32, i32) {
    %c0_i32 = arith.constant 0 : i32
    %c0_i32_0 = arith.constant 0 : i32
    %c0_i32_1 = arith.constant 0 : i32
    return %c0_i32, %c0_i32_0 : i32, i32
  }
  func.func @transform_7(%arg0: i32) -> (i32, i32) {
    %c0_i32 = arith.constant 0 : i32
    %c0_i32_0 = arith.constant 0 : i32
    %c0_i32_1 = arith.constant 0 : i32
    return %c0_i32, %c0_i32_0 : i32, i32
  }
  func.func @transform_8(%arg0: i32) -> (i32, i32) {
    %c0_i32 = arith.constant 0 : i32
    %c0_i32_0 = arith.constant 0 : i32
    %c0_i32_1 = arith.constant 0 : i32
    return %c0_i32, %c0_i32_0 : i32, i32
  }
  func.func @transform_9(%arg0: i32) -> (i32, i32) {
    %c0_i32 = arith.constant 0 : i32
    %c0_i32_0 = arith.constant 0 : i32
    return %arg0, %c0_i32 : i32, i32
  }
}

</mosaic_0001>

<bundles_post_ra>
// kernel: autoencoder_forward.1
= control target key start
LH: loop header
LB: loop body
LE: loop exit
PB: predicated region body
PF: predicated region fallthrough
CT: control target
= control target key end

     0   :  { %s8960_s0 = inlined_call_operand.vmem [shape: f32[16,1152], index: 0, kind: input, shape index: {}]   ;;  %s8961_s1 = inlined_call_operand.vmem [shape: f32[1152,512], index: 1, kind: input, shape index: {}]   ;;  %s8962_s2 = inlined_call_operand.vmem [shape: f32[1,512], index: 2, kind: input, shape index: {}]   ;;  %s8963_s3 = inlined_call_operand.vmem [shape: f32[512,256], index: 3, kind: input, shape index: {}]   ;;  %s8964_s4 = inlined_call_operand.vmem [shape: f32[1,256], index: 4, kind: input, shape index: {}]   ;;  %s8965_s5 = inlined_call_operand.vmem [shape: f32[256,512], index: 5, kind: input, shape index: {}]   ;;  %s8966_s6 = inlined_call_operand.vmem [shape: f32[1,512], index: 6, kind: input, shape index: {}]   ;;  %s8967_s7 = inlined_call_operand.vmem [shape: f32[512,1152], index: 7, kind: input, shape index: {}]   ;;  %s8968_s8 = inlined_call_operand.vmem [shape: f32[1,1152], index: 8, kind: input, shape index: {}]   ;;  %s8969_s9 = inlined_call_operand.hbm [shape: f32[16,1152], index: 9, kind: output, shape index: {}]  }
   0x1   :  { %v111_v0 = vld [vmem:[%s8961_s1 + $0x1e0] sm:$0xff] }
   0x2   :  { %v175_v1 = vld [vmem:[%s8961_s1 + $0x3e0] sm:$0xff]  ;;  %637 = vmatpush.msra.mxu0 %v111_v0 }
   0x3   :  { %v239_v2 = vld [vmem:[%s8961_s1 + $0x5e0] sm:$0xff]  ;;  %660 = vmatpush.msra.mxu1 %v175_v1 }
   0x4   :  { %v107_v3 = vld [vmem:[%s8961_s1 + $0x1c0] sm:$0xff]  ;;  %683 = vmatpush.msra.mxu2 %v239_v2 }
   0x5   :  { %v171_v4 = vld [vmem:[%s8961_s1 + $0x3c0] sm:$0xff]  ;;  %638 = vmatpush.msra.mxu0 %v107_v3 }
   0x6   :  { %v235_v5 = vld [vmem:[%s8961_s1 + $0x5c0] sm:$0xff]  ;;  %661 = vmatpush.msra.mxu1 %v171_v4 }
   0x7   :  { %v303_v6 = vld [vmem:[%s8961_s1 + $0x7e0] sm:$0xff]  ;;  %684 = vmatpush.msra.mxu2 %v235_v5 }
   0x8   :  { %v103_v7 = vld [vmem:[%s8961_s1 + $0x1a0] sm:$0xff]  ;;  %706 = vmatpush.msra.mxu3 %v303_v6 }
   0x9   :  { %v167_v8 = vld [vmem:[%s8961_s1 + $0x3a0] sm:$0xff]  ;;  %639 = vmatpush.msra.mxu0 %v103_v7 }
   0xa   :  { %v231_v9 = vld [vmem:[%s8961_s1 + $0x5a0] sm:$0xff]  ;;  %662 = vmatpush.msra.mxu1 %v167_v8 }
   0xb   :  { %v299_v10 = vld [vmem:[%s8961_s1 + $0x7c0] sm:$0xff]  ;;  %685 = vmatpush.msra.mxu2 %v231_v9 }
   0xc   :  { %v99_v11 = vld [vmem:[%s8961_s1 + $0x180] sm:$0xff]  ;;  %707 = vmatpush.msra.mxu3 %v299_v10 }
   0xd   :  { %v163_v12 = vld [vmem:[%s8961_s1 + $0x380] sm:$0xff]  ;;  %640 = vmatpush.msra.mxu0 %v99_v11 }
   0xe   :  { %v227_v13 = vld [vmem:[%s8961_s1 + $0x580] sm:$0xff]  ;;  %663 = vmatpush.msra.mxu1 %v163_v12 }
   0xf   :  { %v295_v14 = vld [vmem:[%s8961_s1 + $0x7a0] sm:$0xff]  ;;  %686 = vmatpush.msra.mxu2 %v227_v13 }
  0x10   :  { %v95_v15 = vld [vmem:[%s8961_s1 + $0x160] sm:$0xff]  ;;  %708 = vmatpush.msra.mxu3 %v295_v14 }
  0x11   :  { %v159_v16 = vld [vmem:[%s8961_s1 + $0x360] sm:$0xff]  ;;  %641 = vmatpush.msra.mxu0 %v95_v15 }
  0x12   :  { %v223_v17 = vld [vmem:[%s8961_s1 + $0x560] sm:$0xff]  ;;  %664 = vmatpush.msra.mxu1 %v159_v16 }
  0x13   :  { %v291_v18 = vld [vmem:[%s8961_s1 + $0x780] sm:$0xff]  ;;  %687 = vmatpush.msra.mxu2 %v223_v17 }
  0x14   :  { %v91_v19 = vld [vmem:[%s8961_s1 + $0x140] sm:$0xff]  ;;  %709 = vmatpush.msra.mxu3 %v291_v18 }
  0x15   :  { %v155_v20 = vld [vmem:[%s8961_s1 + $0x340] sm:$0xff]  ;;  %642 = vmatpush.msra.mxu0 %v91_v19 }
  0x16   :  { %v219_v21 = vld [vmem:[%s8961_s1 + $0x540] sm:$0xff]  ;;  %665 = vmatpush.msra.mxu1 %v155_v20 }
  0x17   :  { %v287_v22 = vld [vmem:[%s8961_s1 + $0x760] sm:$0xff]  ;;  %688 = vmatpush.msra.mxu2 %v219_v21 }
  0x18   :  { %v87_v23 = vld [vmem:[%s8961_s1 + $0x120] sm:$0xff]  ;;  %710 = vmatpush.msra.mxu3 %v287_v22 }
  0x19   :  { %v151_v24 = vld [vmem:[%s8961_s1 + $0x320] sm:$0xff]  ;;  %643 = vmatpush.msra.mxu0 %v87_v23 }
  0x1a   :  { %v215_v25 = vld [vmem:[%s8961_s1 + $0x520] sm:$0xff]  ;;  %666 = vmatpush.msra.mxu1 %v151_v24 }
  0x1b   :  { %v283_v26 = vld [vmem:[%s8961_s1 + $0x740] sm:$0xff]  ;;  %689 = vmatpush.msra.mxu2 %v215_v25 }
  0x1c   :  { %v83_v27 = vld [vmem:[%s8961_s1 + $0x100] sm:$0xff]  ;;  %711 = vmatpush.msra.mxu3 %v283_v26 }
  0x1d   :  { %v147_v28 = vld [vmem:[%s8961_s1 + $0x300] sm:$0xff]  ;;  %644 = vmatpush.msra.mxu0 %v83_v27 }
  0x1e   :  { %v211_v29 = vld [vmem:[%s8961_s1 + $0x500] sm:$0xff]  ;;  %667 = vmatpush.msra.mxu1 %v147_v28 }
  0x1f   :  { %v279_v30 = vld [vmem:[%s8961_s1 + $0x720] sm:$0xff]  ;;  %690 = vmatpush.msra.mxu2 %v211_v29 }
  0x20   :  { %v79_v31 = vld [vmem:[%s8961_s1 + $0xe0] sm:$0xff]  ;;  %712 = vmatpush.msra.mxu3 %v279_v30 }
  0x21   :  { %v143_v32 = vld [vmem:[%s8961_s1 + $0x2e0] sm:$0xff]  ;;  %645 = vmatpush.msra.mxu0 %v79_v31 }
  0x22   :  { %v207_v33 = vld [vmem:[%s8961_s1 + $0x4e0] sm:$0xff]  ;;  %668 = vmatpush.msra.mxu1 %v143_v32 }
  0x23   :  { %v275_v34 = vld [vmem:[%s8961_s1 + $0x700] sm:$0xff]  ;;  %691 = vmatpush.msra.mxu2 %v207_v33 }
  0x24   :  { %v75_v35 = vld [vmem:[%s8961_s1 + $0xc0] sm:$0xff]  ;;  %713 = vmatpush.msra.mxu3 %v275_v34 }
  0x25   :  { %v139_v36 = vld [vmem:[%s8961_s1 + $0x2c0] sm:$0xff]  ;;  %646 = vmatpush.msra.mxu0 %v75_v35 }
  0x26   :  { %v203_v37 = vld [vmem:[%s8961_s1 + $0x4c0] sm:$0xff]  ;;  %669 = vmatpush.msra.mxu1 %v139_v36 }
  0x27   :  { %v271_v38 = vld [vmem:[%s8961_s1 + $0x6e0] sm:$0xff]  ;;  %692 = vmatpush.msra.mxu2 %v203_v37 }
  0x28   :  { %v71_v39 = vld [vmem:[%s8961_s1 + $0xa0] sm:$0xff]  ;;  %714 = vmatpush.msra.mxu3 %v271_v38 }
  0x29   :  { %v135_v40 = vld [vmem:[%s8961_s1 + $0x2a0] sm:$0xff]  ;;  %647 = vmatpush.msra.mxu0 %v71_v39 }
  0x2a   :  { %v199_v41 = vld [vmem:[%s8961_s1 + $0x4a0] sm:$0xff]  ;;  %670 = vmatpush.msra.mxu1 %v135_v40 }
  0x2b   :  { %v267_v42 = vld [vmem:[%s8961_s1 + $0x6c0] sm:$0xff]  ;;  %693 = vmatpush.msra.mxu2 %v199_v41 }
  0x2c   :  { %v67_v43 = vld [vmem:[%s8961_s1 + $0x80] sm:$0xff]  ;;  %715 = vmatpush.msra.mxu3 %v267_v42 }
  0x2d   :  { %v131_v44 = vld [vmem:[%s8961_s1 + $0x280] sm:$0xff]  ;;  %648 = vmatpush.msra.mxu0 %v67_v43 }
  0x2e   :  { %v195_v45 = vld [vmem:[%s8961_s1 + $0x480] sm:$0xff]  ;;  %671 = vmatpush.msra.mxu1 %v131_v44 }
  0x2f   :  { %v263_v46 = vld [vmem:[%s8961_s1 + $0x6a0] sm:$0xff]  ;;  %694 = vmatpush.msra.mxu2 %v195_v45 }
  0x30   :  { %v63_v47 = vld [vmem:[%s8961_s1 + $0x60] sm:$0xff]  ;;  %716 = vmatpush.msra.mxu3 %v263_v46 }
  0x31   :  { %v127_v48 = vld [vmem:[%s8961_s1 + $0x260] sm:$0xff]  ;;  %649 = vmatpush.msra.mxu0 %v63_v47  ;;  %v4457_v47 = vld [vmem:[%s8960_s0 + $0x10] sm:$0xff] }
  0x32   :  { %v191_v49 = vld [vmem:[%s8961_s1 + $0x460] sm:$0xff]  ;;  %672 = vmatpush.msra.mxu1 %v127_v48 }
  0x33   :  { %v259_v50 = vld [vmem:[%s8961_s1 + $0x680] sm:$0xff]  ;;  %695 = vmatpush.msra.mxu2 %v191_v49 }
  0x34   :  { %v59_v51 = vld [vmem:[%s8961_s1 + $0x40] sm:$0xff]  ;;  %717 = vmatpush.msra.mxu3 %v259_v50 }
  0x35   :  { %v123_v52 = vld [vmem:[%s8961_s1 + $0x240] sm:$0xff]  ;;  %650 = vmatpush.msra.mxu0 %v59_v51 }
  0x36   :  { %v187_v53 = vld [vmem:[%s8961_s1 + $0x440] sm:$0xff]  ;;  %673 = vmatpush.msra.mxu1 %v123_v52 }
  0x37   :  { %v255_v54 = vld [vmem:[%s8961_s1 + $0x660] sm:$0xff]  ;;  %696 = vmatpush.msra.mxu2 %v187_v53  ;;  %v4480_v53 = vld [vmem:[%s8960_s0 + $0x18] sm:$0xff] }
  0x38   :  { %v55_v55 = vld [vmem:[%s8961_s1 + $0x20] sm:$0xff]  ;;  %718 = vmatpush.msra.mxu3 %v255_v54 }
  0x39   :  { %v119_v56 = vld [vmem:[%s8961_s1 + $0x220] sm:$0xff]  ;;  %651 = vmatpush.msra.mxu0 %v55_v55 }
  0x3a   :  { %v183_v57 = vld [vmem:[%s8961_s1 + $0x420] sm:$0xff]  ;;  %674 = vmatpush.msra.mxu1 %v119_v56 }
  0x3b   :  { %v251_v58 = vld [vmem:[%s8961_s1 + $0x640] sm:$0xff]  ;;  %697 = vmatpush.msra.mxu2 %v183_v57 }
  0x3c   :  { %v51_v59 = vld [vmem:[%s8961_s1] sm:$0xff]  ;;  %719 = vmatpush.msra.mxu3 %v251_v58  ;;  %v4498_v58 = vld [vmem:[%s8960_s0 + $0x8] sm:$0xff] }
  0x3d   :  { %v115_v60 = vld [vmem:[%s8961_s1 + $0x200] sm:$0xff]  ;;  %652 = vmatpush.msra.mxu0 %v51_v59 }
  0x3e   :  { %v179_v61 = vld [vmem:[%s8961_s1 + $0x400] sm:$0xff]  ;;  %675 = vmatpush.msra.mxu1 %v115_v60 }
  0x3f   :  { %v247_v62 = vld [vmem:[%s8961_s1 + $0x620] sm:$0xff]  ;;  %698 = vmatpush.msra.mxu2 %v179_v61  ;;  %676 = vmatmul.f32.vlgmr.msra.gmra.mxu1 %v4498_v58 }
  0x40   :  { %v367_v63 = vld [vmem:[%s8961_s1 + $0x9e0] sm:$0xff]  ;;  %720 = vmatpush.msra.mxu3 %v247_v62  ;;  %699 = vmatmul.f32.vlgmr.msra.gmra.mxu2 %v4457_v47 }
  0x41   :  { %v431_v0 = vld [vmem:[%s8961_s1 + $0xbe0] sm:$0xff]  ;;  %729 = vmatpush.msrb.mxu0 %v367_v63 }
  0x42   :  { %v495_v1 = vld [vmem:[%s8961_s1 + $0xde0] sm:$0xff]  ;;  %752 = vmatpush.msrb.mxu1 %v431_v0 }
  0x43   :  { %v243_v2 = vld [vmem:[%s8961_s1 + $0x600] sm:$0xff]  ;;  %775 = vmatpush.msrb.mxu2 %v495_v1 }
  0x44   :  { %v363_v3 = vld [vmem:[%s8961_s1 + $0x9c0] sm:$0xff]  ;;  %721 = vmatpush.msra.mxu3 %v243_v2 }
  0x45   :  { %v427_v4 = vld [vmem:[%s8961_s1 + $0xbc0] sm:$0xff]  ;;  %730 = vmatpush.msrb.mxu0 %v363_v3  ;;  %722 = vmatmul.f32.vlgmr.msra.gmra.mxu3 %v4480_v53  ;;  %v4529_v3 = vld [vmem:[%s8960_s0 + $0x58] sm:$0xff] }
  0x46   :  { %v491_v5 = vld [vmem:[%s8961_s1 + $0xdc0] sm:$0xff]  ;;  %753 = vmatpush.msrb.mxu1 %v427_v4 }
  0x47   :  { %v559_v6 = vld [vmem:[%s8961_s1 + $0xfe0] sm:$0xff]  ;;  %776 = vmatpush.msrb.mxu2 %v491_v5 }
  0x48   :  { %v359_v7 = vld [vmem:[%s8961_s1 + $0x9a0] sm:$0xff]  ;;  %798 = vmatpush.msrb.mxu3 %v559_v6 }
  0x49   :  { %v423_v8 = vld [vmem:[%s8961_s1 + $0xba0] sm:$0xff]  ;;  %731 = vmatpush.msrb.mxu0 %v359_v7 }
  0x4a   :  { %v487_v9 = vld [vmem:[%s8961_s1 + $0xda0] sm:$0xff]  ;;  %754 = vmatpush.msrb.mxu1 %v423_v8 }
  0x4b   :  { %v555_v10 = vld [vmem:[%s8961_s1 + $0xfc0] sm:$0xff]  ;;  %777 = vmatpush.msrb.mxu2 %v487_v9 }
  0x4c   :  { %v355_v11 = vld [vmem:[%s8961_s1 + $0x980] sm:$0xff]  ;;  %799 = vmatpush.msrb.mxu3 %v555_v10 }
  0x4d   :  { %v419_v12 = vld [vmem:[%s8961_s1 + $0xb80] sm:$0xff]  ;;  %732 = vmatpush.msrb.mxu0 %v355_v11 }
  0x4e   :  { %v483_v13 = vld [vmem:[%s8961_s1 + $0xd80] sm:$0xff]  ;;  %755 = vmatpush.msrb.mxu1 %v419_v12 }
  0x4f   :  { %v551_v14 = vld [vmem:[%s8961_s1 + $0xfa0] sm:$0xff]  ;;  %778 = vmatpush.msrb.mxu2 %v483_v13 }
  0x50   :  { %v351_v15 = vld [vmem:[%s8961_s1 + $0x960] sm:$0xff]  ;;  %800 = vmatpush.msrb.mxu3 %v551_v14 }
  0x51   :  { %v415_v16 = vld [vmem:[%s8961_s1 + $0xb60] sm:$0xff]  ;;  %733 = vmatpush.msrb.mxu0 %v351_v15 }
  0x52   :  { %v479_v17 = vld [vmem:[%s8961_s1 + $0xd60] sm:$0xff]  ;;  %756 = vmatpush.msrb.mxu1 %v415_v16 }
  0x53   :  { %v547_v18 = vld [vmem:[%s8961_s1 + $0xf80] sm:$0xff]  ;;  %779 = vmatpush.msrb.mxu2 %v479_v17 }
  0x54   :  { %v347_v19 = vld [vmem:[%s8961_s1 + $0x940] sm:$0xff]  ;;  %801 = vmatpush.msrb.mxu3 %v547_v18 }
  0x55   :  { %v411_v20 = vld [vmem:[%s8961_s1 + $0xb40] sm:$0xff]  ;;  %734 = vmatpush.msrb.mxu0 %v347_v19 }
  0x56   :  { %v475_v21 = vld [vmem:[%s8961_s1 + $0xd40] sm:$0xff]  ;;  %757 = vmatpush.msrb.mxu1 %v411_v20 }
  0x57   :  { %v543_v22 = vld [vmem:[%s8961_s1 + $0xf60] sm:$0xff]  ;;  %780 = vmatpush.msrb.mxu2 %v475_v21 }
  0x58   :  { %v343_v23 = vld [vmem:[%s8961_s1 + $0x920] sm:$0xff]  ;;  %802 = vmatpush.msrb.mxu3 %v543_v22 }
  0x59   :  { %v407_v24 = vld [vmem:[%s8961_s1 + $0xb20] sm:$0xff]  ;;  %735 = vmatpush.msrb.mxu0 %v343_v23 }
  0x5a   :  { %v471_v25 = vld [vmem:[%s8961_s1 + $0xd20] sm:$0xff]  ;;  %758 = vmatpush.msrb.mxu1 %v407_v24 }
  0x5b   :  { %v539_v26 = vld [vmem:[%s8961_s1 + $0xf40] sm:$0xff]  ;;  %781 = vmatpush.msrb.mxu2 %v471_v25 }
  0x5c   :  { %v339_v27 = vld [vmem:[%s8961_s1 + $0x900] sm:$0xff]  ;;  %803 = vmatpush.msrb.mxu3 %v539_v26 }
  0x5d   :  { %v403_v28 = vld [vmem:[%s8961_s1 + $0xb00] sm:$0xff]  ;;  %736 = vmatpush.msrb.mxu0 %v339_v27 }
  0x5e   :  { %v467_v29 = vld [vmem:[%s8961_s1 + $0xd00] sm:$0xff]  ;;  %759 = vmatpush.msrb.mxu1 %v403_v28 }
  0x5f   :  { %v535_v30 = vld [vmem:[%s8961_s1 + $0xf20] sm:$0xff]  ;;  %782 = vmatpush.msrb.mxu2 %v467_v29 }
  0x60   :  { %v335_v31 = vld [vmem:[%s8961_s1 + $0x8e0] sm:$0xff]  ;;  %804 = vmatpush.msrb.mxu3 %v535_v30 }
  0x61   :  { %v399_v32 = vld [vmem:[%s8961_s1 + $0xae0] sm:$0xff]  ;;  %737 = vmatpush.msrb.mxu0 %v335_v31 }
  0x62   :  { %v463_v33 = vld [vmem:[%s8961_s1 + $0xce0] sm:$0xff]  ;;  %760 = vmatpush.msrb.mxu1 %v399_v32 }
  0x63   :  { %v531_v34 = vld [vmem:[%s8961_s1 + $0xf00] sm:$0xff]  ;;  %783 = vmatpush.msrb.mxu2 %v463_v33 }
  0x64   :  { %v331_v35 = vld [vmem:[%s8961_s1 + $0x8c0] sm:$0xff]  ;;  %805 = vmatpush.msrb.mxu3 %v531_v34 }
  0x65   :  { %v395_v36 = vld [vmem:[%s8961_s1 + $0xac0] sm:$0xff]  ;;  %738 = vmatpush.msrb.mxu0 %v331_v35 }
  0x66   :  { %v459_v37 = vld [vmem:[%s8961_s1 + $0xcc0] sm:$0xff]  ;;  %761 = vmatpush.msrb.mxu1 %v395_v36 }
  0x67   :  { %v527_v38 = vld [vmem:[%s8961_s1 + $0xee0] sm:$0xff]  ;;  %784 = vmatpush.msrb.mxu2 %v459_v37 }
  0x68   :  { %v327_v39 = vld [vmem:[%s8961_s1 + $0x8a0] sm:$0xff]  ;;  %806 = vmatpush.msrb.mxu3 %v527_v38 }
  0x69   :  { %v391_v40 = vld [vmem:[%s8961_s1 + $0xaa0] sm:$0xff]  ;;  %739 = vmatpush.msrb.mxu0 %v327_v39 }
  0x6a   :  { %v455_v41 = vld [vmem:[%s8961_s1 + $0xca0] sm:$0xff]  ;;  %762 = vmatpush.msrb.mxu1 %v391_v40 }
  0x6b   :  { %v523_v42 = vld [vmem:[%s8961_s1 + $0xec0] sm:$0xff]  ;;  %785 = vmatpush.msrb.mxu2 %v455_v41 }
  0x6c   :  { %v323_v43 = vld [vmem:[%s8961_s1 + $0x880] sm:$0xff]  ;;  %807 = vmatpush.msrb.mxu3 %v523_v42 }
  0x6d   :  { %v387_v44 = vld [vmem:[%s8961_s1 + $0xa80] sm:$0xff]  ;;  %740 = vmatpush.msrb.mxu0 %v323_v43 }
  0x6e   :  { %v451_v45 = vld [vmem:[%s8961_s1 + $0xc80] sm:$0xff]  ;;  %763 = vmatpush.msrb.mxu1 %v387_v44 }
  0x6f   :  { %v519_v46 = vld [vmem:[%s8961_s1 + $0xea0] sm:$0xff]  ;;  %786 = vmatpush.msrb.mxu2 %v451_v45 }
  0x70   :  { %v319_v48 = vld [vmem:[%s8961_s1 + $0x860] sm:$0xff]  ;;  %808 = vmatpush.msrb.mxu3 %v519_v46 }
  0x71   :  { %v383_v49 = vld [vmem:[%s8961_s1 + $0xa60] sm:$0xff]  ;;  %741 = vmatpush.msrb.mxu0 %v319_v48 }
  0x72   :  { %v447_v50 = vld [vmem:[%s8961_s1 + $0xc60] sm:$0xff]  ;;  %764 = vmatpush.msrb.mxu1 %v383_v49 }
  0x73   :  { %v515_v51 = vld [vmem:[%s8961_s1 + $0xe80] sm:$0xff]  ;;  %787 = vmatpush.msrb.mxu2 %v447_v50 }
  0x74   :  { %v4474_v52 = vld [vmem:[%s8960_s0] sm:$0xff]  ;;  %809 = vmatpush.msrb.mxu3 %v515_v51 }
  0x75   :  { %v315_v54 = vld [vmem:[%s8961_s1 + $0x840] sm:$0xff]  ;;  %653 = vmatmul.f32.vlgmr.msra.gmra.mxu0 %v4474_v52 }
  0x76   :  { %v379_v55 = vld [vmem:[%s8961_s1 + $0xa40] sm:$0xff]  ;;  %742 = vmatpush.msrb.mxu0 %v315_v54 }
  0x77   :  { %v443_v56 = vld [vmem:[%s8961_s1 + $0xc40] sm:$0xff]  ;;  %765 = vmatpush.msrb.mxu1 %v379_v55 }
  0x78   :  { %v511_v57 = vld [vmem:[%s8961_s1 + $0xe60] sm:$0xff]  ;;  %788 = vmatpush.msrb.mxu2 %v443_v56 }
  0x79   :  { %v311_v59 = vld [vmem:[%s8961_s1 + $0x820] sm:$0xff]  ;;  %810 = vmatpush.msrb.mxu3 %v511_v57 }
  0x7a   :  { %v375_v60 = vld [vmem:[%s8961_s1 + $0xa20] sm:$0xff]  ;;  %743 = vmatpush.msrb.mxu0 %v311_v59 }
  0x7b   :  { %v439_v61 = vld [vmem:[%s8961_s1 + $0xc20] sm:$0xff]  ;;  %766 = vmatpush.msrb.mxu1 %v375_v60 }
  0x7c   :  { %v507_v62 = vld [vmem:[%s8961_s1 + $0xe40] sm:$0xff]  ;;  %789 = vmatpush.msrb.mxu2 %v439_v61 }
  0x7d   :  { %v307_v63 = vld [vmem:[%s8961_s1 + $0x800] sm:$0xff]  ;;  %811 = vmatpush.msrb.mxu3 %v507_v62 }
  0x7e   :  { %v371_v0 = vld [vmem:[%s8961_s1 + $0xa00] sm:$0xff] }
  0x7f   :  { %v435_v1 = vld [vmem:[%s8961_s1 + $0xc00] sm:$0xff] }
  0x80   :  { %v503_v2 = vld [vmem:[%s8961_s1 + $0xe20] sm:$0xff] }
  0x81   :  { %v623_v4 = vld [vmem:[%s8961_s1 + $0x11e0] sm:$0xff] }
  0x82   :  { %14 = vsyncpa [#allocation3], 0  ;;  %744 = vmatpush.msrb.mxu0 %v307_v63  ;;  %767 = vmatpush.msrb.mxu1 %v371_v0  ;;  %v112_v5 = vld [vmem:[%s8961_s1 + $0x1e8] sm:$0xff]  ;;  %v499_v7 = vld [vmem:[%s8961_s1 + $0xe00] sm:$0xff]  ;;  %s3917_s20 = sshll.u32 %s8969_s9, 4  ;;  %s4069_s21 = smov 1152   ;;  %s3918_s20 = int_to_ptr.hbm [resolvable:$true] %s3917_s20 }
  0x83   :  { %v176_v6 = vld [vmem:[%s8961_s1 + $0x3e8] sm:$0xff]  ;;  %790 = vmatpush.msrb.mxu2 %v435_v1  ;;  %812 = vmatpush.msrb.mxu3 %v503_v2  ;;  %v4552_v9 = vld [vmem:[%s8960_s0 + $0x60] sm:$0xff]  ;;  %v4570_v14 = vld [vmem:[%s8960_s0 + $0x50] sm:$0xff]  ;;  %s4070_s22 = smov 72  }
  0x84   :  { %v4546_v8 = vld [vmem:[%s8960_s0 + $0x48] sm:$0xff]  ;;  %702 = vmatmul.f32.gmra.mxu2 %v4529_v3  ;;  %821 = vmatpush.msra.mxu0 %v623_v4  ;;  %v619_v10 = vld [vmem:[%s8961_s1 + $0x11c0] sm:$0xff]  ;;  %v4601_v23 = vld [vmem:[%s8960_s0 + $0x30] sm:$0xff] }
  0x85   :  { %844 = vmatpush.msra.mxu1 %v112_v5  ;;  %867 = vmatpush.msra.mxu2 %v176_v6  ;;  %v108_v11 = vld [vmem:[%s8961_s1 + $0x1c8] sm:$0xff]  ;;  %v615_v15 = vld [vmem:[%s8961_s1 + $0x11a0] sm:$0xff]  ;;  %v4624_v29 = vld [vmem:[%s8960_s0 + $0x38] sm:$0xff] }
  0x86   :  { %v172_v12 = vld [vmem:[%s8961_s1 + $0x3c8] sm:$0xff]  ;;  %813 = vmatpush.msrb.mxu3 %v499_v7  ;;  %656 = vmatmul.f32.gmra.mxu0 %v4546_v8  ;;  %v611_v19 = vld [vmem:[%s8961_s1 + $0x1180] sm:$0xff] }
  0x87   :  { %v240_v13 = vld [vmem:[%s8961_s1 + $0x5e8] sm:$0xff]  ;;  %725 = vmatmul.f32.gmra.mxu3 %v4552_v9  ;;  %822 = vmatpush.msra.mxu0 %v619_v10  ;;  %v607_v24 = vld [vmem:[%s8961_s1 + $0x1160] sm:$0xff] }
  0x88   :  { %v104_v16 = vld [vmem:[%s8961_s1 + $0x1a8] sm:$0xff]  ;;  %845 = vmatpush.msra.mxu1 %v108_v11  ;;  %868 = vmatpush.msra.mxu2 %v172_v12  ;;  %v4618_v28 = vld [vmem:[%s8960_s0 + $0x20] sm:$0xff] }
  0x89   :  { %v168_v17 = vld [vmem:[%s8961_s1 + $0x3a8] sm:$0xff]  ;;  %890 = vmatpush.msra.mxu3 %v240_v13  ;;  %679 = vmatmul.f32.gmra.mxu1 %v4570_v14  ;;  %v603_v30 = vld [vmem:[%s8961_s1 + $0x1140] sm:$0xff] }
  0x8a   :  { %v236_v18 = vld [vmem:[%s8961_s1 + $0x5c8] sm:$0xff]  ;;  %823 = vmatpush.msra.mxu0 %v615_v15  ;;  %846 = vmatpush.msra.mxu1 %v104_v16  ;;  %v599_v35 = vld [vmem:[%s8961_s1 + $0x1120] sm:$0xff] }
  0x8b   :  { %v100_v20 = vld [vmem:[%s8961_s1 + $0x188] sm:$0xff]  ;;  %869 = vmatpush.msra.mxu2 %v168_v17  ;;  %891 = vmatpush.msra.mxu3 %v236_v18  ;;  %v595_v39 = vld [vmem:[%s8961_s1 + $0x1100] sm:$0xff] }
  0x8c   :  { %v164_v21 = vld [vmem:[%s8961_s1 + $0x388] sm:$0xff]  ;;  %824 = vmatpush.msra.mxu0 %v611_v19  ;;  %847 = vmatpush.msra.mxu1 %v100_v20  ;;  %v591_v43 = vld [vmem:[%s8961_s1 + $0x10e0] sm:$0xff]  ;;  %v4775_v20 = vld [vmem:[%s8960_s0 + $0x78] sm:$0xff] }
  0x8d   :  { %v232_v22 = vld [vmem:[%s8961_s1 + $0x5a8] sm:$0xff]  ;;  %870 = vmatpush.msra.mxu2 %v164_v21  ;;  %v587_v48 = vld [vmem:[%s8961_s1 + $0x10c0] sm:$0xff] }
  0x8e   :  { %v96_v25 = vld [vmem:[%s8961_s1 + $0x168] sm:$0xff]  ;;  %892 = vmatpush.msra.mxu3 %v232_v22  ;;  %791 = vmatmul.f32.vlgmr.msrb.gmra.mxu2 %v4601_v23  ;;  %v583_v54 = vld [vmem:[%s8961_s1 + $0x10a0] sm:$0xff] }
  0x8f   :  { %v160_v26 = vld [vmem:[%s8961_s1 + $0x368] sm:$0xff]  ;;  %825 = vmatpush.msra.mxu0 %v607_v24  ;;  %848 = vmatpush.msra.mxu1 %v96_v25  ;;  %v579_v59 = vld [vmem:[%s8961_s1 + $0x1080] sm:$0xff] }
  0x90   :  { %v228_v27 = vld [vmem:[%s8961_s1 + $0x588] sm:$0xff]  ;;  %871 = vmatpush.msra.mxu2 %v160_v26  ;;  %745 = vmatmul.f32.vlgmr.msrb.gmra.mxu0 %v4618_v28  ;;  %v575_v1 = vld [vmem:[%s8961_s1 + $0x1060] sm:$0xff] }
  0x91   :  { %v92_v31 = vld [vmem:[%s8961_s1 + $0x148] sm:$0xff]  ;;  %893 = vmatpush.msra.mxu3 %v228_v27  ;;  %826 = vmatpush.msra.mxu0 %v603_v30  ;;  %v571_v6 = vld [vmem:[%s8961_s1 + $0x1040] sm:$0xff] }
  0x92   :  { %v156_v32 = vld [vmem:[%s8961_s1 + $0x348] sm:$0xff]  ;;  %814 = vmatmul.f32.vlgmr.msrb.gmra.mxu3 %v4624_v29  ;;  %849 = vmatpush.msra.mxu1 %v92_v31  ;;  %v567_v12 = vld [vmem:[%s8961_s1 + $0x1020] sm:$0xff] }
  0x93   :  { %v224_v33 = vld [vmem:[%s8961_s1 + $0x568] sm:$0xff]  ;;  %872 = vmatpush.msra.mxu2 %v156_v32  ;;  %827 = vmatpush.msra.mxu0 %v599_v35  ;;  %v563_v17 = vld [vmem:[%s8961_s1 + $0x1000] sm:$0xff]  ;;  %v4816_v35 = vld [vmem:[%s8960_s0 + $0x70] sm:$0xff] }
  0x94   :  { %v4642_v34 = vld [vmem:[%s8960_s0 + $0x28] sm:$0xff]  ;;  %894 = vmatpush.msra.mxu3 %v224_v33  ;;  %v4780_v21 = vld [vmem:[%s8960_s0 + $0x40] sm:$0xff] }
  0x95   :  { %v88_v36 = vld [vmem:[%s8961_s1 + $0x128] sm:$0xff]  ;;  %768 = vmatmul.f32.vlgmr.msrb.gmra.mxu1 %v4642_v34  ;;  %828 = vmatpush.msra.mxu0 %v595_v39  ;;  %v4802_v30 = vld [vmem:[%s8960_s0 + $0x80] sm:$0xff] }
  0x96   :  { %v152_v37 = vld [vmem:[%s8961_s1 + $0x328] sm:$0xff]  ;;  %850 = vmatpush.msra.mxu1 %v88_v36  ;;  %794 = vmatmul.f32.gmra.mxu2 %v4775_v20 }
  0x97   :  { %v220_v38 = vld [vmem:[%s8961_s1 + $0x548] sm:$0xff]  ;;  %873 = vmatpush.msra.mxu2 %v152_v37  ;;  %829 = vmatpush.msra.mxu0 %v591_v43 }
  0x98   :  { %v84_v40 = vld [vmem:[%s8961_s1 + $0x108] sm:$0xff]  ;;  %895 = vmatpush.msra.mxu3 %v220_v38 }
  0x99   :  { %v148_v41 = vld [vmem:[%s8961_s1 + $0x308] sm:$0xff]  ;;  %851 = vmatpush.msra.mxu1 %v84_v40  ;;  %830 = vmatpush.msra.mxu0 %v587_v48 }
  0x9a   :  { %v216_v42 = vld [vmem:[%s8961_s1 + $0x528] sm:$0xff]  ;;  %874 = vmatpush.msra.mxu2 %v148_v41  ;;  %817 = vmatmul.f32.gmra.mxu3 %v4802_v30 }
  0x9b   :  { %v80_v44 = vld [vmem:[%s8961_s1 + $0xe8] sm:$0xff]  ;;  %896 = vmatpush.msra.mxu3 %v216_v42  ;;  %831 = vmatpush.msra.mxu0 %v583_v54 }
  0x9c   :  { %v144_v45 = vld [vmem:[%s8961_s1 + $0x2e8] sm:$0xff]  ;;  %852 = vmatpush.msra.mxu1 %v80_v44 }
  0x9d   :  { %v212_v46 = vld [vmem:[%s8961_s1 + $0x508] sm:$0xff]  ;;  %875 = vmatpush.msra.mxu2 %v144_v45  ;;  %832 = vmatpush.msra.mxu0 %v579_v59 }
  0x9e   :  { %v76_v49 = vld [vmem:[%s8961_s1 + $0xc8] sm:$0xff]  ;;  %897 = vmatpush.msra.mxu3 %v212_v46  ;;  %771 = vmatmul.f32.gmra.mxu1 %v4816_v35 }
  0x9f   :  { %v140_v50 = vld [vmem:[%s8961_s1 + $0x2c8] sm:$0xff]  ;;  %853 = vmatpush.msra.mxu1 %v76_v49  ;;  %833 = vmatpush.msra.mxu0 %v575_v1 }
  0xa0   :  { %v208_v51 = vld [vmem:[%s8961_s1 + $0x4e8] sm:$0xff]  ;;  %876 = vmatpush.msra.mxu2 %v140_v50 }
  0xa1   :  { %v72_v55 = vld [vmem:[%s8961_s1 + $0xa8] sm:$0xff]  ;;  %898 = vmatpush.msra.mxu3 %v208_v51  ;;  %834 = vmatpush.msra.mxu0 %v571_v6 }
  0xa2   :  { %v136_v56 = vld [vmem:[%s8961_s1 + $0x2a8] sm:$0xff]  ;;  %854 = vmatpush.msra.mxu1 %v72_v55 }
  0xa3   :  { %v204_v57 = vld [vmem:[%s8961_s1 + $0x4c8] sm:$0xff]  ;;  %877 = vmatpush.msra.mxu2 %v136_v56  ;;  %835 = vmatpush.msra.mxu0 %v567_v12 }
  0xa4   :  { %v68_v60 = vld [vmem:[%s8961_s1 + $0x88] sm:$0xff]  ;;  %899 = vmatpush.msra.mxu3 %v204_v57 }
  0xa5   :  { %v132_v61 = vld [vmem:[%s8961_s1 + $0x288] sm:$0xff]  ;;  %855 = vmatpush.msra.mxu1 %v68_v60  ;;  %836 = vmatpush.msra.mxu0 %v563_v17 }
  0xa6   :  { %v200_v62 = vld [vmem:[%s8961_s1 + $0x4a8] sm:$0xff]  ;;  %878 = vmatpush.msra.mxu2 %v132_v61 }
  0xa7   :  { %v4721_v63 = vld [vmem:[%s8960_s0 + $0x68] sm:$0xff]  ;;  %900 = vmatpush.msra.mxu3 %v200_v62 }
  0xa8   :  { %v64_v0 = vld [vmem:[%s8961_s1 + $0x68] sm:$0xff]  ;;  %748 = vmatmul.f32.gmra.mxu0 %v4721_v63 }
  0xa9   :  { %v128_v2 = vld [vmem:[%s8961_s1 + $0x268] sm:$0xff]  ;;  %856 = vmatpush.msra.mxu1 %v64_v0 }
  0xaa   :  { %v196_v4 = vld [vmem:[%s8961_s1 + $0x488] sm:$0xff]  ;;  %879 = vmatpush.msra.mxu2 %v128_v2 }
  0xab   :  { %v60_v5 = vld [vmem:[%s8961_s1 + $0x48] sm:$0xff]  ;;  %901 = vmatpush.msra.mxu3 %v196_v4 }
  0xac   :  { %v124_v7 = vld [vmem:[%s8961_s1 + $0x248] sm:$0xff]  ;;  %857 = vmatpush.msra.mxu1 %v60_v5 }
  0xad   :  { %v192_v10 = vld [vmem:[%s8961_s1 + $0x468] sm:$0xff]  ;;  %880 = vmatpush.msra.mxu2 %v124_v7 }
  0xae   :  { %v56_v11 = vld [vmem:[%s8961_s1 + $0x28] sm:$0xff]  ;;  %902 = vmatpush.msra.mxu3 %v192_v10 }
  0xaf   :  { %v120_v13 = vld [vmem:[%s8961_s1 + $0x228] sm:$0xff]  ;;  %858 = vmatpush.msra.mxu1 %v56_v11 }
  0xb0   :  { %v188_v15 = vld [vmem:[%s8961_s1 + $0x448] sm:$0xff]  ;;  %881 = vmatpush.msra.mxu2 %v120_v13  ;;  %837 = vmatmul.f32.vlgmr.msra.gmra.mxu0 %v4780_v21 }
  0xb1   :  { %v52_v16 = vld [vmem:[%s8961_s1 + $0x8] sm:$0xff]  ;;  %903 = vmatpush.msra.mxu3 %v188_v15 }
  0xb2   :  { %v116_v18 = vld [vmem:[%s8961_s1 + $0x208] sm:$0xff]  ;;  %859 = vmatpush.msra.mxu1 %v52_v16 }
  0xb3   :  { %v184_v19 = vld [vmem:[%s8961_s1 + $0x428] sm:$0xff]  ;;  %882 = vmatpush.msra.mxu2 %v116_v18  ;;  %860 = vmatmul.f32.vlgmr.msra.gmra.mxu1 %v4474_v52 }
  0xb4   :  { %v368_v22 = vld [vmem:[%s8961_s1 + $0x9e8] sm:$0xff]  ;;  %904 = vmatpush.msra.mxu3 %v184_v19  ;;  %883 = vmatmul.f32.vlgmr.msra.gmra.mxu2 %v4498_v58 }
  0xb5   :  { %v304_v24 = vld [vmem:[%s8961_s1 + $0x7e8] sm:$0xff]  ;;  %936 = vmatpush.msrb.mxu1 %v368_v22 }
  0xb6   :  { %v432_v25 = vld [vmem:[%s8961_s1 + $0xbe8] sm:$0xff]  ;;  %913 = vmatpush.msrb.mxu0 %v304_v24 }
  0xb7   :  { %v180_v26 = vld [vmem:[%s8961_s1 + $0x408] sm:$0xff]  ;;  %959 = vmatpush.msrb.mxu2 %v432_v25 }
  0xb8   :  { %v364_v27 = vld [vmem:[%s8961_s1 + $0x9c8] sm:$0xff]  ;;  %905 = vmatpush.msra.mxu3 %v180_v26 }
  0xb9   :  { %v300_v31 = vld [vmem:[%s8961_s1 + $0x7c8] sm:$0xff]  ;;  %937 = vmatpush.msrb.mxu1 %v364_v27  ;;  %906 = vmatmul.f32.vlgmr.msra.gmra.mxu3 %v4457_v47 }
  0xba   :  { %v428_v32 = vld [vmem:[%s8961_s1 + $0xbc8] sm:$0xff]  ;;  %914 = vmatpush.msrb.mxu0 %v300_v31 }
  0xbb   :  { %v496_v33 = vld [vmem:[%s8961_s1 + $0xde8] sm:$0xff]  ;;  %960 = vmatpush.msrb.mxu2 %v428_v32  ;;  %863 = vmatmul.f32.gmra.mxu1 %v4546_v8 }
  0xbc   :  { %v296_v36 = vld [vmem:[%s8961_s1 + $0x7a8] sm:$0xff]  ;;  %982 = vmatpush.msrb.mxu3 %v496_v33  ;;  %886 = vmatmul.f32.gmra.mxu2 %v4570_v14  ;;  %v177_v14 = vld [vmem:[%s8961_s1 + $0x3f0] sm:$0xff] }
  0xbd   :  { %v360_v37 = vld [vmem:[%s8961_s1 + $0x9a8] sm:$0xff]  ;;  %915 = vmatpush.msrb.mxu0 %v296_v36 }
  0xbe   :  { %v424_v38 = vld [vmem:[%s8961_s1 + $0xba8] sm:$0xff]  ;;  %938 = vmatpush.msrb.mxu1 %v360_v37 }
  0xbf   :  { %v492_v39 = vld [vmem:[%s8961_s1 + $0xdc8] sm:$0xff]  ;;  %961 = vmatpush.msrb.mxu2 %v424_v38 }
  0xc0   :  { %v292_v40 = vld [vmem:[%s8961_s1 + $0x788] sm:$0xff]  ;;  %983 = vmatpush.msrb.mxu3 %v492_v39 }
  0xc1   :  { %v356_v41 = vld [vmem:[%s8961_s1 + $0x988] sm:$0xff]  ;;  %916 = vmatpush.msrb.mxu0 %v292_v40  ;;  %909 = vmatmul.f32.gmra.mxu3 %v4529_v3 }
  0xc2   :  { %v420_v42 = vld [vmem:[%s8961_s1 + $0xb88] sm:$0xff]  ;;  %939 = vmatpush.msrb.mxu1 %v356_v41 }
  0xc3   :  { %v488_v43 = vld [vmem:[%s8961_s1 + $0xda8] sm:$0xff]  ;;  %962 = vmatpush.msrb.mxu2 %v420_v42 }
  0xc4   :  { %v288_v44 = vld [vmem:[%s8961_s1 + $0x768] sm:$0xff]  ;;  %984 = vmatpush.msrb.mxu3 %v488_v43 }
  0xc5   :  { %v352_v45 = vld [vmem:[%s8961_s1 + $0x968] sm:$0xff]  ;;  %917 = vmatpush.msrb.mxu0 %v288_v44 }
  0xc6   :  { %v416_v46 = vld [vmem:[%s8961_s1 + $0xb68] sm:$0xff]  ;;  %940 = vmatpush.msrb.mxu1 %v352_v45  ;;  %v113_v45 = vld [vmem:[%s8961_s1 + $0x1f0] sm:$0xff] }
  0xc7   :  { %v484_v48 = vld [vmem:[%s8961_s1 + $0xd88] sm:$0xff]  ;;  %963 = vmatpush.msrb.mxu2 %v416_v46 }
  0xc8   :  { %v4859_v49 = vld [vmem:[%s8960_s0 + $0x88] sm:$0xff]  ;;  %985 = vmatpush.msrb.mxu3 %v484_v48 }
  0xc9   :  { %v284_v50 = vld [vmem:[%s8961_s1 + $0x748] sm:$0xff]  ;;  %840 = vmatmul.f32.gmra.mxu0 %v4859_v49 }
  0xca   :  { %v348_v51 = vld [vmem:[%s8961_s1 + $0x948] sm:$0xff]  ;;  %918 = vmatpush.msrb.mxu0 %v284_v50 }
  0xcb   :  { %v412_v54 = vld [vmem:[%s8961_s1 + $0xb48] sm:$0xff]  ;;  %941 = vmatpush.msrb.mxu1 %v348_v51  ;;  %v109_v51 = vld [vmem:[%s8961_s1 + $0x1d0] sm:$0xff] }
  0xcc   :  { %v480_v55 = vld [vmem:[%s8961_s1 + $0xd68] sm:$0xff]  ;;  %964 = vmatpush.msrb.mxu2 %v412_v54 }
  0xcd   :  { %v280_v56 = vld [vmem:[%s8961_s1 + $0x728] sm:$0xff]  ;;  %986 = vmatpush.msrb.mxu3 %v480_v55 }
  0xce   :  { %v344_v57 = vld [vmem:[%s8961_s1 + $0x928] sm:$0xff]  ;;  %919 = vmatpush.msrb.mxu0 %v280_v56  ;;  %v105_v56 = vld [vmem:[%s8961_s1 + $0x1b0] sm:$0xff] }
  0xcf   :  { %v408_v59 = vld [vmem:[%s8961_s1 + $0xb28] sm:$0xff]  ;;  %942 = vmatpush.msrb.mxu1 %v344_v57  ;;  %v173_v57 = vld [vmem:[%s8961_s1 + $0x3d0] sm:$0xff] }
  0xd0   :  { %v476_v60 = vld [vmem:[%s8961_s1 + $0xd48] sm:$0xff]  ;;  %965 = vmatpush.msrb.mxu2 %v408_v59 }
  0xd1   :  { %v276_v61 = vld [vmem:[%s8961_s1 + $0x708] sm:$0xff]  ;;  %987 = vmatpush.msrb.mxu3 %v476_v60  ;;  %v101_v60 = vld [vmem:[%s8961_s1 + $0x190] sm:$0xff] }
  0xd2   :  { %v340_v62 = vld [vmem:[%s8961_s1 + $0x908] sm:$0xff]  ;;  %920 = vmatpush.msrb.mxu0 %v276_v61  ;;  %v169_v61 = vld [vmem:[%s8961_s1 + $0x3b0] sm:$0xff] }
  0xd3   :  { %v404_v0 = vld [vmem:[%s8961_s1 + $0xb08] sm:$0xff]  ;;  %943 = vmatpush.msrb.mxu1 %v340_v62 }
  0xd4   :  { %v472_v1 = vld [vmem:[%s8961_s1 + $0xd28] sm:$0xff]  ;;  %966 = vmatpush.msrb.mxu2 %v404_v0  ;;  %v97_v0 = vld [vmem:[%s8961_s1 + $0x170] sm:$0xff] }
  0xd5   :  { %v272_v2 = vld [vmem:[%s8961_s1 + $0x6e8] sm:$0xff]  ;;  %988 = vmatpush.msrb.mxu3 %v472_v1  ;;  %v165_v1 = vld [vmem:[%s8961_s1 + $0x390] sm:$0xff] }
  0xd6   :  { %v336_v4 = vld [vmem:[%s8961_s1 + $0x8e8] sm:$0xff]  ;;  %921 = vmatpush.msrb.mxu0 %v272_v2 }
  0xd7   :  { %v400_v5 = vld [vmem:[%s8961_s1 + $0xae8] sm:$0xff]  ;;  %944 = vmatpush.msrb.mxu1 %v336_v4 }
  0xd8   :  { %v468_v6 = vld [vmem:[%s8961_s1 + $0xd08] sm:$0xff]  ;;  %967 = vmatpush.msrb.mxu2 %v400_v5  ;;  %v93_v5 = vld [vmem:[%s8961_s1 + $0x150] sm:$0xff] }
  0xd9   :  { %v268_v7 = vld [vmem:[%s8961_s1 + $0x6c8] sm:$0xff]  ;;  %989 = vmatpush.msrb.mxu3 %v468_v6 }
  0xda   :  { %v332_v10 = vld [vmem:[%s8961_s1 + $0x8c8] sm:$0xff]  ;;  %922 = vmatpush.msrb.mxu0 %v268_v7 }
  0xdb   :  { %v396_v11 = vld [vmem:[%s8961_s1 + $0xac8] sm:$0xff]  ;;  %945 = vmatpush.msrb.mxu1 %v332_v10  ;;  %v157_v10 = vld [vmem:[%s8961_s1 + $0x350] sm:$0xff] }
  0xdc   :  { %v464_v12 = vld [vmem:[%s8961_s1 + $0xce8] sm:$0xff]  ;;  %968 = vmatpush.msrb.mxu2 %v396_v11 }
  0xdd   :  { %v264_v13 = vld [vmem:[%s8961_s1 + $0x6a8] sm:$0xff]  ;;  %990 = vmatpush.msrb.mxu3 %v464_v12  ;;  %v85_v12 = vld [vmem:[%s8961_s1 + $0x110] sm:$0xff] }
  0xde   :  { %v328_v15 = vld [vmem:[%s8961_s1 + $0x8a8] sm:$0xff]  ;;  %923 = vmatpush.msrb.mxu0 %v264_v13  ;;  %v153_v13 = vld [vmem:[%s8961_s1 + $0x330] sm:$0xff] }
  0xdf   :  { %v392_v16 = vld [vmem:[%s8961_s1 + $0xaa8] sm:$0xff]  ;;  %946 = vmatpush.msrb.mxu1 %v328_v15 }
  0xe0   :  { %v460_v17 = vld [vmem:[%s8961_s1 + $0xcc8] sm:$0xff]  ;;  %969 = vmatpush.msrb.mxu2 %v392_v16  ;;  %v81_v16 = vld [vmem:[%s8961_s1 + $0xf0] sm:$0xff] }
  0xe1   :  { %v260_v18 = vld [vmem:[%s8961_s1 + $0x688] sm:$0xff]  ;;  %991 = vmatpush.msrb.mxu3 %v460_v17  ;;  %v149_v17 = vld [vmem:[%s8961_s1 + $0x310] sm:$0xff] }
  0xe2   :  { %v324_v19 = vld [vmem:[%s8961_s1 + $0x888] sm:$0xff]  ;;  %924 = vmatpush.msrb.mxu0 %v260_v18 }
  0xe3   :  { %v388_v22 = vld [vmem:[%s8961_s1 + $0xa88] sm:$0xff]  ;;  %947 = vmatpush.msrb.mxu1 %v324_v19 }
  0xe4   :  { %v456_v24 = vld [vmem:[%s8961_s1 + $0xca8] sm:$0xff]  ;;  %970 = vmatpush.msrb.mxu2 %v388_v22  ;;  %v77_v22 = vld [vmem:[%s8961_s1 + $0xd0] sm:$0xff] }
  0xe5   :  { %v256_v25 = vld [vmem:[%s8961_s1 + $0x668] sm:$0xff]  ;;  %992 = vmatpush.msrb.mxu3 %v456_v24  ;;  %v145_v24 = vld [vmem:[%s8961_s1 + $0x2f0] sm:$0xff] }
  0xe6   :  { %v320_v26 = vld [vmem:[%s8961_s1 + $0x868] sm:$0xff]  ;;  %925 = vmatpush.msrb.mxu0 %v256_v25 }
  0xe7   :  { %v384_v27 = vld [vmem:[%s8961_s1 + $0xa68] sm:$0xff]  ;;  %948 = vmatpush.msrb.mxu1 %v320_v26 }
  0xe8   :  { %v452_v31 = vld [vmem:[%s8961_s1 + $0xc88] sm:$0xff]  ;;  %971 = vmatpush.msrb.mxu2 %v384_v27  ;;  %v73_v27 = vld [vmem:[%s8961_s1 + $0xb0] sm:$0xff] }
  0xe9   :  { %v252_v32 = vld [vmem:[%s8961_s1 + $0x648] sm:$0xff]  ;;  %993 = vmatpush.msrb.mxu3 %v452_v31  ;;  %v141_v31 = vld [vmem:[%s8961_s1 + $0x2d0] sm:$0xff] }
  0xea   :  { %v316_v33 = vld [vmem:[%s8961_s1 + $0x848] sm:$0xff]  ;;  %926 = vmatpush.msrb.mxu0 %v252_v32 }
  0xeb   :  { %v380_v36 = vld [vmem:[%s8961_s1 + $0xa48] sm:$0xff]  ;;  %949 = vmatpush.msrb.mxu1 %v316_v33 }
  0xec   :  { %v448_v37 = vld [vmem:[%s8961_s1 + $0xc68] sm:$0xff]  ;;  %972 = vmatpush.msrb.mxu2 %v380_v36  ;;  %v69_v36 = vld [vmem:[%s8961_s1 + $0x90] sm:$0xff] }
  0xed   :  { %v248_v58 = vld [vmem:[%s8961_s1 + $0x628] sm:$0xff]  ;;  %994 = vmatpush.msrb.mxu3 %v448_v37  ;;  %v137_v37 = vld [vmem:[%s8961_s1 + $0x2b0] sm:$0xff] }
  0xee   :  { %v312_v38 = vld [vmem:[%s8961_s1 + $0x828] sm:$0xff]  ;;  %927 = vmatpush.msrb.mxu0 %v248_v58 }
  0xef   :  { %v376_v39 = vld [vmem:[%s8961_s1 + $0xa28] sm:$0xff]  ;;  %950 = vmatpush.msrb.mxu1 %v312_v38 }
  0xf0   :  { %v444_v40 = vld [vmem:[%s8961_s1 + $0xc48] sm:$0xff]  ;;  %973 = vmatpush.msrb.mxu2 %v376_v39  ;;  %v65_v39 = vld [vmem:[%s8961_s1 + $0x70] sm:$0xff] }
  0xf1   :  { %v244_v41 = vld [vmem:[%s8961_s1 + $0x608] sm:$0xff]  ;;  %995 = vmatpush.msrb.mxu3 %v444_v40  ;;  %v133_v40 = vld [vmem:[%s8961_s1 + $0x290] sm:$0xff] }
  0xf2   :  { %v308_v47 = vld [vmem:[%s8961_s1 + $0x808] sm:$0xff]  ;;  %928 = vmatpush.msrb.mxu0 %v244_v41 }
  0xf3   :  { %v372_v42 = vld [vmem:[%s8961_s1 + $0xa08] sm:$0xff]  ;;  %951 = vmatpush.msrb.mxu1 %v308_v47  ;;  %929 = vmatmul.f32.vlgmr.msrb.gmra.mxu0 %v4480_v53  ;;  %v89_v53 = vld [vmem:[%s8961_s1 + $0x130] sm:$0xff] }
  0xf4   :  { %v440_v43 = vld [vmem:[%s8961_s1 + $0xc28] sm:$0xff]  ;;  %974 = vmatpush.msrb.mxu2 %v372_v42  ;;  %952 = vmatmul.f32.vlgmr.msrb.gmra.mxu1 %v4618_v28  ;;  %v61_v42 = vld [vmem:[%s8961_s1 + $0x50] sm:$0xff] }
  0xf5   :  { %v560_v52 = vld [vmem:[%s8961_s1 + $0xfe8] sm:$0xff]  ;;  %996 = vmatpush.msrb.mxu3 %v440_v43  ;;  %975 = vmatmul.f32.vlgmr.msrb.gmra.mxu2 %v4642_v34  ;;  %v161_v34 = vld [vmem:[%s8961_s1 + $0x370] sm:$0xff] }
  0xf6   :  { %v624_v44 = vld [vmem:[%s8961_s1 + $0x11e8] sm:$0xff]  ;;  %1005 = vmatpush.msra.mxu0 %v560_v52  ;;  %1051 = vmatpush.msra.mxu2 %v113_v45  ;;  %v129_v43 = vld [vmem:[%s8961_s1 + $0x270] sm:$0xff] }
  0xf7   :  { %v436_v46 = vld [vmem:[%s8961_s1 + $0xc08] sm:$0xff]  ;;  %1028 = vmatpush.msra.mxu1 %v624_v44  ;;  %v57_v44 = vld [vmem:[%s8961_s1 + $0x30] sm:$0xff] }
  0xf8   :  { %v556_v48 = vld [vmem:[%s8961_s1 + $0xfc8] sm:$0xff]  ;;  %997 = vmatpush.msrb.mxu3 %v436_v46  ;;  %1052 = vmatpush.msra.mxu2 %v109_v51  ;;  %v125_v45 = vld [vmem:[%s8961_s1 + $0x250] sm:$0xff] }
  0xf9   :  { %v620_v50 = vld [vmem:[%s8961_s1 + $0x11c8] sm:$0xff]  ;;  %1006 = vmatpush.msra.mxu0 %v556_v48  ;;  %998 = vmatmul.f32.vlgmr.msrb.gmra.mxu3 %v4601_v23  ;;  %v53_v48 = vld [vmem:[%s8961_s1 + $0x10] sm:$0xff] }
  0xfa   :  { %v552_v54 = vld [vmem:[%s8961_s1 + $0xfa8] sm:$0xff]  ;;  %1029 = vmatpush.msra.mxu1 %v620_v50  ;;  %1074 = vmatpush.msra.mxu3 %v177_v14  ;;  %v121_v50 = vld [vmem:[%s8961_s1 + $0x230] sm:$0xff] }
  0xfb   :  { %v616_v55 = vld [vmem:[%s8961_s1 + $0x11a8] sm:$0xff]  ;;  %1007 = vmatpush.msra.mxu0 %v552_v54  ;;  %1053 = vmatpush.msra.mxu2 %v105_v56  ;;  %v241_v51 = vld [vmem:[%s8961_s1 + $0x5f0] sm:$0xff] }
  0xfc   :  { %v548_v3 = vld [vmem:[%s8961_s1 + $0xf88] sm:$0xff]  ;;  %1030 = vmatpush.msra.mxu1 %v616_v55  ;;  %1075 = vmatpush.msra.mxu3 %v173_v57  ;;  %v305_v14 = vld [vmem:[%s8961_s1 + $0x7f0] sm:$0xff] }
  0xfd   :  { %v612_v59 = vld [vmem:[%s8961_s1 + $0x1188] sm:$0xff]  ;;  %1008 = vmatpush.msra.mxu0 %v548_v3  ;;  %1054 = vmatpush.msra.mxu2 %v101_v60  ;;  %v369_v54 = vld [vmem:[%s8961_s1 + $0x9f0] sm:$0xff] }
  0xfe   :  { %v544_v8 = vld [vmem:[%s8961_s1 + $0xf68] sm:$0xff]  ;;  %1031 = vmatpush.msra.mxu1 %v612_v59  ;;  %1076 = vmatpush.msra.mxu3 %v169_v61  ;;  %v117_v55 = vld [vmem:[%s8961_s1 + $0x210] sm:$0xff] }
  0xff   :  { %v608_v62 = vld [vmem:[%s8961_s1 + $0x1168] sm:$0xff]  ;;  %1009 = vmatpush.msra.mxu0 %v544_v8  ;;  %1055 = vmatpush.msra.mxu2 %v97_v0  ;;  %v237_v56 = vld [vmem:[%s8961_s1 + $0x5d0] sm:$0xff] }
 0x100   :  { %v540_v2 = vld [vmem:[%s8961_s1 + $0xf48] sm:$0xff]  ;;  %1032 = vmatpush.msra.mxu1 %v608_v62  ;;  %1077 = vmatpush.msra.mxu3 %v165_v1  ;;  %v301_v57 = vld [vmem:[%s8961_s1 + $0x7d0] sm:$0xff] }
 0x101   :  { %v604_v4 = vld [vmem:[%s8961_s1 + $0x1148] sm:$0xff]  ;;  %1010 = vmatpush.msra.mxu0 %v540_v2  ;;  %1056 = vmatpush.msra.mxu2 %v93_v5  ;;  %v365_v3 = vld [vmem:[%s8961_s1 + $0x9d0] sm:$0xff] }
 0x102   :  { %v536_v6 = vld [vmem:[%s8961_s1 + $0xf28] sm:$0xff]  ;;  %1033 = vmatpush.msra.mxu1 %v604_v4  ;;  %1078 = vmatpush.msra.mxu3 %v161_v34  ;;  %v297_v59 = vld [vmem:[%s8961_s1 + $0x7b0] sm:$0xff] }
 0x103   :  { %v600_v7 = vld [vmem:[%s8961_s1 + $0x1128] sm:$0xff]  ;;  %1011 = vmatpush.msra.mxu0 %v536_v6  ;;  %1057 = vmatpush.msra.mxu2 %v89_v53  ;;  %v361_v60 = vld [vmem:[%s8961_s1 + $0x9b0] sm:$0xff] }
 0x104   :  { %v532_v23 = vld [vmem:[%s8961_s1 + $0xf08] sm:$0xff]  ;;  %1034 = vmatpush.msra.mxu1 %v600_v7  ;;  %1079 = vmatpush.msra.mxu3 %v157_v10  ;;  %v293_v61 = vld [vmem:[%s8961_s1 + $0x790] sm:$0xff] }
 0x105   :  { %v596_v11 = vld [vmem:[%s8961_s1 + $0x1108] sm:$0xff]  ;;  %1012 = vmatpush.msra.mxu0 %v532_v23  ;;  %1058 = vmatpush.msra.mxu2 %v85_v12  ;;  %v357_v8 = vld [vmem:[%s8961_s1 + $0x990] sm:$0xff] }
 0x106   :  { %v528_v28 = vld [vmem:[%s8961_s1 + $0xee8] sm:$0xff]  ;;  %1035 = vmatpush.msra.mxu1 %v596_v11  ;;  %1080 = vmatpush.msra.mxu3 %v153_v13  ;;  %v425_v62 = vld [vmem:[%s8961_s1 + $0xbb0] sm:$0xff] }
 0x107   :  { %v592_v15 = vld [vmem:[%s8961_s1 + $0x10e8] sm:$0xff]  ;;  %1013 = vmatpush.msra.mxu0 %v528_v28  ;;  %1059 = vmatpush.msra.mxu2 %v81_v16  ;;  %v225_v0 = vld [vmem:[%s8961_s1 + $0x570] sm:$0xff] }
 0x108   :  { %v524_v18 = vld [vmem:[%s8961_s1 + $0xec8] sm:$0xff]  ;;  %1036 = vmatpush.msra.mxu1 %v592_v15  ;;  %1081 = vmatpush.msra.mxu3 %v149_v17  ;;  %v289_v1 = vld [vmem:[%s8961_s1 + $0x770] sm:$0xff] }
 0x109   :  { %v588_v19 = vld [vmem:[%s8961_s1 + $0x10c8] sm:$0xff]  ;;  %1014 = vmatpush.msra.mxu0 %v524_v18  ;;  %1060 = vmatpush.msra.mxu2 %v77_v22  ;;  %v353_v2 = vld [vmem:[%s8961_s1 + $0x970] sm:$0xff] }
 0x10a   :  { %v520_v25 = vld [vmem:[%s8961_s1 + $0xea8] sm:$0xff]  ;;  %1037 = vmatpush.msra.mxu1 %v588_v19  ;;  %1082 = vmatpush.msra.mxu3 %v145_v24  ;;  %v421_v4 = vld [vmem:[%s8961_s1 + $0xb90] sm:$0xff] }
 0x10b   :  { %v584_v26 = vld [vmem:[%s8961_s1 + $0x10a8] sm:$0xff]  ;;  %1015 = vmatpush.msra.mxu0 %v520_v25  ;;  %1061 = vmatpush.msra.mxu2 %v73_v27  ;;  %v285_v5 = vld [vmem:[%s8961_s1 + $0x750] sm:$0xff] }
 0x10c   :  { %v516_v32 = vld [vmem:[%s8961_s1 + $0xe88] sm:$0xff]  ;;  %1038 = vmatpush.msra.mxu1 %v584_v26  ;;  %1083 = vmatpush.msra.mxu3 %v141_v31  ;;  %v221_v34 = vld [vmem:[%s8961_s1 + $0x550] sm:$0xff] }
 0x10d   :  { %v580_v33 = vld [vmem:[%s8961_s1 + $0x1088] sm:$0xff]  ;;  %1016 = vmatpush.msra.mxu0 %v516_v32  ;;  %1062 = vmatpush.msra.mxu2 %v69_v36  ;;  %v349_v6 = vld [vmem:[%s8961_s1 + $0x950] sm:$0xff] }
 0x10e   :  { %v576_v58 = vld [vmem:[%s8961_s1 + $0x1068] sm:$0xff]  ;;  %1039 = vmatpush.msra.mxu1 %v580_v33  ;;  %1084 = vmatpush.msra.mxu3 %v137_v37  ;;  %v417_v7 = vld [vmem:[%s8961_s1 + $0xb70] sm:$0xff] }
 0x10f   :  { %v512_v38 = vld [vmem:[%s8961_s1 + $0xe68] sm:$0xff]  ;;  %932 = vmatmul.f32.gmra.mxu0 %v4552_v9  ;;  %1063 = vmatpush.msra.mxu2 %v65_v39  ;;  %v217_v53 = vld [vmem:[%s8961_s1 + $0x530] sm:$0xff] }
 0x110   :  { %1040 = vmatpush.msra.mxu1 %v576_v58  ;;  %v508_v41 = vld [vmem:[%s8961_s1 + $0xe48] sm:$0xff]  ;;  %1017 = vmatpush.msra.mxu0 %v512_v38  ;;  %v281_v10 = vld [vmem:[%s8961_s1 + $0x730] sm:$0xff] }
 0x111   :  { %v572_v47 = vld [vmem:[%s8961_s1 + $0x1048] sm:$0xff]  ;;  %1085 = vmatpush.msra.mxu3 %v133_v40  ;;  %955 = vmatmul.f32.gmra.mxu1 %v4721_v63  ;;  %v345_v23 = vld [vmem:[%s8961_s1 + $0x930] sm:$0xff] }
 0x112   :  { %v504_v9 = vld [vmem:[%s8961_s1 + $0xe28] sm:$0xff]  ;;  %1018 = vmatpush.msra.mxu0 %v508_v41  ;;  %1041 = vmatpush.msra.mxu1 %v572_v47  ;;  %v413_v11 = vld [vmem:[%s8961_s1 + $0xb50] sm:$0xff]  ;;  %v5366_v47 = vld [vmem:[%s8960_s0] sm:$0xff] }
 0x113   :  { %v568_v52 = vld [vmem:[%s8961_s1 + $0x1028] sm:$0xff]  ;;  %1064 = vmatpush.msra.mxu2 %v61_v42  ;;  %1086 = vmatpush.msra.mxu3 %v129_v43  ;;  %v277_v12 = vld [vmem:[%s8961_s1 + $0x710] sm:$0xff] }
 0x114   :  { %v500_v63 = vld [vmem:[%s8961_s1 + $0xe08] sm:$0xff]  ;;  %1019 = vmatpush.msra.mxu0 %v504_v9  ;;  %1042 = vmatpush.msra.mxu1 %v568_v52  ;;  %v341_v13 = vld [vmem:[%s8961_s1 + $0x910] sm:$0xff] }
 0x115   :  { %v564_v46 = vld [vmem:[%s8961_s1 + $0x1008] sm:$0xff]  ;;  %1065 = vmatpush.msra.mxu2 %v57_v44  ;;  %1087 = vmatpush.msra.mxu3 %v125_v45  ;;  %v409_v28 = vld [vmem:[%s8961_s1 + $0xb30] sm:$0xff] }
 0x116   :  { %1020 = vmatpush.msra.mxu0 %v500_v63  ;;  %1043 = vmatpush.msra.mxu1 %v564_v46  ;;  %v273_v15 = vld [vmem:[%s8961_s1 + $0x6f0] sm:$0xff]  ;;  %v5387_v45 = vld [vmem:[%s8960_s0 + $0x8] sm:$0xff] }
 0x117   :  { %1066 = vmatpush.msra.mxu2 %v53_v48  ;;  %1088 = vmatpush.msra.mxu3 %v121_v50  ;;  %v337_v16 = vld [vmem:[%s8961_s1 + $0x8f0] sm:$0xff] }
 0x118   :  { %978 = vmatmul.f32.gmra.mxu2 %v4816_v35  ;;  %1021 = vmatmul.f32.vlgmr.msra.gmra.mxu0 %v4624_v29  ;;  %v433_v29 = vld [vmem:[%s8961_s1 + $0xbf0] sm:$0xff] }
 0x119   :  { %1097 = vmatpush.msrb.mxu0 %v241_v51  ;;  %1120 = vmatpush.msrb.mxu1 %v305_v14  ;;  %v233_v35 = vld [vmem:[%s8961_s1 + $0x5b0] sm:$0xff] }
 0x11a   :  { %1143 = vmatpush.msrb.mxu2 %v369_v54  ;;  %1089 = vmatpush.msra.mxu3 %v117_v55  ;;  %v405_v17 = vld [vmem:[%s8961_s1 + $0xb10] sm:$0xff] }
 0x11b   :  { %1001 = vmatmul.f32.gmra.mxu3 %v4775_v20  ;;  %1044 = vmatmul.f32.vlgmr.msra.gmra.mxu1 %v4780_v21  ;;  %v429_v20 = vld [vmem:[%s8961_s1 + $0xbd0] sm:$0xff] }
 0x11c   :  { %1098 = vmatpush.msrb.mxu0 %v237_v56  ;;  %1121 = vmatpush.msrb.mxu1 %v301_v57  ;;  %v229_v21 = vld [vmem:[%s8961_s1 + $0x590] sm:$0xff] }
 0x11d   :  { %1144 = vmatpush.msrb.mxu2 %v365_v3  ;;  %1166 = vmatpush.msrb.mxu3 %v433_v29  ;;  %v205_v18 = vld [vmem:[%s8961_s1 + $0x4d0] sm:$0xff]  ;;  %v5426_v29 = vld [vmem:[%s8960_s0 + $0x48] sm:$0xff] }
 0x11e   :  { %1099 = vmatpush.msrb.mxu0 %v233_v35  ;;  %1122 = vmatpush.msrb.mxu1 %v297_v59  ;;  %v269_v19 = vld [vmem:[%s8961_s1 + $0x6d0] sm:$0xff] }
 0x11f   :  { %1145 = vmatpush.msrb.mxu2 %v361_v60  ;;  %1167 = vmatpush.msrb.mxu3 %v429_v20  ;;  %v333_v22 = vld [vmem:[%s8961_s1 + $0x8d0] sm:$0xff]  ;;  %v114_v60 = vld [vmem:[%s8961_s1 + $0x1f8] sm:$0xff] }
 0x120   :  { %1100 = vmatpush.msrb.mxu0 %v229_v21  ;;  %1123 = vmatpush.msrb.mxu1 %v293_v61  ;;  %v401_v24 = vld [vmem:[%s8961_s1 + $0xaf0] sm:$0xff] }
 0x121   :  { %1146 = vmatpush.msrb.mxu2 %v357_v8  ;;  %1168 = vmatpush.msrb.mxu3 %v425_v62  ;;  %v201_v25 = vld [vmem:[%s8961_s1 + $0x4b0] sm:$0xff]  ;;  %v110_v62 = vld [vmem:[%s8961_s1 + $0x1d8] sm:$0xff] }
 0x122   :  { %1101 = vmatpush.msrb.mxu0 %v225_v0  ;;  %1124 = vmatpush.msrb.mxu1 %v289_v1  ;;  %v265_v26 = vld [vmem:[%s8961_s1 + $0x6b0] sm:$0xff] }
 0x123   :  { %1147 = vmatpush.msrb.mxu2 %v353_v2  ;;  %1169 = vmatpush.msrb.mxu3 %v421_v4  ;;  %v329_v27 = vld [vmem:[%s8961_s1 + $0x8b0] sm:$0xff]  ;;  %v106_v4 = vld [vmem:[%s8961_s1 + $0x1b8] sm:$0xff] }
 0x124   :  { %1024 = vmatmul.f32.gmra.mxu0 %v4802_v30  ;;  %1125 = vmatpush.msrb.mxu1 %v285_v5  ;;  %v213_v30 = vld [vmem:[%s8961_s1 + $0x510] sm:$0xff] }
 0x125   :  { %1102 = vmatpush.msrb.mxu0 %v221_v34  ;;  %1148 = vmatpush.msrb.mxu2 %v349_v6  ;;  %v397_v31 = vld [vmem:[%s8961_s1 + $0xad0] sm:$0xff] }
 0x126   :  { %1170 = vmatpush.msrb.mxu3 %v417_v7  ;;  %1047 = vmatmul.f32.gmra.mxu1 %v4859_v49  ;;  %v209_v49 = vld [vmem:[%s8961_s1 + $0x4f0] sm:$0xff]  ;;  %v102_v7 = vld [vmem:[%s8961_s1 + $0x198] sm:$0xff] }
 0x127   :  { %1103 = vmatpush.msrb.mxu0 %v217_v53  ;;  %1126 = vmatpush.msrb.mxu1 %v281_v10  ;;  %v197_v32 = vld [vmem:[%s8961_s1 + $0x490] sm:$0xff]  ;;  %v5483_v53 = vld [vmem:[%s8960_s0 + $0x20] sm:$0xff] }
 0x128   :  { %1149 = vmatpush.msrb.mxu2 %v345_v23  ;;  %1171 = vmatpush.msrb.mxu3 %v413_v11  ;;  %v261_v33 = vld [vmem:[%s8961_s1 + $0x690] sm:$0xff] }
 0x129   :  { %1104 = vmatpush.msrb.mxu0 %v213_v30  ;;  %1127 = vmatpush.msrb.mxu1 %v277_v12  ;;  %v325_v36 = vld [vmem:[%s8961_s1 + $0x890] sm:$0xff]  ;;  %v98_v12 = vld [vmem:[%s8961_s1 + $0x178] sm:$0xff] }
 0x12a   :  { %1150 = vmatpush.msrb.mxu2 %v341_v13  ;;  %1172 = vmatpush.msrb.mxu3 %v409_v28  ;;  %v393_v37 = vld [vmem:[%s8961_s1 + $0xab0] sm:$0xff]  ;;  %v5507_v13 = vld [vmem:[%s8960_s0 + $0x28] sm:$0xff] }
 0x12b   :  { %1105 = vmatpush.msrb.mxu0 %v209_v49  ;;  %1128 = vmatpush.msrb.mxu1 %v273_v15  ;;  %v193_v58 = vld [vmem:[%s8961_s1 + $0x470] sm:$0xff] }
 0x12c   :  { %1151 = vmatpush.msrb.mxu2 %v337_v16  ;;  %1173 = vmatpush.msrb.mxu3 %v405_v17  ;;  %v257_v38 = vld [vmem:[%s8961_s1 + $0x670] sm:$0xff]  ;;  %v94_v16 = vld [vmem:[%s8961_s1 + $0x158] sm:$0xff] }
 0x12d   :  { %1106 = vmatpush.msrb.mxu0 %v205_v18  ;;  %1129 = vmatpush.msrb.mxu1 %v269_v19  ;;  %v321_v39 = vld [vmem:[%s8961_s1 + $0x870] sm:$0xff]  ;;  %v5525_v17 = vld [vmem:[%s8960_s0 + $0x18] sm:$0xff] }
 0x12e   :  { %1152 = vmatpush.msrb.mxu2 %v333_v22  ;;  %1174 = vmatpush.msrb.mxu3 %v401_v24  ;;  %v389_v40 = vld [vmem:[%s8961_s1 + $0xa90] sm:$0xff]  ;;  %v90_v24 = vld [vmem:[%s8961_s1 + $0x138] sm:$0xff] }
 0x12f   :  { %1107 = vmatpush.msrb.mxu0 %v201_v25  ;;  %1130 = vmatpush.msrb.mxu1 %v265_v26  ;;  %v189_v41 = vld [vmem:[%s8961_s1 + $0x450] sm:$0xff] }
 0x130   :  { %1153 = vmatpush.msrb.mxu2 %v329_v27  ;;  %1175 = vmatpush.msrb.mxu3 %v397_v31  ;;  %v253_v42 = vld [vmem:[%s8961_s1 + $0x650] sm:$0xff]  ;;  %v86_v31 = vld [vmem:[%s8961_s1 + $0x118] sm:$0xff] }
 0x131   :  { %1108 = vmatpush.msrb.mxu0 %v197_v32  ;;  %1131 = vmatpush.msrb.mxu1 %v261_v33  ;;  %v317_v43 = vld [vmem:[%s8961_s1 + $0x850] sm:$0xff] }
 0x132   :  { %1154 = vmatpush.msrb.mxu2 %v325_v36  ;;  %1176 = vmatpush.msrb.mxu3 %v393_v37  ;;  %v385_v9 = vld [vmem:[%s8961_s1 + $0xa70] sm:$0xff]  ;;  %v82_v37 = vld [vmem:[%s8961_s1 + $0xf8] sm:$0xff] }
 0x133   :  { %1067 = vmatmul.f32.vlgmr.msra.gmra.mxu2 %v5366_v47  ;;  %1109 = vmatpush.msrb.mxu0 %v193_v58  ;;  %v185_v52 = vld [vmem:[%s8961_s1 + $0x430] sm:$0xff] }
 0x134   :  { %1132 = vmatpush.msrb.mxu1 %v257_v38  ;;  %1155 = vmatpush.msrb.mxu2 %v321_v39  ;;  %v249_v44 = vld [vmem:[%s8961_s1 + $0x630] sm:$0xff] }
 0x135   :  { %1177 = vmatpush.msrb.mxu3 %v389_v40  ;;  %1110 = vmatpush.msrb.mxu0 %v189_v41  ;;  %v313_v63 = vld [vmem:[%s8961_s1 + $0x830] sm:$0xff]  ;;  %v78_v40 = vld [vmem:[%s8961_s1 + $0xd8] sm:$0xff] }
 0x136   :  { %1090 = vmatmul.f32.vlgmr.msra.gmra.mxu3 %v5387_v45  ;;  %1133 = vmatpush.msrb.mxu1 %v253_v42  ;;  %v381_v46 = vld [vmem:[%s8961_s1 + $0xa50] sm:$0xff] }
 0x137   :  { %1156 = vmatpush.msrb.mxu2 %v317_v43  ;;  %1178 = vmatpush.msrb.mxu3 %v385_v9  ;;  %v181_v48 = vld [vmem:[%s8961_s1 + $0x410] sm:$0xff]  ;;  %v74_v9 = vld [vmem:[%s8961_s1 + $0xb8] sm:$0xff] }
 0x138   :  { %v245_v50 = vld [vmem:[%s8961_s1 + $0x610] sm:$0xff]  ;;  %1111 = vmatpush.msrb.mxu0 %v185_v52  ;;  %1134 = vmatpush.msrb.mxu1 %v249_v44 }
 0x139   :  { %v309_v51 = vld [vmem:[%s8961_s1 + $0x810] sm:$0xff]  ;;  %1157 = vmatpush.msrb.mxu2 %v313_v63  ;;  %1179 = vmatpush.msrb.mxu3 %v381_v46  ;;  %v70_v46 = vld [vmem:[%s8961_s1 + $0x98] sm:$0xff] }
 0x13a   :  { %v377_v14 = vld [vmem:[%s8961_s1 + $0xa30] sm:$0xff]  ;;  %1112 = vmatpush.msrb.mxu0 %v181_v48  ;;  %1135 = vmatpush.msrb.mxu1 %v245_v50  ;;  %v5603_v48 = vld [vmem:[%s8960_s0 + $0x58] sm:$0xff]  ;;  %v5609_v50 = vld [vmem:[%s8960_s0 + $0x68] sm:$0xff] }
 0x13b   :  { %v497_v54 = vld [vmem:[%s8961_s1 + $0xdf0] sm:$0xff]  ;;  %1158 = vmatpush.msrb.mxu2 %v309_v51  ;;  %1180 = vmatpush.msrb.mxu3 %v377_v14 }
 0x13c   :  { %v561_v55 = vld [vmem:[%s8961_s1 + $0xff0] sm:$0xff]  ;;  %1070 = vmatmul.f32.gmra.mxu2 %v5426_v29  ;;  %1189 = vmatpush.msra.mxu0 %v497_v54 }
 0x13d   :  { %v625_v56 = vld [vmem:[%s8961_s1 + $0x11f0] sm:$0xff]  ;;  %1212 = vmatpush.msra.mxu1 %v561_v55  ;;  %v66_v55 = vld [vmem:[%s8961_s1 + $0x78] sm:$0xff] }
 0x13e   :  { %v373_v57 = vld [vmem:[%s8961_s1 + $0xa10] sm:$0xff]  ;;  %1235 = vmatpush.msra.mxu2 %v625_v56  ;;  %1136 = vmatmul.f32.vlgmr.msrb.gmra.mxu1 %v5525_v17 }
 0x13f   :  { %v493_v3 = vld [vmem:[%s8961_s1 + $0xdd0] sm:$0xff]  ;;  %1181 = vmatpush.msrb.mxu3 %v373_v57  ;;  %v5630_v57 = vld [vmem:[%s8960_s0 + $0x60] sm:$0xff] }
 0x140   :  { %v557_v35 = vld [vmem:[%s8961_s1 + $0xfd0] sm:$0xff]  ;;  %1190 = vmatpush.msra.mxu0 %v493_v3 }
 0x141   :  { %v621_v59 = vld [vmem:[%s8961_s1 + $0x11d0] sm:$0xff]  ;;  %1213 = vmatpush.msra.mxu1 %v557_v35  ;;  %1258 = vmatpush.msra.mxu3 %v114_v60 }
 0x142   :  { %v489_v20 = vld [vmem:[%s8961_s1 + $0xdb0] sm:$0xff]  ;;  %1236 = vmatpush.msra.mxu2 %v621_v59  ;;  %v62_v59 = vld [vmem:[%s8961_s1 + $0x58] sm:$0xff] }
 0x143   :  { %v553_v21 = vld [vmem:[%s8961_s1 + $0xfb0] sm:$0xff]  ;;  %1191 = vmatpush.msra.mxu0 %v489_v20  ;;  %1259 = vmatpush.msra.mxu3 %v110_v62  ;;  %v178_v62 = vld [vmem:[%s8961_s1 + $0x3f8] sm:$0xff] }
 0x144   :  { %v5447_v61 = vld [vmem:[%s8960_s0 + $0x50] sm:$0xff]  ;;  %1214 = vmatpush.msra.mxu1 %v553_v21  ;;  %1159 = vmatmul.f32.vlgmr.msrb.gmra.mxu2 %v5483_v53 }
 0x145   :  { %1093 = vmatmul.f32.gmra.mxu3 %v5447_v61  ;;  %v617_v8 = vld [vmem:[%s8961_s1 + $0x11b0] sm:$0xff] }
 0x146   :  { %v485_v0 = vld [vmem:[%s8961_s1 + $0xd90] sm:$0xff]  ;;  %1237 = vmatpush.msra.mxu2 %v617_v8  ;;  %1260 = vmatpush.msra.mxu3 %v106_v4  ;;  %v58_v8 = vld [vmem:[%s8961_s1 + $0x38] sm:$0xff] }
 0x147   :  { %v549_v1 = vld [vmem:[%s8961_s1 + $0xf90] sm:$0xff]  ;;  %1192 = vmatpush.msra.mxu0 %v485_v0  ;;  %1139 = vmatmul.f32.gmra.mxu1 %v5630_v57  ;;  %v242_v0 = vld [vmem:[%s8961_s1 + $0x5f8] sm:$0xff] }
 0x148   :  { %v613_v2 = vld [vmem:[%s8961_s1 + $0x1190] sm:$0xff]  ;;  %1215 = vmatpush.msra.mxu1 %v549_v1  ;;  %1261 = vmatpush.msra.mxu3 %v102_v7  ;;  %v306_v1 = vld [vmem:[%s8961_s1 + $0x7f8] sm:$0xff] }
 0x149   :  { %v481_v5 = vld [vmem:[%s8961_s1 + $0xd70] sm:$0xff]  ;;  %1238 = vmatpush.msra.mxu2 %v613_v2  ;;  %v54_v4 = vld [vmem:[%s8961_s1 + $0x18] sm:$0xff] }
 0x14a   :  { %v545_v34 = vld [vmem:[%s8961_s1 + $0xf70] sm:$0xff]  ;;  %1193 = vmatpush.msra.mxu0 %v481_v5  ;;  %1262 = vmatpush.msra.mxu3 %v98_v12  ;;  %v5675_v5 = vld [vmem:[%s8960_s0 + $0x40] sm:$0xff]  ;;  %v302_v7 = vld [vmem:[%s8961_s1 + $0x7d8] sm:$0xff] }
 0x14b   :  { %v609_v6 = vld [vmem:[%s8961_s1 + $0x1170] sm:$0xff]  ;;  %1216 = vmatpush.msra.mxu1 %v545_v34  ;;  %v174_v34 = vld [vmem:[%s8961_s1 + $0x3d8] sm:$0xff] }
 0x14c   :  { %v477_v10 = vld [vmem:[%s8961_s1 + $0xd50] sm:$0xff]  ;;  %1239 = vmatpush.msra.mxu2 %v609_v6  ;;  %1263 = vmatpush.msra.mxu3 %v94_v16  ;;  %v238_v6 = vld [vmem:[%s8961_s1 + $0x5d8] sm:$0xff] }
 0x14d   :  { %v541_v23 = vld [vmem:[%s8961_s1 + $0xf50] sm:$0xff]  ;;  %1182 = vmatmul.f32.vlgmr.msrb.gmra.mxu3 %v5507_v13  ;;  %1194 = vmatpush.msra.mxu0 %v477_v10  ;;  %v5690_v10 = vld [vmem:[%s8960_s0 + $0x38] sm:$0xff] }
 0x14e   :  { %v605_v11 = vld [vmem:[%s8961_s1 + $0x1150] sm:$0xff]  ;;  %1217 = vmatpush.msra.mxu1 %v541_v23  ;;  %1264 = vmatpush.msra.mxu3 %v90_v24  ;;  %v370_v23 = vld [vmem:[%s8961_s1 + $0x9f8] sm:$0xff] }
 0x14f   :  { %v5498_v30 = vld [vmem:[%s8960_s0 + $0x10] sm:$0xff]  ;;  %1240 = vmatpush.msra.mxu2 %v605_v11  ;;  %v170_v11 = vld [vmem:[%s8961_s1 + $0x3b8] sm:$0xff] }
 0x150   :  { %1113 = vmatmul.f32.vlgmr.msrb.gmra.mxu0 %v5498_v30  ;;  %v473_v28 = vld [vmem:[%s8961_s1 + $0xd30] sm:$0xff]  ;;  %1265 = vmatpush.msra.mxu3 %v86_v31  ;;  %v166_v16 = vld [vmem:[%s8961_s1 + $0x398] sm:$0xff]  ;;  %v5741_v31 = vld [vmem:[%s8960_s0 + $0x88] sm:$0xff] }
 0x151   :  { %v537_v49 = vld [vmem:[%s8961_s1 + $0xf30] sm:$0xff]  ;;  %1195 = vmatpush.msra.mxu0 %v473_v28  ;;  %1162 = vmatmul.f32.gmra.mxu2 %v5609_v50  ;;  %v234_v28 = vld [vmem:[%s8961_s1 + $0x5b8] sm:$0xff] }
 0x152   :  { %v601_v15 = vld [vmem:[%s8961_s1 + $0x1130] sm:$0xff]  ;;  %1218 = vmatpush.msra.mxu1 %v537_v49  ;;  %1266 = vmatpush.msra.mxu3 %v82_v37  ;;  %v298_v49 = vld [vmem:[%s8961_s1 + $0x7b8] sm:$0xff] }
 0x153   :  { %v469_v18 = vld [vmem:[%s8961_s1 + $0xd10] sm:$0xff]  ;;  %1241 = vmatpush.msra.mxu2 %v601_v15  ;;  %v366_v15 = vld [vmem:[%s8961_s1 + $0x9d8] sm:$0xff] }
 0x154   :  { %v533_v19 = vld [vmem:[%s8961_s1 + $0xf10] sm:$0xff]  ;;  %1196 = vmatpush.msra.mxu0 %v469_v18  ;;  %1267 = vmatpush.msra.mxu3 %v78_v40  ;;  %v230_v18 = vld [vmem:[%s8961_s1 + $0x598] sm:$0xff] }
 0x155   :  { %v597_v22 = vld [vmem:[%s8961_s1 + $0x1110] sm:$0xff]  ;;  %1219 = vmatpush.msra.mxu1 %v533_v19  ;;  %v294_v19 = vld [vmem:[%s8961_s1 + $0x798] sm:$0xff] }
 0x156   :  { %v465_v25 = vld [vmem:[%s8961_s1 + $0xcf0] sm:$0xff]  ;;  %1242 = vmatpush.msra.mxu2 %v597_v22  ;;  %1268 = vmatpush.msra.mxu3 %v74_v9  ;;  %v362_v22 = vld [vmem:[%s8961_s1 + $0x9b8] sm:$0xff] }
 0x157   :  { %v529_v26 = vld [vmem:[%s8961_s1 + $0xef0] sm:$0xff]  ;;  %1197 = vmatpush.msra.mxu0 %v465_v25  ;;  %v162_v24 = vld [vmem:[%s8961_s1 + $0x378] sm:$0xff] }
 0x158   :  { %v593_v27 = vld [vmem:[%s8961_s1 + $0x10f0] sm:$0xff]  ;;  %1220 = vmatpush.msra.mxu1 %v529_v26  ;;  %1116 = vmatmul.f32.gmra.mxu0 %v5603_v48  ;;  %v226_v25 = vld [vmem:[%s8961_s1 + $0x578] sm:$0xff] }
 0x159   :  { %v461_v32 = vld [vmem:[%s8961_s1 + $0xcd0] sm:$0xff]  ;;  %1243 = vmatpush.msra.mxu2 %v593_v27  ;;  %1269 = vmatpush.msra.mxu3 %v70_v46  ;;  %v290_v26 = vld [vmem:[%s8961_s1 + $0x778] sm:$0xff] }
 0x15a   :  { %v525_v33 = vld [vmem:[%s8961_s1 + $0xed0] sm:$0xff]  ;;  %1198 = vmatpush.msra.mxu0 %v461_v32  ;;  %v358_v27 = vld [vmem:[%s8961_s1 + $0x998] sm:$0xff] }
 0x15b   :  { %v589_v36 = vld [vmem:[%s8961_s1 + $0x10d0] sm:$0xff]  ;;  %1221 = vmatpush.msra.mxu1 %v525_v33  ;;  %1270 = vmatpush.msra.mxu3 %v66_v55  ;;  %v222_v32 = vld [vmem:[%s8961_s1 + $0x558] sm:$0xff] }
 0x15c   :  { %v457_v58 = vld [vmem:[%s8961_s1 + $0xcb0] sm:$0xff]  ;;  %1244 = vmatpush.msra.mxu2 %v589_v36  ;;  %v158_v33 = vld [vmem:[%s8961_s1 + $0x358] sm:$0xff] }
 0x15d   :  { %v521_v38 = vld [vmem:[%s8961_s1 + $0xeb0] sm:$0xff]  ;;  %1199 = vmatpush.msra.mxu0 %v457_v58  ;;  %1271 = vmatpush.msra.mxu3 %v62_v59  ;;  %v286_v36 = vld [vmem:[%s8961_s1 + $0x758] sm:$0xff]  ;;  %v5818_v59 = vpop.f32.mrf.mxu1 }
 0x15e   :  { %v585_v39 = vld [vmem:[%s8961_s1 + $0x10b0] sm:$0xff]  ;;  %1222 = vmatpush.msra.mxu1 %v521_v38  ;;  %v354_v37 = vld [vmem:[%s8961_s1 + $0x978] sm:$0xff] }
 0x15f   :  { %v453_v41 = vld [vmem:[%s8961_s1 + $0xc90] sm:$0xff]  ;;  %1245 = vmatpush.msra.mxu2 %v585_v39  ;;  %1272 = vmatpush.msra.mxu3 %v58_v8  ;;  %v5759_v58 = vld [vmem:[%s8960_s0 + $0x78] sm:$0xff] }
 0x160   :  { %v517_v42 = vld [vmem:[%s8961_s1 + $0xe90] sm:$0xff]  ;;  %1200 = vmatpush.msra.mxu0 %v453_v41  ;;  %v154_v38 = vld [vmem:[%s8961_s1 + $0x338] sm:$0xff] }
 0x161   :  { %v581_v43 = vld [vmem:[%s8961_s1 + $0x1090] sm:$0xff]  ;;  %1223 = vmatpush.msra.mxu1 %v517_v42  ;;  %1273 = vmatpush.msra.mxu3 %v54_v4  ;;  %v218_v39 = vld [vmem:[%s8961_s1 + $0x538] sm:$0xff]  ;;  %v5777_v42 = vld [vmem:[%s8960_s0 + $0x80] sm:$0xff] }
 0x162   :  { %v449_v52 = vld [vmem:[%s8961_s1 + $0xc70] sm:$0xff]  ;;  %1246 = vmatpush.msra.mxu2 %v581_v43  ;;  %v282_v40 = vld [vmem:[%s8961_s1 + $0x738] sm:$0xff] }
 0x163   :  { %v513_v44 = vld [vmem:[%s8961_s1 + $0xe70] sm:$0xff]  ;;  %1201 = vmatpush.msra.mxu0 %v449_v52  ;;  %1350 = vmatpush.msrb.mxu3 %v370_v23  ;;  %v350_v41 = vld [vmem:[%s8961_s1 + $0x958] sm:$0xff] }
 0x164   :  { %v577_v63 = vld [vmem:[%s8961_s1 + $0x1070] sm:$0xff]  ;;  %1224 = vmatpush.msra.mxu1 %v513_v44  ;;  %v150_v43 = vld [vmem:[%s8961_s1 + $0x318] sm:$0xff] }
 0x165   :  { %v445_v51 = vld [vmem:[%s8961_s1 + $0xc50] sm:$0xff]  ;;  %1247 = vmatpush.msra.mxu2 %v577_v63  ;;  %1351 = vmatpush.msrb.mxu3 %v366_v15  ;;  %v214_v9 = vld [vmem:[%s8961_s1 + $0x518] sm:$0xff] }
 0x166   :  { %v509_v14 = vld [vmem:[%s8961_s1 + $0xe50] sm:$0xff]  ;;  %1202 = vmatpush.msra.mxu0 %v445_v51  ;;  %v278_v52 = vld [vmem:[%s8961_s1 + $0x718] sm:$0xff] }
 0x167   :  { %v573_v54 = vld [vmem:[%s8961_s1 + $0x1050] sm:$0xff]  ;;  %1225 = vmatpush.msra.mxu1 %v509_v14  ;;  %1352 = vmatpush.msrb.mxu3 %v362_v22  ;;  %v346_v44 = vld [vmem:[%s8961_s1 + $0x938] sm:$0xff] }
 0x168   :  { %v441_v56 = vld [vmem:[%s8961_s1 + $0xc30] sm:$0xff]  ;;  %1248 = vmatpush.msra.mxu2 %v573_v54  ;;  %v146_v63 = vld [vmem:[%s8961_s1 + $0x2f8] sm:$0xff]  ;;  %v5804_v54 = vpop.f32.mrf.mxu0 }
 0x169   :  { %v505_v3 = vld [vmem:[%s8961_s1 + $0xe30] sm:$0xff]  ;;  %1203 = vmatpush.msra.mxu0 %v441_v56  ;;  %1353 = vmatpush.msrb.mxu3 %v358_v27  ;;  %v210_v46 = vld [vmem:[%s8961_s1 + $0x4f8] sm:$0xff] }
 0x16a   :  { %v569_v35 = vld [vmem:[%s8961_s1 + $0x1030] sm:$0xff]  ;;  %1226 = vmatpush.msra.mxu1 %v505_v3  ;;  %v274_v51 = vld [vmem:[%s8961_s1 + $0x6f8] sm:$0xff] }
 0x16b   :  { %v437_v60 = vld [vmem:[%s8961_s1 + $0xc10] sm:$0xff]  ;;  %1249 = vmatpush.msra.mxu2 %v569_v35  ;;  %1354 = vmatpush.msrb.mxu3 %v354_v37  ;;  %v342_v14 = vld [vmem:[%s8961_s1 + $0x918] sm:$0xff] }
 0x16c   :  { %v501_v20 = vld [vmem:[%s8961_s1 + $0xe10] sm:$0xff]  ;;  %1204 = vmatpush.msra.mxu0 %v437_v60  ;;  %v142_v55 = vld [vmem:[%s8961_s1 + $0x2d8] sm:$0xff] }
 0x16d   :  { %v565_v21 = vld [vmem:[%s8961_s1 + $0x1010] sm:$0xff]  ;;  %1227 = vmatpush.msra.mxu1 %v501_v20  ;;  %1355 = vmatpush.msrb.mxu3 %v350_v41  ;;  %v206_v56 = vld [vmem:[%s8961_s1 + $0x4d8] sm:$0xff] }
 0x16e   :  { %1250 = vmatpush.msra.mxu2 %v565_v21  ;;  %v5666_v2 = vld [vmem:[%s8960_s0 + $0x30] sm:$0xff]  ;;  %1281 = vmatpush.msrb.mxu0 %v178_v62  ;;  %v270_v3 = vld [vmem:[%s8961_s1 + $0x6d8] sm:$0xff]  ;;  %v5826_v21 = vpop.f32.mrf.mxu2 }
 0x16f   :  { %1205 = vmatmul.f32.vlgmr.msra.gmra.mxu0 %v5666_v2  ;;  %1251 = vmatmul.f32.vlgmr.msra.gmra.mxu2 %v5675_v5  ;;  %v5702_v12 = vld [vmem:[%s8960_s0 + $0x70] sm:$0xff]  ;;  %v338_v35 = vld [vmem:[%s8961_s1 + $0x8f8] sm:$0xff] }
 0x170   :  { %1304 = vmatpush.msrb.mxu1 %v242_v0  ;;  %1327 = vmatpush.msrb.mxu2 %v306_v1  ;;  %v138_v60 = vld [vmem:[%s8961_s1 + $0x2b8] sm:$0xff] }
 0x171   :  { %1228 = vmatmul.f32.vlgmr.msra.gmra.mxu1 %v5690_v10  ;;  %1185 = vmatmul.f32.gmra.mxu3 %v5702_v12  ;;  %v202_v20 = vld [vmem:[%s8961_s1 + $0x4b8] sm:$0xff] }
 0x172   :  { %1282 = vmatpush.msrb.mxu0 %v174_v34  ;;  %1305 = vmatpush.msrb.mxu1 %v238_v6  ;;  %v266_v8 = vld [vmem:[%s8961_s1 + $0x6b8] sm:$0xff] }
 0x173   :  { %1328 = vmatpush.msrb.mxu2 %v302_v7  ;;  %1356 = vmatpush.msrb.mxu3 %v346_v44  ;;  %v334_v62 = vld [vmem:[%s8961_s1 + $0x8d8] sm:$0xff] }
 0x174   :  { %1283 = vmatpush.msrb.mxu0 %v170_v11  ;;  %1306 = vmatpush.msrb.mxu1 %v234_v28  ;;  %v134_v0 = vld [vmem:[%s8961_s1 + $0x298] sm:$0xff] }
 0x175   :  { %1329 = vmatpush.msrb.mxu2 %v298_v49  ;;  %1357 = vmatpush.msrb.mxu3 %v342_v14  ;;  %v198_v1 = vld [vmem:[%s8961_s1 + $0x498] sm:$0xff] }
 0x176   :  { %1284 = vmatpush.msrb.mxu0 %v166_v16  ;;  %1307 = vmatpush.msrb.mxu1 %v230_v18  ;;  %v262_v4 = vld [vmem:[%s8961_s1 + $0x698] sm:$0xff]  ;;  %v5868_v16 = vpop.f32.mrf.mxu0 }
 0x177   :  { %1330 = vmatpush.msrb.mxu2 %v294_v19  ;;  %1208 = vmatmul.f32.gmra.mxu0 %v5759_v58  ;;  %v330_v34 = vld [vmem:[%s8961_s1 + $0x8b8] sm:$0xff]  ;;  %v5876_v19 = vpop.f32.mrf.mxu3 }
 0x178   :  { %1254 = vmatmul.f32.gmra.mxu2 %v5741_v31  ;;  %1285 = vmatpush.msrb.mxu0 %v162_v24  ;;  %v130_v6 = vld [vmem:[%s8961_s1 + $0x278] sm:$0xff] }
 0x179   :  { %1308 = vmatpush.msrb.mxu1 %v226_v25  ;;  %1331 = vmatpush.msrb.mxu2 %v290_v26  ;;  %v194_v7 = vld [vmem:[%s8961_s1 + $0x478] sm:$0xff]  ;;  %v5884_v25 = vpop.f32.mrf.mxu1 }
 0x17a   :  { %1286 = vmatpush.msrb.mxu0 %v158_v33  ;;  %1231 = vmatmul.f32.gmra.mxu1 %v5777_v42  ;;  %v258_v23 = vld [vmem:[%s8961_s1 + $0x678] sm:$0xff] }
 0x17b   :  { %1309 = vmatpush.msrb.mxu1 %v222_v32  ;;  %1332 = vmatpush.msrb.mxu2 %v286_v36  ;;  %v326_v11 = vld [vmem:[%s8961_s1 + $0x898] sm:$0xff]  ;;  %v5892_v32 = vpop.f32.mrf.mxu2 }
 0x17c   :  { %1287 = vmatpush.msrb.mxu0 %v154_v38  ;;  %1358 = vmatpush.msrb.mxu3 %v338_v35  ;;  %v126_v28 = vld [vmem:[%s8961_s1 + $0x258] sm:$0xff] }
 0x17d   :  { %1310 = vmatpush.msrb.mxu1 %v218_v39  ;;  %1333 = vmatpush.msrb.mxu2 %v282_v40  ;;  %v190_v49 = vld [vmem:[%s8961_s1 + $0x458] sm:$0xff] }
 0x17e   :  { %1288 = vmatpush.msrb.mxu0 %v150_v43  ;;  %1359 = vmatpush.msrb.mxu3 %v334_v62  ;;  %v254_v15 = vld [vmem:[%s8961_s1 + $0x658] sm:$0xff] }
 0x17f   :  { %1311 = vmatpush.msrb.mxu1 %v214_v9  ;;  %1334 = vmatpush.msrb.mxu2 %v278_v52  ;;  %v322_v18 = vld [vmem:[%s8961_s1 + $0x878] sm:$0xff] }
 0x180   :  { %1289 = vmatpush.msrb.mxu0 %v146_v63  ;;  %1360 = vmatpush.msrb.mxu3 %v330_v34  ;;  %v186_v22 = vld [vmem:[%s8961_s1 + $0x438] sm:$0xff] }
 0x181   :  { %1312 = vmatpush.msrb.mxu1 %v210_v46  ;;  %1335 = vmatpush.msrb.mxu2 %v274_v51  ;;  %v250_v24 = vld [vmem:[%s8961_s1 + $0x638] sm:$0xff]  ;;  %v5934_v51 = vpop.f32.mrf.mxu0  ;;  %v5950_v35 = vpop.f32.mrf.mxu1 }
 0x182   :  { %1290 = vmatpush.msrb.mxu0 %v142_v55  ;;  %1274 = vmatmul.f32.vlgmr.msra.gmra.mxu3 %v5366_v47  ;;  %v122_v47 = vld [vmem:[%s8961_s1 + $0x238] sm:$0xff]  ;;  %v5942_v55 = vpop.f32.mrf.mxu3 }
 0x183   :  { %1313 = vmatpush.msrb.mxu1 %v206_v56  ;;  %1336 = vmatpush.msrb.mxu2 %v270_v3  ;;  %v318_v26 = vld [vmem:[%s8961_s1 + $0x858] sm:$0xff] }
 0x184   :  { %1291 = vmatpush.msrb.mxu0 %v138_v60  ;;  %1361 = vmatpush.msrb.mxu3 %v326_v11  ;;  %v118_v27 = vld [vmem:[%s8961_s1 + $0x218] sm:$0xff] }
 0x185   :  { %1314 = vmatpush.msrb.mxu1 %v202_v20  ;;  %1337 = vmatpush.msrb.mxu2 %v266_v8  ;;  %v182_v33 = vld [vmem:[%s8961_s1 + $0x418] sm:$0xff]  ;;  %v5958_v8 = vpop.f32.mrf.mxu2 }
 0x186   :  { %1292 = vmatpush.msrb.mxu0 %v134_v0  ;;  %1362 = vmatpush.msrb.mxu3 %v322_v18  ;;  %v246_v36 = vld [vmem:[%s8961_s1 + $0x618] sm:$0xff] }
 0x187   :  { %1315 = vmatpush.msrb.mxu1 %v198_v1  ;;  %1338 = vmatpush.msrb.mxu2 %v262_v4  ;;  %v314_v37 = vld [vmem:[%s8961_s1 + $0x838] sm:$0xff] }
 0x188   :  { %1293 = vmatpush.msrb.mxu0 %v130_v6  ;;  %v434_v38 = vld [vmem:[%s8961_s1 + $0xbf8] sm:$0xff]  ;;  %1363 = vmatpush.msrb.mxu3 %v318_v26 }
 0x189   :  { %1316 = vmatpush.msrb.mxu1 %v194_v7  ;;  %1339 = vmatpush.msrb.mxu2 %v258_v23  ;;  %v498_v39 = vld [vmem:[%s8961_s1 + $0xdf8] sm:$0xff]  ;;  %v5982_v23 = vpop.f32.mrf.mxu0 }
 0x18a   :  { %1294 = vmatpush.msrb.mxu0 %v126_v28  ;;  %v562_v40 = vld [vmem:[%s8961_s1 + $0xff8] sm:$0xff]  ;;  %1364 = vmatpush.msrb.mxu3 %v314_v37 }
 0x18b   :  { %1317 = vmatpush.msrb.mxu1 %v190_v49  ;;  %1340 = vmatpush.msrb.mxu2 %v254_v15  ;;  %v430_v41 = vld [vmem:[%s8961_s1 + $0xbd8] sm:$0xff]  ;;  %v5995_v49 = vpop.f32.mrf.mxu1  ;;  %v6003_v15 = vpop.f32.mrf.mxu3 }
 0x18c   :  { %1295 = vmatpush.msrb.mxu0 %v122_v47  ;;  %v310_v43 = vld [vmem:[%s8961_s1 + $0x818] sm:$0xff]  ;;  %1277 = vmatmul.f32.gmra.mxu3 %v5426_v29 }
 0x18d   :  { %1318 = vmatpush.msrb.mxu1 %v186_v22  ;;  %1341 = vmatpush.msrb.mxu2 %v250_v24  ;;  %v494_v9 = vld [vmem:[%s8961_s1 + $0xdd8] sm:$0xff]  ;;  %v6005_v18 = vpop.f32.mrf.mxu2 }
 0x18e   :  { %1296 = vmatpush.msrb.mxu0 %v118_v27  ;;  %v558_v52 = vld [vmem:[%s8961_s1 + $0xfd8] sm:$0xff]  ;;  %1365 = vmatpush.msrb.mxu3 %v310_v43 }
 0x18f   :  { %1319 = vmatpush.msrb.mxu1 %v182_v33  ;;  %1342 = vmatpush.msrb.mxu2 %v246_v36  ;;  %v626_v44 = vld [vmem:[%s8961_s1 + $0x11f8] sm:$0xff] }
 0x190   :  { %1373 = vmatpush.msra.mxu0 %v434_v38  ;;  %v426_v63 = vld [vmem:[%s8961_s1 + $0xbb8] sm:$0xff]  ;;  %1442 = vmatpush.msra.mxu3 %v626_v44 }
 0x191   :  { %1396 = vmatpush.msra.mxu1 %v498_v39  ;;  %1419 = vmatpush.msra.mxu2 %v562_v40  ;;  %v490_v46 = vld [vmem:[%s8961_s1 + $0xdb8] sm:$0xff]  ;;  %v6042_v40 = vpop.f32.mrf.mxu0 }
 0x192   :  { %1374 = vmatpush.msra.mxu0 %v430_v41  ;;  %v554_v14 = vld [vmem:[%s8961_s1 + $0xfb8] sm:$0xff]  ;;  %1343 = vmatmul.f32.vlgmr.msrb.gmra.mxu2 %v5525_v17 }
 0x193   :  { %1397 = vmatpush.msra.mxu1 %v494_v9  ;;  %v622_v29 = vld [vmem:[%s8961_s1 + $0x11d8] sm:$0xff]  ;;  %1420 = vmatpush.msra.mxu2 %v558_v52  ;;  %v861_v41 = vpop.f32.mrf.mxu1  ;;  %v6048_v43 = vpop.f32.mrf.mxu3 }
 0x194   :  { %v422_v56 = vld [vmem:[%s8961_s1 + $0xb98] sm:$0xff]  ;;  %1375 = vmatpush.msra.mxu0 %v426_v63  ;;  %1443 = vmatpush.msra.mxu3 %v622_v29 }
 0x195   :  { %v486_v3 = vld [vmem:[%s8961_s1 + $0xd98] sm:$0xff]  ;;  %1398 = vmatpush.msra.mxu1 %v490_v46  ;;  %1421 = vmatpush.msra.mxu2 %v554_v14  ;;  %v6050_v9 = vpop.f32.mrf.mxu2 }
 0x196   :  { %v550_v60 = vld [vmem:[%s8961_s1 + $0xf98] sm:$0xff]  ;;  %1376 = vmatpush.msra.mxu0 %v422_v56  ;;  %1366 = vmatmul.f32.vlgmr.msrb.gmra.mxu3 %v5483_v53 }
 0x197   :  { %v618_v20 = vld [vmem:[%s8961_s1 + $0x11b8] sm:$0xff]  ;;  %1399 = vmatpush.msra.mxu1 %v486_v3  ;;  %1422 = vmatpush.msra.mxu2 %v550_v60  ;;  %v6087_v3 = vld [vmem:[%s8962_s2] sm:$0xf] }
 0x198   :  { %v418_v62 = vld [vmem:[%s8961_s1 + $0xb78] sm:$0xff]  ;;  %1444 = vmatpush.msra.mxu3 %v618_v20  ;;  %1297 = vmatmul.f32.vlgmr.msrb.gmra.mxu0 %v5387_v45 }
 0x199   :  { %v482_v0 = vld [vmem:[%s8961_s1 + $0xd78] sm:$0xff]  ;;  %1377 = vmatpush.msra.mxu0 %v418_v62  ;;  %1320 = vmatmul.f32.vlgmr.msrb.gmra.mxu1 %v5498_v30 }
 0x19a   :  { %v546_v1 = vld [vmem:[%s8961_s1 + $0xf78] sm:$0xff]  ;;  %1400 = vmatpush.msra.mxu1 %v482_v0  ;;  %1346 = vmatmul.f32.gmra.mxu2 %v5630_v57 }
 0x19b   :  { %v614_v4 = vld [vmem:[%s8961_s1 + $0x1198] sm:$0xff]  ;;  %1423 = vmatpush.msra.mxu2 %v546_v1 }
 0x19c   :  { %v414_v34 = vld [vmem:[%s8961_s1 + $0xb58] sm:$0xff]  ;;  %1445 = vmatpush.msra.mxu3 %v614_v4 }
 0x19d   :  { %v478_v6 = vld [vmem:[%s8961_s1 + $0xd58] sm:$0xff]  ;;  %1378 = vmatpush.msra.mxu0 %v414_v34  ;;  %v629_v34 = vperm.slane %v6087_v3, 0 }
 0x19e   :  { %v542_v7 = vld [vmem:[%s8961_s1 + $0xf58] sm:$0xff]  ;;  %1401 = vmatpush.msra.mxu1 %v478_v6  ;;  %1369 = vmatmul.f32.gmra.mxu3 %v5609_v50  ;;  %v6108_v6 = vpop.f32.mrf.mxu0 }
 0x19f   :  { %v610_v17 = vld [vmem:[%s8961_s1 + $0x1178] sm:$0xff]  ;;  %1424 = vmatpush.msra.mxu2 %v542_v7  ;;  %v630_v7 = vperm.slane %v6087_v3, 1 }
 0x1a0   :  { %v410_v11 = vld [vmem:[%s8961_s1 + $0xb38] sm:$0xff]  ;;  %1446 = vmatpush.msra.mxu3 %v610_v17  ;;  %1300 = vmatmul.f32.gmra.mxu0 %v5447_v61  ;;  %v907_v17 = vpop.f32.mrf.mxu3 }
 0x1a1   :  { %v474_v28 = vld [vmem:[%s8961_s1 + $0xd38] sm:$0xff]  ;;  %1379 = vmatpush.msra.mxu0 %v410_v11  ;;  %1323 = vmatmul.f32.gmra.mxu1 %v5603_v48 }
 0x1a2   :  { %v538_v45 = vld [vmem:[%s8961_s1 + $0xf38] sm:$0xff]  ;;  %1402 = vmatpush.msra.mxu1 %v474_v28 }
 0x1a3   :  { %v606_v53 = vld [vmem:[%s8961_s1 + $0x1158] sm:$0xff]  ;;  %1425 = vmatpush.msra.mxu2 %v538_v45  ;;  %v864_v45 = vpop.f32.mrf.mxu1 }
 0x1a4   :  { %v406_v47 = vld [vmem:[%s8961_s1 + $0xb18] sm:$0xff]  ;;  %1447 = vmatpush.msra.mxu3 %v606_v53 }
 0x1a5   :  { %v470_v22 = vld [vmem:[%s8961_s1 + $0xd18] sm:$0xff]  ;;  %1380 = vmatpush.msra.mxu0 %v406_v47 }
 0x1a6   :  { %v534_v24 = vld [vmem:[%s8961_s1 + $0xf18] sm:$0xff]  ;;  %1403 = vmatpush.msra.mxu1 %v470_v22  ;;  %v887_v22 = vpop.f32.mrf.mxu2 }
 0x1a7   :  { %v602_v26 = vld [vmem:[%s8961_s1 + $0x1138] sm:$0xff]  ;;  %1426 = vmatpush.msra.mxu2 %v534_v24 }
 0x1a8   :  { %v402_v30 = vld [vmem:[%s8961_s1 + $0xaf8] sm:$0xff]  ;;  %1448 = vmatpush.msra.mxu3 %v602_v26 }
 0x1a9   :  { %v466_v27 = vld [vmem:[%s8961_s1 + $0xcf8] sm:$0xff]  ;;  %1381 = vmatpush.msra.mxu0 %v402_v30 }
 0x1aa   :  { %v530_v33 = vld [vmem:[%s8961_s1 + $0xef8] sm:$0xff]  ;;  %1404 = vmatpush.msra.mxu1 %v466_v27 }
 0x1ab   :  { %v598_v36 = vld [vmem:[%s8961_s1 + $0x1118] sm:$0xff]  ;;  %1427 = vmatpush.msra.mxu2 %v530_v33  ;;  %v655_v33 = vadd.f32 %v5804_v54, %v629_v34  ;;  %v1501_v54 = vld [vmem:[%s8963_s3 + $0xe0] sm:$0xff] }
 0x1ac   :  { %v398_v37 = vld [vmem:[%s8961_s1 + $0xad8] sm:$0xff]  ;;  %1449 = vmatpush.msra.mxu3 %v598_v36  ;;  %v862_v36 = vadd.f32 %v861_v41, %v630_v7 }
 0x1ad   :  { %v462_v38 = vld [vmem:[%s8961_s1 + $0xcd8] sm:$0xff]  ;;  %1382 = vmatpush.msra.mxu0 %v398_v37  ;;  %v1503_v37 = vld [vmem:[%s8963_s3 + $0xf0] sm:$0xff]  ;;  %v678_v41 = vadd.f32 %v5818_v59, %v655_v33  ;;  %v658_v59 = vadd.f32 %v5868_v16, %v629_v34 }
 0x1ae   :  { %v526_v39 = vld [vmem:[%s8961_s1 + $0xed8] sm:$0xff]  ;;  %1405 = vmatpush.msra.mxu1 %v462_v38  ;;  %v1535_v38 = vld [vmem:[%s8963_s3 + $0x1f0] sm:$0xff] }
 0x1af   :  { %v594_v57 = vld [vmem:[%s8961_s1 + $0x10f8] sm:$0xff]  ;;  %1428 = vmatpush.msra.mxu2 %v526_v39  ;;  %v701_v16 = vadd.f32 %v5826_v21, %v678_v41  ;;  %v1527_v21 = vld [vmem:[%s8963_s3 + $0x1b0] sm:$0xff] }
 0x1b0   :  { %v394_v52 = vld [vmem:[%s8961_s1 + $0xab8] sm:$0xff]  ;;  %1450 = vmatpush.msra.mxu3 %v594_v57  ;;  %v885_v57 = vadd.f32 %v6050_v9, %v862_v36  ;;  %v865_v9 = vadd.f32 %v864_v45, %v630_v7  ;;  %v1523_v7 = vld [vmem:[%s8963_s3 + $0x190] sm:$0xff]  ;;  %v1489_v45 = vld [vmem:[%s8963_s3 + $0x80] sm:$0xff] }
 0x1b1   :  { %v458_v44 = vld [vmem:[%s8961_s1 + $0xcb8] sm:$0xff]  ;;  %1383 = vmatpush.msra.mxu0 %v394_v52  ;;  %v930_v52 = vpop.f32.mrf.mxu0  ;;  %v1517_v36 = vld [vmem:[%s8963_s3 + $0x160] sm:$0xff]  ;;  %v1515_v41 = vld [vmem:[%s8963_s3 + $0x150] sm:$0xff] }
 0x1b2   :  { %v522_v61 = vld [vmem:[%s8961_s1 + $0xeb8] sm:$0xff]  ;;  %1406 = vmatpush.msra.mxu1 %v458_v44  ;;  %v1533_v44 = vld [vmem:[%s8963_s3 + $0x1e0] sm:$0xff] }
 0x1b3   :  { %v590_v63 = vld [vmem:[%s8961_s1 + $0x10d8] sm:$0xff]  ;;  %1429 = vmatpush.msra.mxu2 %v522_v61  ;;  %v910_v61 = vpop.f32.mrf.mxu3 }
 0x1b4   :  { %v390_v50 = vld [vmem:[%s8961_s1 + $0xa98] sm:$0xff]  ;;  %1451 = vmatpush.msra.mxu3 %v590_v63  ;;  %v1531_v63 = vld [vmem:[%s8963_s3 + $0x1d0] sm:$0xff] }
 0x1b5   :  { %v454_v46 = vld [vmem:[%s8961_s1 + $0xc98] sm:$0xff]  ;;  %1384 = vmatpush.msra.mxu0 %v390_v50  ;;  %v1565_v50 = vld [vmem:[%s8963_s3 + $0x2e0] sm:$0xff] }
 0x1b6   :  { %v518_v14 = vld [vmem:[%s8961_s1 + $0xe98] sm:$0xff]  ;;  %1407 = vmatpush.msra.mxu1 %v454_v46  ;;  %v1497_v46 = vld [vmem:[%s8963_s3 + $0xc0] sm:$0xff] }
 0x1b7   :  { %v586_v29 = vld [vmem:[%s8961_s1 + $0x10b8] sm:$0xff]  ;;  %1430 = vmatpush.msra.mxu2 %v518_v14  ;;  %v908_v14 = vadd.f32 %v907_v17, %v885_v57  ;;  %v1551_v57 = vld [vmem:[%s8963_s3 + $0x270] sm:$0xff] }
 0x1b8   :  { %v386_v48 = vld [vmem:[%s8961_s1 + $0xa78] sm:$0xff]  ;;  %1452 = vmatpush.msra.mxu3 %v586_v29  ;;  %v1529_v29 = vld [vmem:[%s8963_s3 + $0x1c0] sm:$0xff] }
 0x1b9   :  { %v450_v56 = vld [vmem:[%s8961_s1 + $0xc78] sm:$0xff]  ;;  %1385 = vmatpush.msra.mxu0 %v386_v48  ;;  %v1495_v48 = vld [vmem:[%s8963_s3 + $0xb0] sm:$0xff] }
 0x1ba   :  { %v514_v60 = vld [vmem:[%s8961_s1 + $0xe78] sm:$0xff]  ;;  %1408 = vmatpush.msra.mxu1 %v450_v56  ;;  %v681_v56 = vadd.f32 %v5884_v25, %v658_v59  ;;  %v1493_v25 = vld [vmem:[%s8963_s3 + $0xa0] sm:$0xff] }
 0x1bb   :  { %v582_v20 = vld [vmem:[%s8961_s1 + $0x1098] sm:$0xff]  ;;  %1431 = vmatpush.msra.mxu2 %v514_v60  ;;  %v888_v60 = vadd.f32 %v887_v22, %v865_v9 }
 0x1bc   :  { %v382_v62 = vld [vmem:[%s8961_s1 + $0xa58] sm:$0xff]  ;;  %1453 = vmatpush.msra.mxu3 %v582_v20  ;;  %v1563_v20 = vld [vmem:[%s8963_s3 + $0x2d0] sm:$0xff] }
 0x1bd   :  { %v446_v0 = vld [vmem:[%s8961_s1 + $0xc58] sm:$0xff]  ;;  %1386 = vmatpush.msra.mxu0 %v382_v62  ;;  %v724_v62 = vadd.f32 %v5876_v19, %v701_v16  ;;  %v704_v19 = vadd.f32 %v5892_v32, %v681_v56  ;;  %v911_v34 = vadd.f32 %v910_v61, %v888_v60  ;;  %v1559_v32 = vld [vmem:[%s8963_s3 + $0x2b0] sm:$0xff]  ;;  %v1549_v61 = vld [vmem:[%s8963_s3 + $0x260] sm:$0xff] }
 0x1be   :  { %v510_v1 = vld [vmem:[%s8961_s1 + $0xe58] sm:$0xff]  ;;  %1409 = vmatpush.msra.mxu1 %v446_v0  ;;  %v931_v0 = vadd.f32 %v930_v52, %v908_v14  ;;  %v1547_v16 = vld [vmem:[%s8963_s3 + $0x250] sm:$0xff] }
 0x1bf   :  { %v578_v4 = vld [vmem:[%s8961_s1 + $0x1078] sm:$0xff]  ;;  %1432 = vmatpush.msra.mxu2 %v510_v1  ;;  %v933_v1 = vpop.f32.mrf.mxu0 }
 0x1c0   :  { %v378_v11 = vld [vmem:[%s8961_s1 + $0xa38] sm:$0xff]  ;;  %1454 = vmatpush.msra.mxu3 %v578_v4  ;;  %v1525_v4 = vld [vmem:[%s8963_s3 + $0x1a0] sm:$0xff]  ;;  %v934_v22 = vadd.f32 %v933_v1, %v911_v34 }
 0x1c1   :  { %v442_v28 = vld [vmem:[%s8961_s1 + $0xc38] sm:$0xff]  ;;  %1387 = vmatpush.msra.mxu0 %v378_v11  ;;  %v747_v11 = vadd.f32 %v5934_v51, %v724_v62  ;;  %v727_v51 = vadd.f32 %v5942_v55, %v704_v19  ;;  %v1485_v55 = vld [vmem:[%s8963_s3 + $0x60] sm:$0xff]  ;;  %v1507_v62 = vld [vmem:[%s8963_s3 + $0x110] sm:$0xff] }
 0x1c2   :  { %v506_v53 = vld [vmem:[%s8961_s1 + $0xe38] sm:$0xff]  ;;  %1410 = vmatpush.msra.mxu1 %v442_v28  ;;  %v999_v28 = vpop.f32.mrf.mxu3  ;;  %v1505_v1 = vld [vmem:[%s8963_s3 + $0x100] sm:$0xff] }
 0x1c3   :  { %v574_v47 = vld [vmem:[%s8961_s1 + $0x1058] sm:$0xff]  ;;  %1433 = vmatpush.msra.mxu2 %v506_v53  ;;  %v1521_v53 = vld [vmem:[%s8963_s3 + $0x180] sm:$0xff] }
 0x1c4   :  { %v374_v24 = vld [vmem:[%s8961_s1 + $0xa18] sm:$0xff]  ;;  %1455 = vmatpush.msra.mxu3 %v574_v47  ;;  %v1557_v47 = vld [vmem:[%s8963_s3 + $0x2a0] sm:$0xff] }
 0x1c5   :  { %v438_v26 = vld [vmem:[%s8961_s1 + $0xc18] sm:$0xff]  ;;  %1388 = vmatpush.msra.mxu0 %v374_v24  ;;  %v1487_v24 = vld [vmem:[%s8963_s3 + $0x70] sm:$0xff] }
 0x1c6   :  { %v502_v30 = vld [vmem:[%s8961_s1 + $0xe18] sm:$0xff]  ;;  %1411 = vmatpush.msra.mxu1 %v438_v26  ;;  %1389 = vmatmul.f32.vlgmr.msra.gmra.mxu0 %v5507_v13  ;;  %v1567_v13 = vld [vmem:[%s8963_s3 + $0x2f0] sm:$0xff] }
 0x1c7   :  { %v570_v27 = vld [vmem:[%s8961_s1 + $0x1038] sm:$0xff]  ;;  %1434 = vmatpush.msra.mxu2 %v502_v30  ;;  %1607 = vmatpush.msrb.mxu0 %v1503_v37  ;;  %v1519_v26 = vld [vmem:[%s8963_s3 + $0x170] sm:$0xff]  ;;  %v1553_v37 = vld [vmem:[%s8963_s3 + $0x280] sm:$0xff] }
 0x1c8   :  { %1456 = vmatpush.msra.mxu3 %v570_v27  ;;  %v566_v39 = vld [vmem:[%s8961_s1 + $0x1018] sm:$0xff]  ;;  %1435 = vmatmul.f32.vlgmr.msra.gmra.mxu2 %v5690_v10  ;;  %v1499_v10 = vld [vmem:[%s8963_s3 + $0xd0] sm:$0xff]  ;;  %v770_v27 = vadd.f32 %v5950_v35, %v747_v11  ;;  %v1022_v35 = vpop.f32.mrf.mxu0 }
 0x1c9   :  { %1630 = vmatpush.msrb.mxu1 %v1535_v38  ;;  %1608 = vmatpush.msrb.mxu0 %v1501_v54  ;;  %v1555_v30 = vld [vmem:[%s8963_s3 + $0x290] sm:$0xff]  ;;  %v750_v38 = vadd.f32 %v5982_v23, %v727_v51  ;;  %v1532_v51 = vld [vmem:[%s8963_s3 + $0x1d8] sm:$0xff] }
 0x1ca   :  { %1457 = vmatpush.msra.mxu3 %v566_v39  ;;  %1412 = vmatmul.f32.vlgmr.msra.gmra.mxu1 %v5666_v2  ;;  %v953_v2 = vpop.f32.mrf.mxu1  ;;  %v1483_v54 = vld [vmem:[%s8963_s3 + $0x50] sm:$0xff]  ;;  %v793_v52 = vadd.f32 %v5958_v8, %v770_v27 }
 0x1cb   :  { %1458 = vmatmul.f32.vlgmr.msra.gmra.mxu3 %v5675_v5  ;;  %1631 = vmatpush.msrb.mxu1 %v1533_v44  ;;  %v976_v5 = vpop.f32.mrf.mxu2  ;;  %v1002_v44 = vpop.f32.mrf.mxu3  ;;  %v773_v8 = vadd.f32 %v5995_v49, %v750_v38  ;;  %v1477_v49 = vld [vmem:[%s8963_s3 + $0x20] sm:$0xff] }
 0x1cc   :  { %1653 = vmatpush.msrb.mxu2 %v1567_v13  ;;  %1609 = vmatpush.msrb.mxu0 %v1499_v10  ;;  %v1481_v13 = vld [vmem:[%s8963_s3 + $0x40] sm:$0xff]  ;;  %v816_v14 = vadd.f32 %v6003_v15, %v793_v52  ;;  %v1566_v52 = vld [vmem:[%s8963_s3 + $0x2e8] sm:$0xff] }
 0x1cd   :  { %1632 = vmatpush.msrb.mxu1 %v1531_v63  ;;  %v1513_v10 = vld [vmem:[%s8963_s3 + $0x140] sm:$0xff]  ;;  %v796_v15 = vadd.f32 %v6005_v18, %v773_v8  ;;  %v1543_v18 = vld [vmem:[%s8963_s3 + $0x230] sm:$0xff]  ;;  %v1522_v8 = vld [vmem:[%s8963_s3 + $0x188] sm:$0xff] }
 0x1ce   :  { %1654 = vmatpush.msrb.mxu2 %v1565_v50  ;;  %1610 = vmatpush.msrb.mxu0 %v1497_v46  ;;  %v1511_v46 = vld [vmem:[%s8963_s3 + $0x130] sm:$0xff] }
 0x1cf   :  { %1633 = vmatpush.msrb.mxu1 %v1529_v29  ;;  %1392 = vmatmul.f32.gmra.mxu0 %v5702_v12  ;;  %v1561_v12 = vld [vmem:[%s8963_s3 + $0x2c0] sm:$0xff]  ;;  %v819_v19 = vadd.f32 %v6048_v43, %v796_v15  ;;  %v1518_v15 = vld [vmem:[%s8963_s3 + $0x168] sm:$0xff] }
 0x1d0   :  { %1438 = vmatmul.f32.gmra.mxu2 %v5777_v42  ;;  %1611 = vmatpush.msrb.mxu0 %v1495_v48  ;;  %v1491_v42 = vld [vmem:[%s8963_s3 + $0x90] sm:$0xff]  ;;  %v1545_v29 = vld [vmem:[%s8963_s3 + $0x240] sm:$0xff]  ;;  %v6282_v48 = vadd.f32 %v6042_v40, %v816_v14  ;;  %v631_v40 = vperm.slane %v6087_v3, 2 }
 0x1d1   :  { %1634 = vmatpush.msrb.mxu1 %v1527_v21  ;;  %1655 = vmatpush.msrb.mxu2 %v1563_v20  ;;  %v1025_v21 = vpop.f32.mrf.mxu0  ;;  %v1475_v20 = vld [vmem:[%s8963_s3 + $0x10] sm:$0xff]  ;;  %v1541_v43 = vld [vmem:[%s8963_s3 + $0x220] sm:$0xff] }
 0x1d2   :  { %1415 = vmatmul.f32.gmra.mxu1 %v5759_v58  ;;  %v956_v17 = vpop.f32.mrf.mxu1  ;;  %1612 = vmatpush.msrb.mxu0 %v1493_v25  ;;  %v954_v58 = vadd.f32 %v953_v2, %v931_v0  ;;  %v1479_v2 = vld [vmem:[%s8963_s3 + $0x30] sm:$0xff]  ;;  %v1473_v0 = vld [vmem:[%s8963_s3] sm:$0xff] }
 0x1d3   :  { %1461 = vmatmul.f32.gmra.mxu3 %v5741_v31  ;;  %1635 = vmatpush.msrb.mxu1 %v1525_v4  ;;  %v979_v31 = vpop.f32.mrf.mxu2  ;;  %v957_v39 = vadd.f32 %v956_v17, %v934_v22  ;;  %v1091_v25 = vpop.f32.mrf.mxu3  ;;  %v1536_v17 = vld [vmem:[%s8963_s3 + $0x1f8] sm:$0xff] }
 0x1d4   :  { %1656 = vmatpush.msrb.mxu2 %v1561_v12  ;;  %1613 = vmatpush.msrb.mxu0 %v1491_v42  ;;  %v977_v33 = vadd.f32 %v976_v5, %v954_v58  ;;  %v1509_v5 = vld [vmem:[%s8963_s3 + $0x120] sm:$0xff]  ;;  %v1465_v12 = vmax.f32 %v6282_v48, 0.0  ;;  %v1502_v58 = vld [vmem:[%s8963_s3 + $0xe8] sm:$0xff] }
 0x1d5   :  { %1636 = vmatpush.msrb.mxu1 %v1523_v7  ;;  %v980_v50 = vadd.f32 %v979_v31, %v957_v39  ;;  %v1504_v7 = vld [vmem:[%s8963_s3 + $0xf8] sm:$0xff]  ;;  %v1539_v31 = vld [vmem:[%s8963_s3 + $0x210] sm:$0xff] }
 0x1d6   :  { %1657 = vmatpush.msrb.mxu2 %v1559_v32  ;;  %1614 = vmatpush.msrb.mxu0 %v1489_v45  ;;  %v1000_v23 = vadd.f32 %v999_v28, %v977_v33  ;;  %v1534_v28 = vld [vmem:[%s8963_s3 + $0x1e8] sm:$0xff]  ;;  %v6329_v45 = vadd.f32 %v6108_v6, %v819_v19  ;;  %v1537_v6 = vld [vmem:[%s8963_s3 + $0x200] sm:$0xff] }
 0x1d7   :  { %1637 = vmatpush.msrb.mxu1 %v1521_v53  ;;  %v1003_v60 = vadd.f32 %v1002_v44, %v980_v50  ;;  %v1492_v44 = vld [vmem:[%s8963_s3 + $0x98] sm:$0xff]  ;;  %v1562_v50 = vld [vmem:[%s8963_s3 + $0x2c8] sm:$0xff] }
 0x1d8   :  { %1658 = vmatpush.msrb.mxu2 %v1557_v47  ;;  %1615 = vmatpush.msrb.mxu0 %v1487_v24  ;;  %v1023_v63 = vadd.f32 %v1022_v35, %v1000_v23  ;;  %v1500_v47 = vld [vmem:[%s8963_s3 + $0xd8] sm:$0xff]  ;;  %v1469_v33 = vmax.f32 %v6329_v45, 0.0  ;;  %v1514_v19 = vld [vmem:[%s8963_s3 + $0x148] sm:$0xff]  ;;  %v1579_v45 = vld [vmem:[%s8963_s3 + $0x350] sm:$0xff] }
 0x1d9   :  { %1638 = vmatpush.msrb.mxu1 %v1519_v26  ;;  %v1026_v42 = vadd.f32 %v1025_v21, %v1003_v60  ;;  %v1114_v22 = vpop.f32.mrf.mxu0  ;;  %v1498_v26 = vld [vmem:[%s8963_s3 + $0xc8] sm:$0xff]  ;;  %v1568_v35 = vld [vmem:[%s8963_s3 + $0x2f8] sm:$0xff] }
 0x1da   :  { %1659 = vmatpush.msrb.mxu2 %v1555_v30  ;;  %1616 = vmatpush.msrb.mxu0 %v1485_v55  ;;  %v1045_v9 = vpop.f32.mrf.mxu1  ;;  %v1530_v30 = vld [vmem:[%s8963_s3 + $0x1c8] sm:$0xff] }
 0x1db   :  { %1639 = vmatpush.msrb.mxu1 %v1517_v36  ;;  %v1068_v59 = vpop.f32.mrf.mxu2  ;;  %v6285_v56 = vadd.f32 %v1045_v9, %v1023_v63  ;;  %v1496_v36 = vld [vmem:[%s8963_s3 + $0xb8] sm:$0xff]  ;;  %v1094_v38 = vpop.f32.mrf.mxu3  ;;  %v1558_v21 = vld [vmem:[%s8963_s3 + $0x2a8] sm:$0xff] }
 0x1dc   :  { %1660 = vmatpush.msrb.mxu2 %v1553_v37  ;;  %1617 = vmatpush.msrb.mxu0 %v1483_v54  ;;  %v1069_v11 = vadd.f32 %v1068_v59, %v631_v40  ;;  %v1528_v37 = vld [vmem:[%s8963_s3 + $0x1b8] sm:$0xff]  ;;  %v1494_v54 = vld [vmem:[%s8963_s3 + $0xa8] sm:$0xff] }
 0x1dd   :  { %1640 = vmatpush.msrb.mxu1 %v1515_v41  ;;  %v1466_v34 = vmax.f32 %v6285_v56, 0.0  ;;  %v1526_v41 = vld [vmem:[%s8963_s3 + $0x1a8] sm:$0xff]  ;;  %v1564_v9 = vld [vmem:[%s8963_s3 + $0x2d8] sm:$0xff] }
 0x1de   :  { %1661 = vmatpush.msrb.mxu2 %v1551_v57  ;;  %1618 = vmatpush.msrb.mxu0 %v1481_v13  ;;  %v1092_v24 = vadd.f32 %v1091_v25, %v1069_v11  ;;  %v1524_v13 = vld [vmem:[%s8963_s3 + $0x198] sm:$0xff]  ;;  %v1542_v56 = vld [vmem:[%s8963_s3 + $0x228] sm:$0xff] }
 0x1df   :  { %1641 = vmatpush.msrb.mxu1 %v1513_v10  ;;  %v1556_v25 = vld [vmem:[%s8963_s3 + $0x298] sm:$0xff] }
 0x1e0   :  { %1662 = vmatpush.msrb.mxu2 %v1549_v61  ;;  %1619 = vmatpush.msrb.mxu0 %v1479_v2  ;;  %v1115_v39 = vadd.f32 %v1114_v22, %v1092_v24  ;;  %v1490_v61 = vld [vmem:[%s8963_s3 + $0x88] sm:$0xff] }
 0x1e1   :  { %1642 = vmatpush.msrb.mxu1 %v1511_v46  ;;  %v1117_v10 = vpop.f32.mrf.mxu0  ;;  %v1488_v46 = vld [vmem:[%s8963_s3 + $0x78] sm:$0xff]  ;;  %v1550_v24 = vld [vmem:[%s8963_s3 + $0x268] sm:$0xff] }
 0x1e2   :  { %1663 = vmatpush.msrb.mxu2 %v1547_v16  ;;  %1620 = vmatpush.msrb.mxu0 %v1477_v49  ;;  %v1048_v4 = vpop.f32.mrf.mxu1  ;;  %v1520_v16 = vld [vmem:[%s8963_s3 + $0x178] sm:$0xff] }
 0x1e3   :  { %1643 = vmatpush.msrb.mxu1 %v1509_v5  ;;  %v1071_v32 = vpop.f32.mrf.mxu2  ;;  %v6331_v53 = vadd.f32 %v1048_v4, %v1026_v42  ;;  %v1560_v49 = vld [vmem:[%s8963_s3 + $0x2b8] sm:$0xff]  ;;  %v1183_v5 = vpop.f32.mrf.mxu3  ;;  %v1482_v4 = vld [vmem:[%s8963_s3 + $0x48] sm:$0xff] }
 0x1e4   :  { %1664 = vmatpush.msrb.mxu2 %v1545_v29  ;;  %1621 = vmatpush.msrb.mxu0 %v1475_v20  ;;  %v1072_v23 = vadd.f32 %v1071_v32, %v631_v40  ;;  %v1486_v29 = vld [vmem:[%s8963_s3 + $0x68] sm:$0xff]  ;;  %v1599_v20 = vld [vmem:[%s8963_s3 + $0x3f0] sm:$0xff]  ;;  %v1516_v40 = vld [vmem:[%s8963_s3 + $0x158] sm:$0xff] }
 0x1e5   :  { %1644 = vmatpush.msrb.mxu1 %v1507_v62  ;;  %v1470_v55 = vmax.f32 %v6331_v53, 0.0  ;;  %v1484_v62 = vld [vmem:[%s8963_s3 + $0x58] sm:$0xff]  ;;  %1676 = vmatpush.msrb.mxu3 %v1599_v20  ;;  %v1577_v53 = vld [vmem:[%s8963_s3 + $0x340] sm:$0xff] }
 0x1e6   :  { %1665 = vmatpush.msrb.mxu2 %v1543_v18  ;;  %1622 = vmatpush.msrb.mxu0 %v1473_v0  ;;  %v1095_v2 = vadd.f32 %v1094_v38, %v1072_v23  ;;  %v1512_v32 = vld [vmem:[%s8963_s3 + $0x138] sm:$0xff]  ;;  %v1546_v23 = vld [vmem:[%s8963_s3 + $0x248] sm:$0xff] }
 0x1e7   :  { %1645 = vmatpush.msrb.mxu1 %v1505_v1  ;;  %1623 = vmatmul.f32.vlgmr.msrb.gmra.mxu0 %v1465_v12  ;;  %v1548_v38 = vld [vmem:[%s8963_s3 + $0x258] sm:$0xff] }
 0x1e8   :  { %1646 = vmatmul.f32.vlgmr.msrb.gmra.mxu1 %v1466_v34  ;;  %1699 = vmatpush.msra.mxu0 %v1504_v7  ;;  %v1118_v18 = vadd.f32 %v1117_v10, %v1095_v2  ;;  %v1554_v7 = vld [vmem:[%s8963_s3 + $0x288] sm:$0xff]  ;;  %v1583_v2 = vld [vmem:[%s8963_s3 + $0x370] sm:$0xff]  ;;  %v1592_v20 = vld [vmem:[%s8963_s3 + $0x3b8] sm:$0xff] }
 0x1e9   :  { %1722 = vmatpush.msra.mxu1 %v1536_v17  ;;  %1666 = vmatpush.msrb.mxu2 %v1541_v43  ;;  %v1480_v17 = vld [vmem:[%s8963_s3 + $0x38] sm:$0xff] }
 0x1ea   :  { %1700 = vmatpush.msra.mxu0 %v1502_v58  ;;  %v1137_v27 = vpop.f32.mrf.mxu1  ;;  %v1597_v58 = vld [vmem:[%s8963_s3 + $0x3e0] sm:$0xff] }
 0x1eb   :  { %1723 = vmatpush.msra.mxu1 %v1534_v28  ;;  %1667 = vmatpush.msrb.mxu2 %v1539_v31  ;;  %v1160_v57 = vpop.f32.mrf.mxu2  ;;  %v1138_v59 = vadd.f32 %v1137_v27, %v1115_v39  ;;  %v1552_v28 = vld [vmem:[%s8963_s3 + $0x278] sm:$0xff]  ;;  %v1595_v31 = vld [vmem:[%s8963_s3 + $0x3d0] sm:$0xff] }
 0x1ec   :  { %1701 = vmatpush.msra.mxu0 %v1500_v47  ;;  %v1206_v1 = vpop.f32.mrf.mxu0  ;;  %v1478_v47 = vld [vmem:[%s8963_s3 + $0x28] sm:$0xff]  ;;  %1677 = vmatpush.msrb.mxu3 %v1597_v58  ;;  %v1591_v39 = vld [vmem:[%s8963_s3 + $0x3b0] sm:$0xff] }
 0x1ed   :  { %1724 = vmatpush.msra.mxu1 %v1532_v51  ;;  %1668 = vmatpush.msrb.mxu2 %v1537_v6  ;;  %v1161_v14 = vadd.f32 %v1160_v57, %v1138_v59  ;;  %v1510_v51 = vld [vmem:[%s8963_s3 + $0x128] sm:$0xff]  ;;  %v1593_v6 = vld [vmem:[%s8963_s3 + $0x3c0] sm:$0xff]  ;;  %v1544_v59 = vld [vmem:[%s8963_s3 + $0x238] sm:$0xff] }
 0x1ee   :  { %1702 = vmatpush.msra.mxu0 %v1498_v26  ;;  %v1476_v26 = vld [vmem:[%s8963_s3 + $0x18] sm:$0xff]  ;;  %1678 = vmatpush.msrb.mxu3 %v1595_v31 }
 0x1ef   :  { %1725 = vmatpush.msra.mxu1 %v1530_v30  ;;  %1626 = vmatmul.f32.gmra.mxu0 %v1469_v33  ;;  %v1184_v0 = vadd.f32 %v1183_v5, %v1161_v14  ;;  %v1508_v30 = vld [vmem:[%s8963_s3 + $0x118] sm:$0xff]  ;;  %v1571_v14 = vld [vmem:[%s8963_s3 + $0x310] sm:$0xff] }
 0x1f0   :  { %1649 = vmatmul.f32.gmra.mxu1 %v1470_v55  ;;  %1703 = vmatpush.msra.mxu0 %v1496_v36  ;;  %v1600_v5 = vld [vmem:[%s8963_s3 + $0x3f8] sm:$0xff] }
 0x1f1   :  { %1726 = vmatpush.msra.mxu1 %v1528_v37  ;;  %1745 = vmatpush.msra.mxu2 %v1568_v35  ;;  %v1207_v42 = vadd.f32 %v1206_v1, %v1184_v0  ;;  %v1474_v35 = vld [vmem:[%s8963_s3 + $0x8] sm:$0xff] }
 0x1f2   :  { %1704 = vmatpush.msra.mxu0 %v1494_v54  ;;  %v1140_v63 = vpop.f32.mrf.mxu1  ;;  %v1506_v54 = vld [vmem:[%s8963_s3 + $0x108] sm:$0xff]  ;;  %1679 = vmatpush.msrb.mxu3 %v1593_v6 }
 0x1f3   :  { %1727 = vmatpush.msra.mxu1 %v1526_v41  ;;  %1746 = vmatpush.msra.mxu2 %v1566_v52  ;;  %v1163_v60 = vpop.f32.mrf.mxu2  ;;  %v1141_v11 = vadd.f32 %v1140_v63, %v1118_v18  ;;  %v1588_v18 = vld [vmem:[%s8963_s3 + $0x398] sm:$0xff]  ;;  %v1586_v0 = vld [vmem:[%s8963_s3 + $0x388] sm:$0xff] }
 0x1f4   :  { %1705 = vmatpush.msra.mxu0 %v1492_v44  ;;  %v1186_v57 = vpop.f32.mrf.mxu3  ;;  %1680 = vmatpush.msrb.mxu3 %v1591_v39  ;;  %v1209_v44 = vpop.f32.mrf.mxu0 }
 0x1f5   :  { %1728 = vmatpush.msra.mxu1 %v1524_v13  ;;  %1747 = vmatpush.msra.mxu2 %v1564_v9  ;;  %v1164_v27 = vadd.f32 %v1163_v60, %v1141_v11  ;;  %v1589_v13 = vld [vmem:[%s8963_s3 + $0x3a0] sm:$0xff]  ;;  %v1596_v60 = vld [vmem:[%s8963_s3 + $0x3d8] sm:$0xff]  ;;  %v1578_v11 = vld [vmem:[%s8963_s3 + $0x348] sm:$0xff] }
 0x1f6   :  { %1706 = vmatpush.msra.mxu0 %v1490_v61  ;;  %1681 = vmatpush.msrb.mxu3 %v1589_v13 }
 0x1f7   :  { %1729 = vmatpush.msra.mxu1 %v1522_v8  ;;  %1748 = vmatpush.msra.mxu2 %v1562_v50  ;;  %v1187_v52 = vadd.f32 %v1186_v57, %v1164_v27  ;;  %v1585_v8 = vld [vmem:[%s8963_s3 + $0x380] sm:$0xff]  ;;  %v1540_v50 = vld [vmem:[%s8963_s3 + $0x218] sm:$0xff] }
 0x1f8   :  { %1707 = vmatpush.msra.mxu0 %v1488_v46  ;;  %v1538_v46 = vld [vmem:[%s8963_s3 + $0x208] sm:$0xff] }
 0x1f9   :  { %1730 = vmatpush.msra.mxu1 %v1520_v16  ;;  %1749 = vmatpush.msra.mxu2 %v1560_v49  ;;  %v1210_v10 = vadd.f32 %v1209_v44, %v1187_v52  ;;  %v1581_v16 = vld [vmem:[%s8963_s3 + $0x360] sm:$0xff] }
 0x1fa   :  { %1708 = vmatpush.msra.mxu0 %v1486_v29  ;;  %v1229_v43 = vpop.f32.mrf.mxu1  ;;  %v1569_v49 = vld [vmem:[%s8963_s3 + $0x300] sm:$0xff]  ;;  %v1598_v29 = vld [vmem:[%s8963_s3 + $0x3e8] sm:$0xff] }
 0x1fb   :  { %1731 = vmatpush.msra.mxu1 %v1518_v15  ;;  %1750 = vmatpush.msra.mxu2 %v1558_v21  ;;  %v1230_v22 = vadd.f32 %v1229_v43, %v1207_v42  ;;  %v1252_v36 = vpop.f32.mrf.mxu2  ;;  %v1594_v21 = vld [vmem:[%s8963_s3 + $0x3c8] sm:$0xff]  ;;  %v1584_v42 = vld [vmem:[%s8963_s3 + $0x378] sm:$0xff] }
 0x1fc   :  { %1709 = vmatpush.msra.mxu0 %v1484_v62  ;;  %v1590_v62 = vld [vmem:[%s8963_s3 + $0x3a8] sm:$0xff]  ;;  %v1576_v43 = vld [vmem:[%s8963_s3 + $0x338] sm:$0xff] }
 0x1fd   :  { %1732 = vmatpush.msra.mxu1 %v1516_v40  ;;  %1751 = vmatpush.msra.mxu2 %v1556_v25  ;;  %v1253_v37 = vadd.f32 %v1252_v36, %v1230_v22  ;;  %v632_v40 = vperm.slane %v6087_v3, 3  ;;  %v1582_v3 = vld [vmem:[%s8963_s3 + $0x368] sm:$0xff] }
 0x1fe   :  { %1710 = vmatpush.msra.mxu0 %v1482_v4 }
 0x1ff   :  { %1733 = vmatpush.msra.mxu1 %v1514_v19  ;;  %1752 = vmatpush.msra.mxu2 %v1554_v7  ;;  %v1467_v41 = vmax.f32 %v1253_v37, 0.0  ;;  %v1580_v7 = vld [vmem:[%s8963_s3 + $0x358] sm:$0xff] }
 0x200   :  { %1711 = vmatpush.msra.mxu0 %v1480_v17 }
 0x201   :  { %1734 = vmatpush.msra.mxu1 %v1512_v32  ;;  %1753 = vmatpush.msra.mxu2 %v1552_v28 }
 0x202   :  { %1712 = vmatpush.msra.mxu0 %v1478_v47  ;;  %1669 = vmatmul.f32.vlgmr.msrb.gmra.mxu2 %v1467_v41  ;;  %v1232_v9 = vpop.f32.mrf.mxu1 }
 0x203   :  { %1735 = vmatpush.msra.mxu1 %v1510_v51  ;;  %1754 = vmatpush.msra.mxu2 %v1550_v24  ;;  %v1233_v61 = vadd.f32 %v1232_v9, %v1210_v10  ;;  %v1255_v48 = vpop.f32.mrf.mxu2  ;;  %v1574_v51 = vld [vmem:[%s8963_s3 + $0x328] sm:$0xff]  ;;  %v1572_v24 = vld [vmem:[%s8963_s3 + $0x318] sm:$0xff] }
 0x204   :  { %1713 = vmatpush.msra.mxu0 %v1476_v26 }
 0x205   :  { %1736 = vmatpush.msra.mxu1 %v1508_v30  ;;  %1755 = vmatpush.msra.mxu2 %v1548_v38  ;;  %v1275_v15 = vpop.f32.mrf.mxu3  ;;  %v1570_v30 = vld [vmem:[%s8963_s3 + $0x308] sm:$0xff] }
 0x206   :  { %1714 = vmatpush.msra.mxu0 %v1474_v35  ;;  %v1276_v4 = vadd.f32 %v1275_v15, %v632_v40  ;;  %v1920_v15 = vld [vmem:[%s8965_s5 + $0x3e8] sm:$0xff] }
 0x207   :  { %1737 = vmatpush.msra.mxu1 %v1506_v54  ;;  %1715 = vmatmul.f32.vlgmr.msra.gmra.mxu0 %v1465_v12  ;;  %v1587_v12 = vld [vmem:[%s8963_s3 + $0x390] sm:$0xff] }
 0x208   :  { %1738 = vmatmul.f32.vlgmr.msra.gmra.mxu1 %v1466_v34  ;;  %1756 = vmatpush.msra.mxu2 %v1546_v23  ;;  %v1256_v34 = vadd.f32 %v1255_v48, %v1233_v61 }
 0x209   :  { %1682 = vmatpush.msrb.mxu3 %v1587_v12 }
 0x20a   :  { %1757 = vmatpush.msra.mxu2 %v1544_v59  ;;  %v1471_v63 = vmax.f32 %v1256_v34, 0.0 }
 0x20b   :  { %1683 = vmatpush.msrb.mxu3 %v1585_v8 }
 0x20c   :  { %1758 = vmatpush.msra.mxu2 %v1542_v56 }
 0x20d   :  { %1672 = vmatmul.f32.gmra.mxu2 %v1471_v63  ;;  %1684 = vmatpush.msrb.mxu3 %v1583_v2  ;;  %v1855_v2 = vld [vmem:[%s8965_s5 + $0x1e0] sm:$0xff] }
 0x20e   :  { %1759 = vmatpush.msra.mxu2 %v1540_v50  ;;  %1933 = vmatpush.msrb.mxu0 %v1855_v2  ;;  %v1845_v2 = vld [vmem:[%s8965_s5 + $0x190] sm:$0xff] }
 0x20f   :  { %1718 = vmatmul.f32.gmra.mxu0 %v1469_v33  ;;  %1685 = vmatpush.msrb.mxu3 %v1581_v16  ;;  %v1575_v33 = vld [vmem:[%s8963_s3 + $0x330] sm:$0xff]  ;;  %v1278_v1 = vpop.f32.mrf.mxu3  ;;  %v1851_v16 = vld [vmem:[%s8965_s5 + $0x1c0] sm:$0xff] }
 0x210   :  { %1741 = vmatmul.f32.gmra.mxu1 %v1470_v55  ;;  %1760 = vmatpush.msra.mxu2 %v1538_v46  ;;  %v1573_v55 = vld [vmem:[%s8963_s3 + $0x320] sm:$0xff]  ;;  %v1279_v31 = vadd.f32 %v1278_v1, %v632_v40  ;;  %v1856_v46 = vld [vmem:[%s8965_s5 + $0x1e8] sm:$0xff] }
 0x211   :  { %1686 = vmatpush.msrb.mxu3 %v1579_v45  ;;  %v1852_v45 = vld [vmem:[%s8965_s5 + $0x1c8] sm:$0xff]  ;;  %1934 = vmatpush.msrb.mxu0 %v1851_v16  ;;  %v1911_v40 = vld [vmem:[%s8965_s5 + $0x3a0] sm:$0xff]  ;;  %v1841_v16 = vld [vmem:[%s8965_s5 + $0x170] sm:$0xff] }
 0x212   :  { %1979 = vmatpush.msrb.mxu2 %v1856_v46  ;;  %v1912_v1 = vld [vmem:[%s8965_s5 + $0x3a8] sm:$0xff]  ;;  %v1846_v46 = vld [vmem:[%s8965_s5 + $0x198] sm:$0xff] }
 0x213   :  { %1687 = vmatpush.msrb.mxu3 %v1577_v53  ;;  %v1847_v53 = vld [vmem:[%s8965_s5 + $0x1a0] sm:$0xff] }
 0x214   :  { %1980 = vmatpush.msrb.mxu2 %v1852_v45  ;;  %1935 = vmatpush.msrb.mxu0 %v1847_v53  ;;  %v1842_v45 = vld [vmem:[%s8965_s5 + $0x178] sm:$0xff]  ;;  %v1837_v53 = vld [vmem:[%s8965_s5 + $0x150] sm:$0xff] }
 0x215   :  { %1761 = vmatmul.f32.vlgmr.msra.gmra.mxu2 %v1467_v41  ;;  %1688 = vmatpush.msrb.mxu3 %v1575_v33  ;;  %v1298_v25 = vpop.f32.mrf.mxu0  ;;  %v1344_v32 = vpop.f32.mrf.mxu2  ;;  %v1848_v33 = vld [vmem:[%s8965_s5 + $0x1a8] sm:$0xff] }
 0x216   :  { %v1321_v19 = vpop.f32.mrf.mxu1  ;;  %v1299_v17 = vadd.f32 %v1298_v25, %v1276_v4  ;;  %1981 = vmatpush.msrb.mxu2 %v1848_v33  ;;  %v1907_v25 = vld [vmem:[%s8965_s5 + $0x380] sm:$0xff]  ;;  %v1908_v4 = vld [vmem:[%s8965_s5 + $0x388] sm:$0xff]  ;;  %v1838_v33 = vld [vmem:[%s8965_s5 + $0x158] sm:$0xff] }
 0x217   :  { %1689 = vmatpush.msrb.mxu3 %v1573_v55  ;;  %v1843_v55 = vld [vmem:[%s8965_s5 + $0x180] sm:$0xff] }
 0x218   :  { %v1322_v58 = vadd.f32 %v1321_v19, %v1299_v17  ;;  %1936 = vmatpush.msrb.mxu0 %v1843_v55  ;;  %v1827_v19 = vld [vmem:[%s8965_s5 + $0x100] sm:$0xff] }
 0x219   :  { %1690 = vmatpush.msrb.mxu3 %v1571_v14  ;;  %v1367_v28 = vpop.f32.mrf.mxu3  ;;  %v1844_v14 = vld [vmem:[%s8965_s5 + $0x188] sm:$0xff]  ;;  %v1823_v17 = vld [vmem:[%s8965_s5 + $0xe0] sm:$0xff] }
 0x21a   :  { %v1345_v6 = vadd.f32 %v1344_v32, %v1322_v58  ;;  %1982 = vmatpush.msrb.mxu2 %v1844_v14  ;;  %v1824_v32 = vld [vmem:[%s8965_s5 + $0xe8] sm:$0xff]  ;;  %v1819_v58 = vld [vmem:[%s8965_s5 + $0xc0] sm:$0xff] }
 0x21b   :  { %1691 = vmatpush.msrb.mxu3 %v1569_v49  ;;  %v1839_v49 = vld [vmem:[%s8965_s5 + $0x160] sm:$0xff]  ;;  %v1868_v14 = vld [vmem:[%s8965_s5 + $0x248] sm:$0xff] }
 0x21c   :  { %v1368_v36 = vadd.f32 %v1367_v28, %v1345_v6  ;;  %1937 = vmatpush.msrb.mxu0 %v1839_v49  ;;  %v1820_v28 = vld [vmem:[%s8965_s5 + $0xc8] sm:$0xff]  ;;  %v1867_v55 = vld [vmem:[%s8965_s5 + $0x240] sm:$0xff]  ;;  %v1833_v49 = vld [vmem:[%s8965_s5 + $0x130] sm:$0xff] }
 0x21d   :  { %1764 = vmatmul.f32.gmra.mxu2 %v1471_v63  ;;  %1768 = vmatpush.msra.mxu3 %v1600_v5  ;;  %v1301_v47 = vpop.f32.mrf.mxu0  ;;  %v1347_v27 = vpop.f32.mrf.mxu2  ;;  %v1840_v5 = vld [vmem:[%s8965_s5 + $0x168] sm:$0xff] }
 0x21e   :  { %v1324_v22 = vpop.f32.mrf.mxu1  ;;  %v1302_v26 = vadd.f32 %v1301_v47, %v1279_v31  ;;  %1983 = vmatpush.msrb.mxu2 %v1840_v5  ;;  %v1895_v31 = vld [vmem:[%s8965_s5 + $0x320] sm:$0xff]  ;;  %v1896_v47 = vld [vmem:[%s8965_s5 + $0x328] sm:$0xff]  ;;  %v1834_v5 = vld [vmem:[%s8965_s5 + $0x138] sm:$0xff] }
 0x21f   :  { %1769 = vmatpush.msra.mxu3 %v1598_v29  ;;  %v1919_v29 = vld [vmem:[%s8965_s5 + $0x3e0] sm:$0xff]  ;;  %v1892_v6 = vld [vmem:[%s8965_s5 + $0x308] sm:$0xff] }
 0x220   :  { %v1325_v37 = vadd.f32 %v1324_v22, %v1302_v26  ;;  %1956 = vmatpush.msrb.mxu1 %v1919_v29  ;;  %v1816_v22 = vld [vmem:[%s8965_s5 + $0xa8] sm:$0xff]  ;;  %v1811_v26 = vld [vmem:[%s8965_s5 + $0x80] sm:$0xff] }
 0x221   :  { %1770 = vmatpush.msra.mxu3 %v1596_v60  ;;  %v1370_v39 = vpop.f32.mrf.mxu3  ;;  %v1835_v60 = vld [vmem:[%s8965_s5 + $0x140] sm:$0xff] }
 0x222   :  { %v1348_v41 = vadd.f32 %v1347_v27, %v1325_v37  ;;  %1938 = vmatpush.msrb.mxu0 %v1835_v60  ;;  %v1887_v27 = vld [vmem:[%s8965_s5 + $0x2e0] sm:$0xff]  ;;  %v1829_v60 = vld [vmem:[%s8965_s5 + $0x110] sm:$0xff] }
 0x223   :  { %1771 = vmatpush.msra.mxu3 %v1594_v21  ;;  %v1836_v21 = vld [vmem:[%s8965_s5 + $0x148] sm:$0xff]  ;;  %v1807_v37 = vld [vmem:[%s8965_s5 + $0x60] sm:$0xff] }
 0x224   :  { %v1371_v44 = vadd.f32 %v1370_v39, %v1348_v41  ;;  %1984 = vmatpush.msrb.mxu2 %v1836_v21  ;;  %v1883_v39 = vld [vmem:[%s8965_s5 + $0x2c0] sm:$0xff]  ;;  %v1804_v41 = vld [vmem:[%s8965_s5 + $0x48] sm:$0xff]  ;;  %v1830_v21 = vld [vmem:[%s8965_s5 + $0x118] sm:$0xff] }
 0x225   :  { %1772 = vmatpush.msra.mxu3 %v1592_v20  ;;  %v1915_v20 = vld [vmem:[%s8965_s5 + $0x3c0] sm:$0xff] }
 0x226   :  { %1957 = vmatpush.msrb.mxu1 %v1915_v20  ;;  %v1863_v29 = vld [vmem:[%s8965_s5 + $0x220] sm:$0xff] }
 0x227   :  { %1773 = vmatpush.msra.mxu3 %v1590_v62  ;;  %v1916_v62 = vld [vmem:[%s8965_s5 + $0x3c8] sm:$0xff]  ;;  %v1859_v20 = vld [vmem:[%s8965_s5 + $0x200] sm:$0xff] }
 0x228   :  { %1958 = vmatpush.msrb.mxu1 %v1911_v40  ;;  %v1825_v40 = vld [vmem:[%s8965_s5 + $0xf0] sm:$0xff] }
 0x229   :  { %1774 = vmatpush.msra.mxu3 %v1588_v18  ;;  %v1831_v18 = vld [vmem:[%s8965_s5 + $0x120] sm:$0xff] }
 0x22a   :  { %1939 = vmatpush.msrb.mxu0 %v1831_v18  ;;  %1959 = vmatpush.msrb.mxu1 %v1907_v25  ;;  %v1921_v18 = vld [vmem:[%s8965_s5 + $0x3f0] sm:$0xff] }
 0x22b   :  { %1775 = vmatpush.msra.mxu3 %v1586_v0  ;;  %v1832_v0 = vld [vmem:[%s8965_s5 + $0x128] sm:$0xff]  ;;  %v1821_v25 = vld [vmem:[%s8965_s5 + $0xd0] sm:$0xff] }
 0x22c   :  { %1985 = vmatpush.msrb.mxu2 %v1832_v0  ;;  %1940 = vmatpush.msrb.mxu0 %v1827_v19  ;;  %v1826_v0 = vld [vmem:[%s8965_s5 + $0xf8] sm:$0xff] }
 0x22d   :  { %1776 = vmatpush.msra.mxu3 %v1584_v42  ;;  %v1828_v42 = vld [vmem:[%s8965_s5 + $0x108] sm:$0xff]  ;;  %v1822_v19 = vld [vmem:[%s8965_s5 + $0xd8] sm:$0xff] }
 0x22e   :  { %1986 = vmatpush.msrb.mxu2 %v1828_v42  ;;  %1941 = vmatpush.msrb.mxu0 %v1823_v17  ;;  %v1918_v42 = vld [vmem:[%s8965_s5 + $0x3d8] sm:$0xff] }
 0x22f   :  { %1777 = vmatpush.msra.mxu3 %v1582_v3  ;;  %v1903_v3 = vld [vmem:[%s8965_s5 + $0x360] sm:$0xff]  ;;  %v1818_v17 = vld [vmem:[%s8965_s5 + $0xb8] sm:$0xff] }
 0x230   :  { %1960 = vmatpush.msrb.mxu1 %v1903_v3  ;;  %1987 = vmatpush.msrb.mxu2 %v1824_v32  ;;  %v1817_v3 = vld [vmem:[%s8965_s5 + $0xb0] sm:$0xff]  ;;  %v1914_v32 = vld [vmem:[%s8965_s5 + $0x3b8] sm:$0xff] }
 0x231   :  { %1778 = vmatpush.msra.mxu3 %v1580_v7  ;;  %v1904_v7 = vld [vmem:[%s8965_s5 + $0x368] sm:$0xff]  ;;  %1942 = vmatpush.msrb.mxu0 %v1819_v58  ;;  %v1814_v58 = vld [vmem:[%s8965_s5 + $0x98] sm:$0xff] }
 0x232   :  { %1988 = vmatpush.msrb.mxu2 %v1820_v28  ;;  %v1910_v28 = vld [vmem:[%s8965_s5 + $0x398] sm:$0xff] }
 0x233   :  { %1779 = vmatpush.msra.mxu3 %v1578_v11  ;;  %v1899_v11 = vld [vmem:[%s8965_s5 + $0x340] sm:$0xff] }
 0x234   :  { %1961 = vmatpush.msrb.mxu1 %v1899_v11  ;;  %1989 = vmatpush.msrb.mxu2 %v1816_v22  ;;  %v1813_v11 = vld [vmem:[%s8965_s5 + $0x90] sm:$0xff]  ;;  %v1906_v22 = vld [vmem:[%s8965_s5 + $0x378] sm:$0xff] }
 0x235   :  { %1780 = vmatpush.msra.mxu3 %v1576_v43  ;;  %v1900_v43 = vld [vmem:[%s8965_s5 + $0x348] sm:$0xff] }
 0x236   :  { %1962 = vmatpush.msrb.mxu1 %v1895_v31  ;;  %v1809_v31 = vld [vmem:[%s8965_s5 + $0x70] sm:$0xff] }
 0x237   :  { %1781 = vmatpush.msra.mxu3 %v1574_v51  ;;  %v1815_v51 = vld [vmem:[%s8965_s5 + $0xa0] sm:$0xff] }
 0x238   :  { %1943 = vmatpush.msrb.mxu0 %v1815_v51  ;;  %v1810_v51 = vld [vmem:[%s8965_s5 + $0x78] sm:$0xff] }
 0x239   :  { %1782 = vmatpush.msra.mxu3 %v1572_v24  ;;  %v1891_v24 = vld [vmem:[%s8965_s5 + $0x300] sm:$0xff] }
 0x23a   :  { %1963 = vmatpush.msrb.mxu1 %v1891_v24  ;;  %1944 = vmatpush.msrb.mxu0 %v1811_v26  ;;  %v1805_v24 = vld [vmem:[%s8965_s5 + $0x50] sm:$0xff]  ;;  %v1806_v26 = vld [vmem:[%s8965_s5 + $0x58] sm:$0xff] }
 0x23b   :  { %1783 = vmatpush.msra.mxu3 %v1570_v30  ;;  %v1812_v30 = vld [vmem:[%s8965_s5 + $0x88] sm:$0xff] }
 0x23c   :  { %1990 = vmatpush.msrb.mxu2 %v1812_v30  ;;  %1964 = vmatpush.msrb.mxu1 %v1887_v27  ;;  %v6891_v30 = vld [vmem:[%s8964_s4] sm:$0x3] }
 0x23d   :  { %1945 = vmatpush.msrb.mxu0 %v1807_v37  ;;  %v1801_v37 = vld [vmem:[%s8965_s5 + $0x30] sm:$0xff] }
 0x23e   :  { %1965 = vmatpush.msrb.mxu1 %v1883_v39  ;;  %v1802_v39 = vld [vmem:[%s8965_s5 + $0x38] sm:$0xff] }
 0x243   :  { %v1390_v38 = vpop.f32.mrf.mxu0 }
 0x244   :  { %v1391_v35 = vadd.f32 %v1390_v38, %v1368_v36  ;;  %v1888_v36 = vld [vmem:[%s8965_s5 + $0x2e8] sm:$0xff] }
 0x245   :  { %v1808_v38 = vld [vmem:[%s8965_s5 + $0x68] sm:$0xff] }
 0x246   :  { %1991 = vmatpush.msrb.mxu2 %v1808_v38  ;;  %v1897_v38 = vld [vmem:[%s8965_s5 + $0x330] sm:$0xff] }
 0x247   :  { %v1413_v54 = vpop.f32.mrf.mxu1 }
 0x248   :  { %v1414_v57 = vadd.f32 %v1413_v54, %v1391_v35  ;;  %v1884_v35 = vld [vmem:[%s8965_s5 + $0x2c8] sm:$0xff]  ;;  %v1803_v54 = vld [vmem:[%s8965_s5 + $0x40] sm:$0xff]  ;;  %1992 = vmatpush.msrb.mxu2 %v1804_v41  ;;  %v1893_v41 = vld [vmem:[%s8965_s5 + $0x310] sm:$0xff] }
 0x249   :  { %1946 = vmatpush.msrb.mxu0 %v1803_v54  ;;  %v1797_v54 = vld [vmem:[%s8965_s5 + $0x10] sm:$0xff] }
 0x24b   :  { %v1436_v52 = vpop.f32.mrf.mxu2 }
 0x24c   :  { %v1437_v23 = vadd.f32 %v1436_v52, %v1414_v57  ;;  %v1393_v13 = vpop.f32.mrf.mxu0  ;;  %v1879_v57 = vld [vmem:[%s8965_s5 + $0x2a0] sm:$0xff]  ;;  %v1880_v52 = vld [vmem:[%s8965_s5 + $0x2a8] sm:$0xff] }
 0x24d   :  { %v1394_v59 = vadd.f32 %v1393_v13, %v1371_v44  ;;  %v1800_v44 = vld [vmem:[%s8965_s5 + $0x28] sm:$0xff]  ;;  %v1875_v13 = vld [vmem:[%s8965_s5 + $0x280] sm:$0xff]  ;;  %1966 = vmatpush.msrb.mxu1 %v1879_v57  ;;  %v1603_v57 = vperm.slane %v6891_v30, 0 }
 0x24e   :  { %v1459_v10 = vpop.f32.mrf.mxu3  ;;  %1993 = vmatpush.msrb.mxu2 %v1800_v44 }
 0x24f   :  { %v1460_v9 = vadd.f32 %v1459_v10, %v1437_v23  ;;  %v1416_v61 = vpop.f32.mrf.mxu1  ;;  %v1799_v23 = vld [vmem:[%s8965_s5 + $0x20] sm:$0xff]  ;;  %v1876_v10 = vld [vmem:[%s8965_s5 + $0x288] sm:$0xff]  ;;  %1967 = vmatpush.msrb.mxu1 %v1875_v13  ;;  %v1889_v13 = vld [vmem:[%s8965_s5 + $0x2f0] sm:$0xff] }
 0x250   :  { %v1417_v56 = vadd.f32 %v1416_v61, %v1394_v59  ;;  %v1795_v59 = vld [vmem:[%s8965_s5] sm:$0xff]  ;;  %1947 = vmatpush.msrb.mxu0 %v1799_v23  ;;  %v1857_v61 = vld [vmem:[%s8965_s5 + $0x1f0] sm:$0xff]  ;;  %v1894_v23 = vld [vmem:[%s8965_s5 + $0x318] sm:$0xff] }
 0x251   :  { %v1468_v48 = vmax.f32 %v1460_v9, 0.0  ;;  %v1796_v9 = vld [vmem:[%s8965_s5 + $0x8] sm:$0xff] }
 0x252   :  { %1948 = vmatpush.msrb.mxu0 %v1795_v59  ;;  %1994 = vmatpush.msrb.mxu2 %v1796_v9 }
 0x253   :  { %1692 = vmatmul.f32.vlgmr.msrb.gmra.mxu3 %v1468_v48  ;;  %v1439_v12 = vpop.f32.mrf.mxu2 }
 0x254   :  { %v1440_v34 = vadd.f32 %v1439_v12, %v1417_v56  ;;  %2002 = vmatpush.msrb.mxu3 %v1920_v15  ;;  %v1871_v56 = vld [vmem:[%s8965_s5 + $0x260] sm:$0xff]  ;;  %v1872_v12 = vld [vmem:[%s8965_s5 + $0x268] sm:$0xff]  ;;  %2025 = vmatpush.msra.mxu0 %v1857_v61  ;;  %v1885_v61 = vld [vmem:[%s8965_s5 + $0x2d0] sm:$0xff] }
 0x255   :  { %1968 = vmatpush.msrb.mxu1 %v1871_v56  ;;  %v1864_v15 = vld [vmem:[%s8965_s5 + $0x228] sm:$0xff]  ;;  %v1881_v56 = vld [vmem:[%s8965_s5 + $0x2b0] sm:$0xff] }
 0x256   :  { %v1462_v8 = vpop.f32.mrf.mxu3  ;;  %2003 = vmatpush.msrb.mxu3 %v1916_v62  ;;  %v1860_v62 = vld [vmem:[%s8965_s5 + $0x208] sm:$0xff] }
 0x257   :  { %v1463_v63 = vadd.f32 %v1462_v8, %v1440_v34  ;;  %v1853_v34 = vld [vmem:[%s8965_s5 + $0x1d0] sm:$0xff]  ;;  %v1854_v8 = vld [vmem:[%s8965_s5 + $0x1d8] sm:$0xff]  ;;  %1969 = vmatpush.msrb.mxu1 %v1867_v55 }
 0x258   :  { %2004 = vmatpush.msrb.mxu3 %v1912_v1  ;;  %2026 = vmatpush.msra.mxu0 %v1853_v34  ;;  %v1922_v1 = vld [vmem:[%s8965_s5 + $0x3f8] sm:$0xff]  ;;  %v1877_v34 = vld [vmem:[%s8965_s5 + $0x290] sm:$0xff] }
 0x259   :  { %v1472_v50 = vmax.f32 %v1463_v63, 0.0  ;;  %v1849_v63 = vld [vmem:[%s8965_s5 + $0x1b0] sm:$0xff]  ;;  %1970 = vmatpush.msrb.mxu1 %v1863_v29  ;;  %v1870_v55 = vld [vmem:[%s8965_s5 + $0x258] sm:$0xff] }
 0x25a   :  { %2005 = vmatpush.msrb.mxu3 %v1908_v4  ;;  %2027 = vmatpush.msra.mxu0 %v1849_v63  ;;  %v1917_v4 = vld [vmem:[%s8965_s5 + $0x3d0] sm:$0xff]  ;;  %v1878_v63 = vld [vmem:[%s8965_s5 + $0x298] sm:$0xff] }
 0x25b   :  { %1695 = vmatmul.f32.gmra.mxu3 %v1472_v50  ;;  %1971 = vmatpush.msrb.mxu1 %v1859_v20 }
 0x25c   :  { %2006 = vmatpush.msrb.mxu3 %v1904_v7  ;;  %2028 = vmatpush.msra.mxu0 %v1845_v2  ;;  %v1913_v7 = vld [vmem:[%s8965_s5 + $0x3b0] sm:$0xff] }
 0x25d   :  { %2048 = vmatpush.msra.mxu1 %v1921_v18  ;;  %v1873_v2 = vld [vmem:[%s8965_s5 + $0x270] sm:$0xff]  ;;  %v1862_v18 = vld [vmem:[%s8965_s5 + $0x218] sm:$0xff] }
 0x25e   :  { %2007 = vmatpush.msrb.mxu3 %v1900_v43  ;;  %2029 = vmatpush.msra.mxu0 %v1841_v16  ;;  %v1909_v43 = vld [vmem:[%s8965_s5 + $0x390] sm:$0xff] }
 0x25f   :  { %2049 = vmatpush.msra.mxu1 %v1917_v4 }
 0x260   :  { %2008 = vmatpush.msrb.mxu3 %v1896_v47  ;;  %2030 = vmatpush.msra.mxu0 %v1837_v53  ;;  %v1905_v47 = vld [vmem:[%s8965_s5 + $0x370] sm:$0xff] }
 0x261   :  { %2050 = vmatpush.msra.mxu1 %v1913_v7 }
 0x262   :  { %2009 = vmatpush.msrb.mxu3 %v1892_v6  ;;  %2031 = vmatpush.msra.mxu0 %v1833_v49  ;;  %v1901_v6 = vld [vmem:[%s8965_s5 + $0x350] sm:$0xff] }
 0x263   :  { %1784 = vmatmul.f32.vlgmr.msra.gmra.mxu3 %v1468_v48  ;;  %v1858_v48 = vld [vmem:[%s8965_s5 + $0x1f8] sm:$0xff]  ;;  %2051 = vmatpush.msra.mxu1 %v1909_v43 }
 0x264   :  { %2010 = vmatpush.msrb.mxu3 %v1888_v36  ;;  %2071 = vmatpush.msra.mxu2 %v1858_v48  ;;  %v1624_v27 = vpop.f32.mrf.mxu0  ;;  %v1902_v36 = vld [vmem:[%s8965_s5 + $0x358] sm:$0xff] }
 0x265   :  { %2032 = vmatpush.msra.mxu0 %v1829_v60  ;;  %2052 = vmatpush.msra.mxu1 %v1905_v47  ;;  %v1647_v59 = vpop.f32.mrf.mxu1  ;;  %v1625_v9 = vadd.f32 %v1624_v27, %v1603_v57  ;;  %v1886_v48 = vld [vmem:[%s8965_s5 + $0x2d8] sm:$0xff] }
 0x266   :  { %2011 = vmatpush.msrb.mxu3 %v1884_v35  ;;  %2072 = vmatpush.msra.mxu2 %v1854_v8  ;;  %v1898_v35 = vld [vmem:[%s8965_s5 + $0x338] sm:$0xff] }
 0x267   :  { %2033 = vmatpush.msra.mxu0 %v1825_v40  ;;  %2053 = vmatpush.msra.mxu1 %v1901_v6  ;;  %v1866_v60 = vld [vmem:[%s8965_s5 + $0x238] sm:$0xff]  ;;  %v1604_v40 = vperm.slane %v6891_v30, 1 }
 0x268   :  { %2012 = vmatpush.msrb.mxu3 %v1880_v52  ;;  %v1798_v52 = vld [vmem:[%s8965_s5 + $0x18] sm:$0xff] }
 0x269   :  { %2034 = vmatpush.msra.mxu0 %v1821_v25  ;;  %2054 = vmatpush.msra.mxu1 %v1897_v38  ;;  %v2404_v30 = vld [vmem:[%s8967_s7 + $0x8b8] sm:$0xff] }
 0x26a   :  { %2013 = vmatpush.msrb.mxu3 %v1876_v10  ;;  %v1890_v10 = vld [vmem:[%s8965_s5 + $0x2f8] sm:$0xff] }
 0x26b   :  { %1787 = vmatmul.f32.gmra.mxu3 %v1472_v50  ;;  %v1850_v50 = vld [vmem:[%s8965_s5 + $0x1b8] sm:$0xff]  ;;  %2035 = vmatpush.msra.mxu0 %v1817_v3 }
 0x26c   :  { %2014 = vmatpush.msrb.mxu3 %v1872_v12  ;;  %2073 = vmatpush.msra.mxu2 %v1850_v50  ;;  %v1882_v12 = vld [vmem:[%s8965_s5 + $0x2b8] sm:$0xff]  ;;  %v1627_v8 = vpop.f32.mrf.mxu0  ;;  %v1648_v50 = vadd.f32 %v1647_v59, %v1625_v9  ;;  %v2674_v59 = vld [vmem:[%s8967_s7 + $0x1128] sm:$0xff] }
 0x26d   :  { %2036 = vmatpush.msra.mxu0 %v1813_v11  ;;  %2055 = vmatpush.msra.mxu1 %v1893_v41  ;;  %v1650_v29 = vpop.f32.mrf.mxu1  ;;  %v2224_v27 = vld [vmem:[%s8967_s7 + $0x318] sm:$0xff]  ;;  %v2530_v41 = vld [vmem:[%s8967_s7 + $0xca8] sm:$0xff] }
 0x26e   :  { %2074 = vmatpush.msra.mxu2 %v1846_v46  ;;  %2015 = vmatpush.msrb.mxu3 %v1868_v14  ;;  %v1874_v46 = vld [vmem:[%s8965_s5 + $0x278] sm:$0xff]  ;;  %v1628_v14 = vadd.f32 %v1627_v8, %v1603_v57  ;;  %v2683_v57 = vld [vmem:[%s8967_s7 + $0x1170] sm:$0xff] }
 0x26f   :  { %2037 = vmatpush.msra.mxu0 %v1809_v31  ;;  %2056 = vmatpush.msra.mxu1 %v1889_v13  ;;  %v2692_v38 = vld [vmem:[%s8967_s7 + $0x11b8] sm:$0xff] }
 0x270   :  { %2075 = vmatpush.msra.mxu2 %v1842_v45  ;;  %2016 = vmatpush.msrb.mxu3 %v1864_v15  ;;  %v1869_v45 = vld [vmem:[%s8965_s5 + $0x250] sm:$0xff]  ;;  %v2188_v8 = vld [vmem:[%s8967_s7 + $0x1f8] sm:$0xff] }
 0x271   :  { %2038 = vmatpush.msra.mxu0 %v1805_v24  ;;  %2057 = vmatpush.msra.mxu1 %v1885_v61  ;;  %v2377_v61 = vld [vmem:[%s8967_s7 + $0x7e0] sm:$0xff] }
 0x272   :  { %2076 = vmatpush.msra.mxu2 %v1838_v33  ;;  %2017 = vmatpush.msrb.mxu3 %v1860_v62  ;;  %v1651_v62 = vadd.f32 %v1650_v29, %v1628_v14  ;;  %v2638_v14 = vld [vmem:[%s8967_s7 + $0x1008] sm:$0xff]  ;;  %v2476_v29 = vld [vmem:[%s8967_s7 + $0xaf8] sm:$0xff] }
 0x273   :  { %2039 = vmatpush.msra.mxu0 %v1801_v37  ;;  %2058 = vmatpush.msra.mxu1 %v1881_v56  ;;  %v2539_v37 = vld [vmem:[%s8967_s7 + $0xcf0] sm:$0xff]  ;;  %v2512_v56 = vld [vmem:[%s8967_s7 + $0xc18] sm:$0xff] }
 0x274   :  { %2077 = vmatpush.msra.mxu2 %v1834_v5  ;;  %2094 = vmatpush.msra.mxu3 %v1922_v1  ;;  %v1865_v5 = vld [vmem:[%s8965_s5 + $0x230] sm:$0xff] }
 0x275   :  { %2040 = vmatpush.msra.mxu0 %v1797_v54  ;;  %2059 = vmatpush.msra.mxu1 %v1877_v34  ;;  %v2368_v34 = vld [vmem:[%s8967_s7 + $0x798] sm:$0xff] }
 0x276   :  { %2078 = vmatpush.msra.mxu2 %v1830_v21  ;;  %2095 = vmatpush.msra.mxu3 %v1918_v42  ;;  %v1861_v21 = vld [vmem:[%s8965_s5 + $0x210] sm:$0xff] }
 0x277   :  { %2060 = vmatpush.msra.mxu1 %v1873_v2  ;;  %v2359_v2 = vld [vmem:[%s8967_s7 + $0x750] sm:$0xff] }
 0x278   :  { %2079 = vmatpush.msra.mxu2 %v1826_v0  ;;  %2096 = vmatpush.msra.mxu3 %v1914_v32  ;;  %v2251_v32 = vld [vmem:[%s8967_s7 + $0x3f0] sm:$0xff] }
 0x279   :  { %2061 = vmatpush.msra.mxu1 %v1869_v45  ;;  %v2647_v45 = vld [vmem:[%s8967_s7 + $0x1050] sm:$0xff] }
 0x27a   :  { %2080 = vmatpush.msra.mxu2 %v1822_v19  ;;  %2097 = vmatpush.msra.mxu3 %v1910_v28 }
 0x27b   :  { %2062 = vmatpush.msra.mxu1 %v1865_v5  ;;  %v2161_v5 = vld [vmem:[%s8967_s7 + $0x120] sm:$0xff] }
 0x27c   :  { %2081 = vmatpush.msra.mxu2 %v1818_v17  ;;  %2098 = vmatpush.msra.mxu3 %v1906_v22  ;;  %v2260_v17 = vld [vmem:[%s8967_s7 + $0x438] sm:$0xff] }
 0x27d   :  { %2063 = vmatpush.msra.mxu1 %v1861_v21  ;;  %v2548_v22 = vld [vmem:[%s8967_s7 + $0xd38] sm:$0xff] }
 0x27e   :  { %2082 = vmatpush.msra.mxu2 %v1814_v58  ;;  %2099 = vmatpush.msra.mxu3 %v1902_v36  ;;  %v2242_v58 = vld [vmem:[%s8967_s7 + $0x3a8] sm:$0xff]  ;;  %v2152_v21 = vld [vmem:[%s8967_s7 + $0xd8] sm:$0xff] }
 0x280   :  { %2083 = vmatpush.msra.mxu2 %v1810_v51  ;;  %2100 = vmatpush.msra.mxu3 %v1898_v35  ;;  %v2233_v51 = vld [vmem:[%s8967_s7 + $0x360] sm:$0xff]  ;;  %v2215_v35 = vld [vmem:[%s8967_s7 + $0x2d0] sm:$0xff] }
 0x282   :  { %2084 = vmatpush.msra.mxu2 %v1806_v26  ;;  %2101 = vmatpush.msra.mxu3 %v1894_v23  ;;  %v2386_v23 = vld [vmem:[%s8967_s7 + $0x828] sm:$0xff] }
 0x284   :  { %2085 = vmatpush.msra.mxu2 %v1802_v39  ;;  %2102 = vmatpush.msra.mxu3 %v1890_v10  ;;  %v1716_v20 = vpop.f32.mrf.mxu0  ;;  %v2395_v39 = vld [vmem:[%s8967_s7 + $0x870] sm:$0xff]  ;;  %v2521_v10 = vld [vmem:[%s8967_s7 + $0xc60] sm:$0xff] }
 0x285   :  { %v1670_v44 = vpop.f32.mrf.mxu2  ;;  %v1717_v25 = vadd.f32 %v1716_v20, %v1604_v40  ;;  %v1739_v19 = vpop.f32.mrf.mxu1  ;;  %v2467_v20 = vld [vmem:[%s8967_s7 + $0xab0] sm:$0xff] }
 0x286   :  { %2086 = vmatpush.msra.mxu2 %v1798_v52  ;;  %2103 = vmatpush.msra.mxu3 %v1886_v48  ;;  %v1671_v16 = vadd.f32 %v1670_v44, %v1648_v50  ;;  %v2206_v44 = vld [vmem:[%s8967_s7 + $0x288] sm:$0xff]  ;;  %v2197_v48 = vld [vmem:[%s8967_s7 + $0x240] sm:$0xff]  ;;  %v2656_v50 = vld [vmem:[%s8967_s7 + $0x1098] sm:$0xff] }
 0x287   :  { %v1740_v7 = vadd.f32 %v1739_v19, %v1717_v25  ;;  %v2458_v25 = vld [vmem:[%s8967_s7 + $0xa68] sm:$0xff]  ;;  %v2305_v19 = vld [vmem:[%s8967_s7 + $0x5a0] sm:$0xff] }
 0x288   :  { %2104 = vmatpush.msra.mxu3 %v1882_v12  ;;  %v2665_v12 = vld [vmem:[%s8967_s7 + $0x10e0] sm:$0xff] }
 0x28a   :  { %2105 = vmatpush.msra.mxu3 %v1878_v63  ;;  %v2503_v63 = vld [vmem:[%s8967_s7 + $0xbd0] sm:$0xff] }
 0x28c   :  { %2106 = vmatpush.msra.mxu3 %v1874_v46  ;;  %v1719_v11 = vpop.f32.mrf.mxu0  ;;  %v2179_v46 = vld [vmem:[%s8967_s7 + $0x1b0] sm:$0xff] }
 0x28d   :  { %v1720_v31 = vadd.f32 %v1719_v11, %v1604_v40  ;;  %v1742_v6 = vpop.f32.mrf.mxu1  ;;  %v2323_v40 = vld [vmem:[%s8967_s7 + $0x630] sm:$0xff]  ;;  %v2440_v11 = vld [vmem:[%s8967_s7 + $0x9d8] sm:$0xff] }
 0x28e   :  { %2107 = vmatpush.msra.mxu3 %v1870_v55  ;;  %v2485_v55 = vld [vmem:[%s8967_s7 + $0xb40] sm:$0xff] }
 0x28f   :  { %v1743_v36 = vadd.f32 %v1742_v6, %v1720_v31  ;;  %v2234_v31 = vld [vmem:[%s8967_s7 + $0x368] sm:$0xff]  ;;  %v2216_v6 = vld [vmem:[%s8967_s7 + $0x2d8] sm:$0xff] }
 0x290   :  { %v1673_v53 = vpop.f32.mrf.mxu2  ;;  %2108 = vmatpush.msra.mxu3 %v1866_v60  ;;  %v2332_v60 = vld [vmem:[%s8967_s7 + $0x678] sm:$0xff] }
 0x291   :  { %v1674_v0 = vadd.f32 %v1673_v53, %v1651_v62  ;;  %v2350_v53 = vld [vmem:[%s8967_s7 + $0x708] sm:$0xff]  ;;  %v2620_v62 = vld [vmem:[%s8967_s7 + $0xf78] sm:$0xff] }
 0x292   :  { %2109 = vmatpush.msra.mxu3 %v1862_v18  ;;  %v2143_v18 = vld [vmem:[%s8967_s7 + $0x90] sm:$0xff] }
 0x298   :  { %v1762_v42 = vpop.f32.mrf.mxu2 }
 0x299   :  { %v1763_v43 = vadd.f32 %v1762_v42, %v1740_v7  ;;  %v2125_v42 = vld [vmem:[%s8967_s7] sm:$0xff] }
 0x29a   :  { %v2449_v7 = vld [vmem:[%s8967_s7 + $0xa20] sm:$0xff] }
 0x2a0   :  { %v1765_v26 = vpop.f32.mrf.mxu2 }
 0x2a1   :  { %v1766_v54 = vadd.f32 %v1765_v26, %v1743_v36  ;;  %v2387_v26 = vld [vmem:[%s8967_s7 + $0x830] sm:$0xff] }
 0x2a2   :  { %v2207_v36 = vld [vmem:[%s8967_s7 + $0x290] sm:$0xff] }
 0x2d6   :  { %v1693_v33 = vpop.f32.mrf.mxu3 }
 0x2d7   :  { %v1694_v49 = vadd.f32 %v1693_v33, %v1671_v16  ;;  %v2494_v16 = vld [vmem:[%s8967_s7 + $0xb88] sm:$0xff] }
 0x2d8   :  { %v2170_v33 = vld [vmem:[%s8967_s7 + $0x168] sm:$0xff] }
 0x2d9   :  { %v1791_v15 = vmax.f32 %v1694_v49, 0.0  ;;  %v2341_v49 = vld [vmem:[%s8967_s7 + $0x6c0] sm:$0xff] }
 0x2db   :  { %1949 = vmatmul.f32.vlgmr.msrb.gmra.mxu0 %v1791_v15  ;;  %1995 = vmatmul.f32.vlgmr.msrb.gmra.mxu2 %v1791_v15 }
 0x2dc   :  { %2723 = vmatpush.msrb.mxu0 %v2260_v17  ;;  %2769 = vmatpush.msrb.mxu2 %v2548_v22  ;;  %v2296_v17 = vld [vmem:[%s8967_s7 + $0x558] sm:$0xff]  ;;  %v2225_v22 = vld [vmem:[%s8967_s7 + $0x320] sm:$0xff] }
 0x2de   :  { %v1696_v1 = vpop.f32.mrf.mxu3  ;;  %2724 = vmatpush.msrb.mxu0 %v2251_v32  ;;  %2770 = vmatpush.msrb.mxu2 %v2539_v37  ;;  %v2252_v32 = vld [vmem:[%s8967_s7 + $0x3f8] sm:$0xff]  ;;  %v2378_v37 = vld [vmem:[%s8967_s7 + $0x7e8] sm:$0xff] }
 0x2df   :  { %v1697_v4 = vadd.f32 %v1696_v1, %v1674_v0  ;;  %v2314_v0 = vld [vmem:[%s8967_s7 + $0x5e8] sm:$0xff] }
 0x2e0   :  { %2725 = vmatpush.msrb.mxu0 %v2242_v58  ;;  %2771 = vmatpush.msrb.mxu2 %v2530_v41  ;;  %v2134_v1 = vld [vmem:[%s8967_s7 + $0x48] sm:$0xff]  ;;  %v2243_v58 = vld [vmem:[%s8967_s7 + $0x3b0] sm:$0xff]  ;;  %v2413_v41 = vld [vmem:[%s8967_s7 + $0x900] sm:$0xff] }
 0x2e1   :  { %v1793_v3 = vmax.f32 %v1697_v4, 0.0  ;;  %v2611_v4 = vld [vmem:[%s8967_s7 + $0xf30] sm:$0xff] }
 0x2e2   :  { %2726 = vmatpush.msrb.mxu0 %v2233_v51  ;;  %2772 = vmatpush.msrb.mxu2 %v2521_v10  ;;  %v2405_v51 = vld [vmem:[%s8967_s7 + $0x8c0] sm:$0xff]  ;;  %v2180_v10 = vld [vmem:[%s8967_s7 + $0x1b8] sm:$0xff] }
 0x2e3   :  { %1952 = vmatmul.f32.gmra.mxu0 %v1793_v3  ;;  %1998 = vmatmul.f32.gmra.mxu2 %v1793_v3 }
 0x2e4   :  { %2727 = vmatpush.msrb.mxu0 %v2224_v27  ;;  %2773 = vmatpush.msrb.mxu2 %v2512_v56  ;;  %v2602_v27 = vld [vmem:[%s8967_s7 + $0xee8] sm:$0xff] }
 0x2e5   :  { %v2342_v56 = vld [vmem:[%s8967_s7 + $0x6c8] sm:$0xff] }
 0x2e6   :  { %v1785_v28 = vpop.f32.mrf.mxu3  ;;  %2728 = vmatpush.msrb.mxu0 %v2215_v35  ;;  %2774 = vmatpush.msrb.mxu2 %v2503_v63  ;;  %v2198_v35 = vld [vmem:[%s8967_s7 + $0x248] sm:$0xff]  ;;  %v2333_v63 = vld [vmem:[%s8967_s7 + $0x680] sm:$0xff] }
 0x2e7   :  { %v1786_v47 = vadd.f32 %v1785_v28, %v1763_v43  ;;  %v2287_v43 = vld [vmem:[%s8967_s7 + $0x510] sm:$0xff]  ;;  %v2278_v28 = vld [vmem:[%s8967_s7 + $0x4c8] sm:$0xff] }
 0x2e8   :  { %2729 = vmatpush.msrb.mxu0 %v2206_v44  ;;  %2775 = vmatpush.msrb.mxu2 %v2494_v16  ;;  %v2549_v44 = vld [vmem:[%s8967_s7 + $0xd40] sm:$0xff]  ;;  %v2324_v16 = vld [vmem:[%s8967_s7 + $0x638] sm:$0xff] }
 0x2e9   :  { %v6985_v24 = vmax.f32 %v1786_v47, 0.0  ;;  %v2269_v47 = vld [vmem:[%s8967_s7 + $0x480] sm:$0xff] }
 0x2ea   :  { %2730 = vmatpush.msrb.mxu0 %v2197_v48  ;;  %2776 = vmatpush.msrb.mxu2 %v2485_v55  ;;  %v2171_v48 = vld [vmem:[%s8967_s7 + $0x170] sm:$0xff] }
 0x2eb   :  { %1972 = vmatmul.f32.vlgmr.msrb.gmra.mxu1 %v6985_v24  ;;  %2018 = vmatmul.f32.vlgmr.msrb.gmra.mxu3 %v6985_v24  ;;  %v2315_v55 = vld [vmem:[%s8967_s7 + $0x5f0] sm:$0xff] }
 0x2ec   :  { %2041 = vmatmul.f32.vlgmr.msra.gmra.mxu0 %v1791_v15  ;;  %2087 = vmatmul.f32.vlgmr.msra.gmra.mxu2 %v1791_v15  ;;  %v2629_v15 = vld [vmem:[%s8967_s7 + $0xfc0] sm:$0xff] }
 0x2ed   :  { %2746 = vmatpush.msrb.mxu1 %v2404_v30  ;;  %2792 = vmatpush.msrb.mxu3 %v2692_v38  ;;  %v2431_v30 = vld [vmem:[%s8967_s7 + $0x990] sm:$0xff]  ;;  %v2422_v38 = vld [vmem:[%s8967_s7 + $0x948] sm:$0xff] }
 0x2ee   :  { %v1788_v52 = vpop.f32.mrf.mxu3  ;;  %2731 = vmatpush.msrb.mxu0 %v2188_v8  ;;  %2777 = vmatpush.msrb.mxu2 %v2476_v29  ;;  %v2162_v8 = vld [vmem:[%s8967_s7 + $0x128] sm:$0xff] }
 0x2ef   :  { %v1789_v13 = vadd.f32 %v1788_v52, %v1766_v54  ;;  %2747 = vmatpush.msrb.mxu1 %v2395_v39  ;;  %2793 = vmatpush.msrb.mxu3 %v2683_v57  ;;  %v2593_v39 = vld [vmem:[%s8967_s7 + $0xea0] sm:$0xff]  ;;  %v2584_v57 = vld [vmem:[%s8967_s7 + $0xe58] sm:$0xff]  ;;  %v2306_v29 = vld [vmem:[%s8967_s7 + $0x5a8] sm:$0xff] }
 0x2f0   :  { %2732 = vmatpush.msrb.mxu0 %v2179_v46  ;;  %2778 = vmatpush.msrb.mxu2 %v2467_v20  ;;  %v2369_v54 = vld [vmem:[%s8967_s7 + $0x7a0] sm:$0xff] }
 0x2f1   :  { %v7025_v9 = vmax.f32 %v1789_v13, 0.0  ;;  %2748 = vmatpush.msrb.mxu1 %v2386_v23  ;;  %2794 = vmatpush.msrb.mxu3 %v2674_v59  ;;  %v2189_v52 = vld [vmem:[%s8967_s7 + $0x200] sm:$0xff]  ;;  %v2360_v23 = vld [vmem:[%s8967_s7 + $0x758] sm:$0xff]  ;;  %v2575_v13 = vld [vmem:[%s8967_s7 + $0xe10] sm:$0xff] }
 0x2f2   :  { %2733 = vmatpush.msrb.mxu0 %v2170_v33  ;;  %2779 = vmatpush.msrb.mxu2 %v2458_v25  ;;  %v2351_v59 = vld [vmem:[%s8967_s7 + $0x710] sm:$0xff]  ;;  %v2153_v46 = vld [vmem:[%s8967_s7 + $0xe0] sm:$0xff]  ;;  %v2144_v33 = vld [vmem:[%s8967_s7 + $0x98] sm:$0xff] }
 0x2f3   :  { %1975 = vmatmul.f32.gmra.mxu1 %v7025_v9  ;;  %2021 = vmatmul.f32.gmra.mxu3 %v7025_v9  ;;  %v2297_v20 = vld [vmem:[%s8967_s7 + $0x560] sm:$0xff]  ;;  %v2279_v25 = vld [vmem:[%s8967_s7 + $0x4d0] sm:$0xff] }
 0x2f4   :  { %2044 = vmatmul.f32.gmra.mxu0 %v1793_v3  ;;  %2090 = vmatmul.f32.gmra.mxu2 %v1793_v3  ;;  %v2261_v3 = vld [vmem:[%s8967_s7 + $0x440] sm:$0xff] }
 0x2f5   :  { %2749 = vmatpush.msrb.mxu1 %v2377_v61  ;;  %2795 = vmatpush.msrb.mxu3 %v2665_v12  ;;  %v2566_v61 = vld [vmem:[%s8967_s7 + $0xdc8] sm:$0xff]  ;;  %v2531_v12 = vld [vmem:[%s8967_s7 + $0xcb0] sm:$0xff] }
 0x2f6   :  { %2734 = vmatpush.msrb.mxu0 %v2161_v5  ;;  %2780 = vmatpush.msrb.mxu2 %v2449_v7  ;;  %v2135_v5 = vld [vmem:[%s8967_s7 + $0x50] sm:$0xff]  ;;  %v2630_v7 = vld [vmem:[%s8967_s7 + $0xfc8] sm:$0xff] }
 0x2f7   :  { %2750 = vmatpush.msrb.mxu1 %v2368_v34  ;;  %2796 = vmatpush.msrb.mxu3 %v2656_v50  ;;  %v2557_v34 = vld [vmem:[%s8967_s7 + $0xd80] sm:$0xff]  ;;  %v2522_v50 = vld [vmem:[%s8967_s7 + $0xc68] sm:$0xff] }
 0x2f8   :  { %2735 = vmatpush.msrb.mxu0 %v2152_v21  ;;  %2781 = vmatpush.msrb.mxu2 %v2440_v11  ;;  %v2126_v21 = vld [vmem:[%s8967_s7 + $0x8] sm:$0xff]  ;;  %v2441_v11 = vld [vmem:[%s8967_s7 + $0x9e0] sm:$0xff] }
 0x2f9   :  { %2751 = vmatpush.msrb.mxu1 %v2359_v2  ;;  %2797 = vmatpush.msrb.mxu3 %v2647_v45  ;;  %v2693_v2 = vld [vmem:[%s8967_s7 + $0x11c0] sm:$0xff] }
 0x2fa   :  { %2736 = vmatpush.msrb.mxu0 %v2143_v18  ;;  %2782 = vmatpush.msrb.mxu2 %v2431_v30  ;;  %v2513_v45 = vld [vmem:[%s8967_s7 + $0xc20] sm:$0xff]  ;;  %v2288_v18 = vld [vmem:[%s8967_s7 + $0x518] sm:$0xff]  ;;  %v2567_v30 = vld [vmem:[%s8967_s7 + $0xdd0] sm:$0xff] }
 0x2fb   :  { %2064 = vmatmul.f32.vlgmr.msra.gmra.mxu1 %v6985_v24  ;;  %2110 = vmatmul.f32.vlgmr.msra.gmra.mxu3 %v6985_v24  ;;  %v2396_v24 = vld [vmem:[%s8967_s7 + $0x878] sm:$0xff] }
 0x2fc   :  { %2752 = vmatpush.msrb.mxu1 %v2350_v53  ;;  %2798 = vmatpush.msrb.mxu3 %v2638_v14  ;;  %v2684_v53 = vld [vmem:[%s8967_s7 + $0x1178] sm:$0xff] }
 0x2fd   :  { %2737 = vmatpush.msrb.mxu0 %v2134_v1  ;;  %2783 = vmatpush.msrb.mxu2 %v2422_v38  ;;  %v2504_v14 = vld [vmem:[%s8967_s7 + $0xbd8] sm:$0xff] }
 0x2fe   :  { %2753 = vmatpush.msrb.mxu1 %v2341_v49  ;;  %2799 = vmatpush.msrb.mxu3 %v2629_v15  ;;  %v2675_v49 = vld [vmem:[%s8967_s7 + $0x1130] sm:$0xff]  ;;  %v2648_v1 = vld [vmem:[%s8967_s7 + $0x1058] sm:$0xff] }
 0x2ff   :  { %2738 = vmatpush.msrb.mxu0 %v2125_v42  ;;  %2784 = vmatpush.msrb.mxu2 %v2413_v41  ;;  %v2495_v15 = vld [vmem:[%s8967_s7 + $0xb90] sm:$0xff]  ;;  %v2270_v42 = vld [vmem:[%s8967_s7 + $0x488] sm:$0xff] }
 0x300   :  { %2754 = vmatpush.msrb.mxu1 %v2332_v60  ;;  %2800 = vmatpush.msrb.mxu3 %v2620_v62  ;;  %v2666_v60 = vld [vmem:[%s8967_s7 + $0x10e8] sm:$0xff] }
 0x301   :  { %2815 = vmatpush.msra.mxu0 %v2261_v3  ;;  %2861 = vmatpush.msra.mxu2 %v2549_v44  ;;  %v2486_v62 = vld [vmem:[%s8967_s7 + $0xb48] sm:$0xff]  ;;  %v2459_v3 = vld [vmem:[%s8967_s7 + $0xa70] sm:$0xff]  ;;  %v2253_v44 = vld [vmem:[%s8967_s7 + $0x400] sm:$0xff] }
 0x302   :  { %2755 = vmatpush.msrb.mxu1 %v2323_v40  ;;  %2801 = vmatpush.msrb.mxu3 %v2611_v4  ;;  %v2657_v40 = vld [vmem:[%s8967_s7 + $0x10a0] sm:$0xff]  ;;  %v2468_v4 = vld [vmem:[%s8967_s7 + $0xab8] sm:$0xff] }
 0x303   :  { %2067 = vmatmul.f32.gmra.mxu1 %v7025_v9  ;;  %2113 = vmatmul.f32.gmra.mxu3 %v7025_v9  ;;  %v2540_v9 = vld [vmem:[%s8967_s7 + $0xcf8] sm:$0xff] }
 0x304   :  { %2756 = vmatpush.msrb.mxu1 %v2314_v0  ;;  %2816 = vmatpush.msra.mxu0 %v2252_v32  ;;  %v2477_v0 = vld [vmem:[%s8967_s7 + $0xb00] sm:$0xff] }
 0x305   :  { %2802 = vmatpush.msrb.mxu3 %v2602_v27  ;;  %2862 = vmatpush.msra.mxu2 %v2540_v9  ;;  %v2621_v32 = vld [vmem:[%s8967_s7 + $0xf80] sm:$0xff] }
 0x306   :  { %2757 = vmatpush.msrb.mxu1 %v2305_v19  ;;  %2817 = vmatpush.msra.mxu0 %v2243_v58  ;;  %v2639_v19 = vld [vmem:[%s8967_s7 + $0x1010] sm:$0xff]  ;;  %v2432_v58 = vld [vmem:[%s8967_s7 + $0x998] sm:$0xff] }
 0x307   :  { %2803 = vmatpush.msrb.mxu3 %v2593_v39  ;;  %2863 = vmatpush.msra.mxu2 %v2531_v12 }
 0x308   :  { %2758 = vmatpush.msrb.mxu1 %v2296_v17  ;;  %2818 = vmatpush.msra.mxu0 %v2234_v31  ;;  %v2450_v17 = vld [vmem:[%s8967_s7 + $0xa28] sm:$0xff]  ;;  %v2423_v31 = vld [vmem:[%s8967_s7 + $0x950] sm:$0xff] }
 0x309   :  { %2804 = vmatpush.msrb.mxu3 %v2584_v57  ;;  %2864 = vmatpush.msra.mxu2 %v2522_v50 }
 0x30a   :  { %2759 = vmatpush.msrb.mxu1 %v2287_v43  ;;  %2819 = vmatpush.msra.mxu0 %v2225_v22  ;;  %v2612_v43 = vld [vmem:[%s8967_s7 + $0xf38] sm:$0xff]  ;;  %v2585_v22 = vld [vmem:[%s8967_s7 + $0xe60] sm:$0xff] }
 0x30b   :  { %2805 = vmatpush.msrb.mxu3 %v2575_v13  ;;  %2865 = vmatpush.msra.mxu2 %v2513_v45 }
 0x30c   :  { %2760 = vmatpush.msrb.mxu1 %v2278_v28  ;;  %2820 = vmatpush.msra.mxu0 %v2216_v6  ;;  %v2603_v28 = vld [vmem:[%s8967_s7 + $0xef0] sm:$0xff]  ;;  %v2576_v6 = vld [vmem:[%s8967_s7 + $0xe18] sm:$0xff] }
 0x30d   :  { %2806 = vmatpush.msrb.mxu3 %v2566_v61  ;;  %2866 = vmatpush.msra.mxu2 %v2504_v14  ;;  %v2244_v61 = vld [vmem:[%s8967_s7 + $0x3b8] sm:$0xff] }
 0x30e   :  { %2761 = vmatpush.msrb.mxu1 %v2269_v47  ;;  %2821 = vmatpush.msra.mxu0 %v2207_v36  ;;  %v2594_v47 = vld [vmem:[%s8967_s7 + $0xea8] sm:$0xff] }
 0x30f   :  { %2807 = vmatpush.msrb.mxu3 %v2557_v34  ;;  %2867 = vmatpush.msra.mxu2 %v2495_v15  ;;  %v2558_v36 = vld [vmem:[%s8967_s7 + $0xd88] sm:$0xff]  ;;  %v2235_v34 = vld [vmem:[%s8967_s7 + $0x370] sm:$0xff] }
 0x310   :  { %2838 = vmatpush.msra.mxu1 %v2405_v51  ;;  %2822 = vmatpush.msra.mxu0 %v2198_v35  ;;  %v2414_v51 = vld [vmem:[%s8967_s7 + $0x908] sm:$0xff] }
 0x311   :  { %2884 = vmatpush.msra.mxu3 %v2693_v2  ;;  %2868 = vmatpush.msra.mxu2 %v2486_v62 }
 0x312   :  { %2839 = vmatpush.msra.mxu1 %v2396_v24  ;;  %2823 = vmatpush.msra.mxu0 %v2189_v52  ;;  %v2262_v52 = vld [vmem:[%s8967_s7 + $0x448] sm:$0xff] }
 0x313   :  { %2885 = vmatpush.msra.mxu3 %v2684_v53  ;;  %2869 = vmatpush.msra.mxu2 %v2477_v0  ;;  %v2217_v53 = vld [vmem:[%s8967_s7 + $0x2e0] sm:$0xff] }
 0x314   :  { %2840 = vmatpush.msra.mxu1 %v2387_v26  ;;  %2824 = vmatpush.msra.mxu0 %v2180_v10  ;;  %v7363_v26 = vld [vmem:[%s8966_s6] sm:$0xf] }
 0x315   :  { %2886 = vmatpush.msra.mxu3 %v2675_v49  ;;  %2870 = vmatpush.msra.mxu2 %v2468_v4  ;;  %v1925_v27 = vperm.slane %v7363_v26, 0  ;;  %v1927_v50 = vperm.slane %v7363_v26, 2 }
 0x316   :  { %2841 = vmatpush.msra.mxu1 %v2378_v37  ;;  %2825 = vmatpush.msra.mxu0 %v2171_v48 }
 0x317   :  { %2887 = vmatpush.msra.mxu3 %v2666_v60  ;;  %2871 = vmatpush.msra.mxu2 %v2459_v3  ;;  %v2181_v3 = vld [vmem:[%s8967_s7 + $0x1c0] sm:$0xff] }
 0x318   :  { %2842 = vmatpush.msra.mxu1 %v2369_v54  ;;  %2826 = vmatpush.msra.mxu0 %v2162_v8  ;;  %v1926_v54 = vperm.slane %v7363_v26, 1  ;;  %v2406_v8 = vld [vmem:[%s8967_s7 + $0x8c8] sm:$0xff] }
 0x319   :  { %2888 = vmatpush.msra.mxu3 %v2657_v40  ;;  %2872 = vmatpush.msra.mxu2 %v2450_v17  ;;  %v2199_v40 = vld [vmem:[%s8967_s7 + $0x250] sm:$0xff] }
 0x31a   :  { %2843 = vmatpush.msra.mxu1 %v2360_v23  ;;  %2827 = vmatpush.msra.mxu0 %v2153_v46  ;;  %v2226_v46 = vld [vmem:[%s8967_s7 + $0x328] sm:$0xff] }
 0x31b   :  { %2889 = vmatpush.msra.mxu3 %v2648_v1  ;;  %2873 = vmatpush.msra.mxu2 %v2441_v11  ;;  %v2190_v1 = vld [vmem:[%s8967_s7 + $0x208] sm:$0xff] }
 0x31c   :  { %2844 = vmatpush.msra.mxu1 %v2351_v59  ;;  %2828 = vmatpush.msra.mxu0 %v2144_v33  ;;  %v2388_v33 = vld [vmem:[%s8967_s7 + $0x838] sm:$0xff] }
 0x31d   :  { %2890 = vmatpush.msra.mxu3 %v2639_v19  ;;  %2874 = vmatpush.msra.mxu2 %v2432_v58  ;;  %v2550_v19 = vld [vmem:[%s8967_s7 + $0xd48] sm:$0xff]  ;;  %v2172_v58 = vld [vmem:[%s8967_s7 + $0x178] sm:$0xff] }
 0x31e   :  { %2845 = vmatpush.msra.mxu1 %v2342_v56  ;;  %2829 = vmatpush.msra.mxu0 %v2135_v5  ;;  %v2208_v5 = vld [vmem:[%s8967_s7 + $0x298] sm:$0xff] }
 0x31f   :  { %2891 = vmatpush.msra.mxu3 %v2630_v7  ;;  %2875 = vmatpush.msra.mxu2 %v2423_v31  ;;  %v2352_v7 = vld [vmem:[%s8967_s7 + $0x718] sm:$0xff] }
 0x320   :  { %2846 = vmatpush.msra.mxu1 %v2333_v63  ;;  %2830 = vmatpush.msra.mxu0 %v2126_v21  ;;  %v1928_v21 = vperm.slane %v7363_v26, 3  ;;  %v2334_v26 = vld [vmem:[%s8967_s7 + $0x688] sm:$0xff] }
 0x321   :  { %2892 = vmatpush.msra.mxu3 %v2621_v32  ;;  %2876 = vmatpush.msra.mxu2 %v2414_v51  ;;  %v2541_v32 = vld [vmem:[%s8967_s7 + $0xd00] sm:$0xff] }
 0x322   :  { %2847 = vmatpush.msra.mxu1 %v2324_v16  ;;  %v2397_v16 = vld [vmem:[%s8967_s7 + $0x880] sm:$0xff] }
 0x323   :  { %2893 = vmatpush.msra.mxu3 %v2612_v43 }
 0x324   :  { %2848 = vmatpush.msra.mxu1 %v2315_v55 }
 0x325   :  { %2894 = vmatpush.msra.mxu3 %v2603_v28  ;;  %v2343_v28 = vld [vmem:[%s8967_s7 + $0x6d0] sm:$0xff] }
 0x326   :  { %2849 = vmatpush.msra.mxu1 %v2306_v29  ;;  %v2379_v29 = vld [vmem:[%s8967_s7 + $0x7f0] sm:$0xff] }
 0x327   :  { %2895 = vmatpush.msra.mxu3 %v2594_v47  ;;  %v2532_v47 = vld [vmem:[%s8967_s7 + $0xcb8] sm:$0xff] }
 0x328   :  { %2850 = vmatpush.msra.mxu1 %v2297_v20 }
 0x329   :  { %2896 = vmatpush.msra.mxu3 %v2585_v22 }
 0x32a   :  { %2851 = vmatpush.msra.mxu1 %v2288_v18  ;;  %v2370_v18 = vld [vmem:[%s8967_s7 + $0x7a8] sm:$0xff] }
 0x32b   :  { %2897 = vmatpush.msra.mxu3 %v2576_v6 }
 0x32c   :  { %2852 = vmatpush.msra.mxu1 %v2279_v25  ;;  %v2361_v25 = vld [vmem:[%s8967_s7 + $0x760] sm:$0xff] }
 0x32d   :  { %2898 = vmatpush.msra.mxu3 %v2567_v30  ;;  %v2523_v30 = vld [vmem:[%s8967_s7 + $0xc70] sm:$0xff] }
 0x32e   :  { %2853 = vmatpush.msra.mxu1 %v2270_v42 }
 0x32f   :  { %2899 = vmatpush.msra.mxu3 %v2558_v36  ;;  %v2694_v36 = vld [vmem:[%s8967_s7 + $0x11c8] sm:$0xff] }
 0x358   :  { %v1950_v24 = vpop.f32.mrf.mxu0 }
 0x359   :  { %v1951_v38 = vadd.f32 %v1950_v24, %v1925_v27  ;;  %v2163_v24 = vld [vmem:[%s8967_s7 + $0x130] sm:$0xff] }
 0x35e   :  { %v1996_v37 = vpop.f32.mrf.mxu2 }
 0x35f   :  { %v1997_v23 = vadd.f32 %v1996_v37, %v1926_v54  ;;  %v2325_v37 = vld [vmem:[%s8967_s7 + $0x640] sm:$0xff] }
 0x360   :  { %v1953_v39 = vpop.f32.mrf.mxu0 }
 0x361   :  { %v1954_v59 = vadd.f32 %v1953_v39, %v1925_v27  ;;  %v2154_v39 = vld [vmem:[%s8967_s7 + $0xe8] sm:$0xff] }
 0x366   :  { %v1999_v13 = vpop.f32.mrf.mxu2 }
 0x367   :  { %v2000_v45 = vadd.f32 %v1999_v13, %v1926_v54  ;;  %v2685_v54 = vld [vmem:[%s8967_s7 + $0x1180] sm:$0xff] }
 0x368   :  { %v1973_v35 = vpop.f32.mrf.mxu1  ;;  %v2505_v13 = vld [vmem:[%s8967_s7 + $0xbe0] sm:$0xff] }
 0x369   :  { %v1974_v41 = vadd.f32 %v1973_v35, %v1951_v38  ;;  %v2042_v63 = vpop.f32.mrf.mxu0  ;;  %v2514_v35 = vld [vmem:[%s8967_s7 + $0xc28] sm:$0xff] }
 0x36a   :  { %v2043_v14 = vadd.f32 %v2042_v63, %v1927_v50  ;;  %v2487_v63 = vld [vmem:[%s8967_s7 + $0xb50] sm:$0xff] }
 0x36b   :  { %v7373_v57 = vmax.f32 %v1974_v41, 0.0 }
 0x36d   :  { %2739 = vmatmul.f32.vlgmr.msrb.gmra.mxu0 %v7373_v57 }
 0x36e   :  { %2907 = vmatpush.msrb.mxu0 %v2262_v52  ;;  %v2019_v10 = vpop.f32.mrf.mxu3  ;;  %v2316_v52 = vld [vmem:[%s8967_s7 + $0x5f8] sm:$0xff] }
 0x36f   :  { %v2020_v9 = vadd.f32 %v2019_v10, %v1997_v23  ;;  %v2088_v15 = vpop.f32.mrf.mxu2  ;;  %v2676_v10 = vld [vmem:[%s8967_s7 + $0x1138] sm:$0xff] }
 0x370   :  { %2908 = vmatpush.msrb.mxu0 %v2253_v44  ;;  %v1976_v48 = vpop.f32.mrf.mxu1  ;;  %v2089_v42 = vadd.f32 %v2088_v15, %v1928_v21  ;;  %v2145_v44 = vld [vmem:[%s8967_s7 + $0xa0] sm:$0xff]  ;;  %v2460_v15 = vld [vmem:[%s8967_s7 + $0xa78] sm:$0xff] }
 0x371   :  { %v7385_v56 = vmax.f32 %v2020_v9, 0.0  ;;  %v1977_v12 = vadd.f32 %v1976_v48, %v1954_v59  ;;  %v2045_v4 = vpop.f32.mrf.mxu0  ;;  %v2307_v59 = vld [vmem:[%s8967_s7 + $0x5b0] sm:$0xff]  ;;  %v2136_v9 = vld [vmem:[%s8967_s7 + $0x58] sm:$0xff] }
 0x372   :  { %2909 = vmatpush.msrb.mxu0 %v2244_v61  ;;  %v2046_v11 = vadd.f32 %v2045_v4, %v1927_v50  ;;  %v2496_v61 = vld [vmem:[%s8967_s7 + $0xb98] sm:$0xff]  ;;  %v2658_v50 = vld [vmem:[%s8967_s7 + $0x10a8] sm:$0xff] }
 0x373   :  { %v7394_v2 = vmax.f32 %v1977_v12, 0.0  ;;  %2762 = vmatmul.f32.vlgmr.msrb.gmra.mxu1 %v7385_v56  ;;  %v2667_v12 = vld [vmem:[%s8967_s7 + $0x10f0] sm:$0xff]  ;;  %v2442_v4 = vld [vmem:[%s8967_s7 + $0x9e8] sm:$0xff] }
 0x374   :  { %2910 = vmatpush.msrb.mxu0 %v2235_v34  ;;  %2930 = vmatpush.msrb.mxu1 %v2406_v8  ;;  %v2127_v34 = vld [vmem:[%s8967_s7 + $0x10] sm:$0xff]  ;;  %v2298_v8 = vld [vmem:[%s8967_s7 + $0x568] sm:$0xff] }
 0x375   :  { %2742 = vmatmul.f32.gmra.mxu0 %v7394_v2 }
 0x376   :  { %2911 = vmatpush.msrb.mxu0 %v2226_v46  ;;  %2931 = vmatpush.msrb.mxu1 %v2397_v16  ;;  %v2022_v55 = vpop.f32.mrf.mxu3  ;;  %v2263_v46 = vld [vmem:[%s8967_s7 + $0x450] sm:$0xff]  ;;  %v2289_v16 = vld [vmem:[%s8967_s7 + $0x520] sm:$0xff] }
 0x377   :  { %v2023_v49 = vadd.f32 %v2022_v55, %v2000_v45  ;;  %v2091_v6 = vpop.f32.mrf.mxu2  ;;  %v2478_v45 = vld [vmem:[%s8967_s7 + $0xb08] sm:$0xff]  ;;  %v2280_v55 = vld [vmem:[%s8967_s7 + $0x4d8] sm:$0xff] }
 0x378   :  { %2912 = vmatpush.msrb.mxu0 %v2217_v53  ;;  %2932 = vmatpush.msrb.mxu1 %v2388_v33  ;;  %v2065_v60 = vpop.f32.mrf.mxu1  ;;  %v2092_v38 = vadd.f32 %v2091_v6, %v1928_v21  ;;  %v2649_v53 = vld [vmem:[%s8967_s7 + $0x1060] sm:$0xff]  ;;  %v2254_v33 = vld [vmem:[%s8967_s7 + $0x408] sm:$0xff]  ;;  %v2236_v21 = vld [vmem:[%s8967_s7 + $0x378] sm:$0xff] }
 0x379   :  { %v7417_v20 = vmax.f32 %v2023_v49, 0.0  ;;  %v2066_v62 = vadd.f32 %v2065_v60, %v2043_v14  ;;  %v2469_v14 = vld [vmem:[%s8967_s7 + $0xac0] sm:$0xff]  ;;  %v2640_v49 = vld [vmem:[%s8967_s7 + $0x1018] sm:$0xff]  ;;  %v2631_v60 = vld [vmem:[%s8967_s7 + $0xfd0] sm:$0xff] }
 0x37a   :  { %2913 = vmatpush.msrb.mxu0 %v2208_v5  ;;  %2933 = vmatpush.msrb.mxu1 %v2379_v29  ;;  %v2245_v5 = vld [vmem:[%s8967_s7 + $0x3c0] sm:$0xff]  ;;  %v2271_v29 = vld [vmem:[%s8967_s7 + $0x490] sm:$0xff]  ;;  %v2362_v6 = vld [vmem:[%s8967_s7 + $0x768] sm:$0xff] }
 0x37b   :  { %v7425_v0 = vmax.f32 %v2066_v62, 0.0  ;;  %2765 = vmatmul.f32.gmra.mxu1 %v7417_v20  ;;  %v2407_v62 = vld [vmem:[%s8967_s7 + $0x8d0] sm:$0xff] }
 0x37c   :  { %2914 = vmatpush.msrb.mxu0 %v2199_v40  ;;  %2934 = vmatpush.msrb.mxu1 %v2370_v18  ;;  %v2451_v40 = vld [vmem:[%s8967_s7 + $0xa30] sm:$0xff]  ;;  %v2622_v18 = vld [vmem:[%s8967_s7 + $0xf88] sm:$0xff] }
 0x37d   :  { %2785 = vmatmul.f32.vlgmr.msrb.gmra.mxu2 %v7425_v0  ;;  %2831 = vmatmul.f32.vlgmr.msra.gmra.mxu0 %v7373_v57 }
 0x37e   :  { %2915 = vmatpush.msrb.mxu0 %v2190_v1  ;;  %2935 = vmatpush.msrb.mxu1 %v2361_v25  ;;  %v2111_v17 = vpop.f32.mrf.mxu3  ;;  %v2227_v1 = vld [vmem:[%s8967_s7 + $0x330] sm:$0xff]  ;;  %v2398_v25 = vld [vmem:[%s8967_s7 + $0x888] sm:$0xff] }
 0x37f   :  { %2953 = vmatpush.msrb.mxu2 %v2550_v19  ;;  %v2112_v43 = vadd.f32 %v2111_v17, %v2089_v42  ;;  %v2613_v19 = vld [vmem:[%s8967_s7 + $0xf40] sm:$0xff]  ;;  %v2218_v42 = vld [vmem:[%s8967_s7 + $0x2e8] sm:$0xff]  ;;  %v2604_v17 = vld [vmem:[%s8967_s7 + $0xef8] sm:$0xff] }
 0x380   :  { %2916 = vmatpush.msrb.mxu0 %v2181_v3  ;;  %2936 = vmatpush.msrb.mxu1 %v2352_v7  ;;  %v2068_v31 = vpop.f32.mrf.mxu1  ;;  %v2389_v3 = vld [vmem:[%s8967_s7 + $0x840] sm:$0xff] }
 0x381   :  { %v7457_v51 = vmax.f32 %v2112_v43, 0.0  ;;  %2954 = vmatpush.msrb.mxu2 %v2541_v32  ;;  %v2069_v22 = vadd.f32 %v2068_v31, %v2046_v11  ;;  %v2433_v7 = vld [vmem:[%s8967_s7 + $0x9a0] sm:$0xff]  ;;  %v2380_v11 = vld [vmem:[%s8967_s7 + $0x7f8] sm:$0xff]  ;;  %v2371_v31 = vld [vmem:[%s8967_s7 + $0x7b0] sm:$0xff] }
 0x382   :  { %2917 = vmatpush.msrb.mxu0 %v2172_v58  ;;  %2937 = vmatpush.msrb.mxu1 %v2343_v28  ;;  %v2209_v32 = vld [vmem:[%s8967_s7 + $0x2a0] sm:$0xff]  ;;  %v2424_v43 = vld [vmem:[%s8967_s7 + $0x958] sm:$0xff]  ;;  %v2595_v58 = vld [vmem:[%s8967_s7 + $0xeb0] sm:$0xff] }
 0x383   :  { %v7468_v27 = vmax.f32 %v2069_v22, 0.0  ;;  %2955 = vmatpush.msrb.mxu2 %v2532_v47  ;;  %2808 = vmatmul.f32.vlgmr.msrb.gmra.mxu3 %v7457_v51  ;;  %v2200_v28 = vld [vmem:[%s8967_s7 + $0x258] sm:$0xff]  ;;  %v2415_v47 = vld [vmem:[%s8967_s7 + $0x910] sm:$0xff]  ;;  %v2586_v22 = vld [vmem:[%s8967_s7 + $0xe68] sm:$0xff] }
 0x384   :  { %2854 = vmatmul.f32.vlgmr.msra.gmra.mxu1 %v7385_v56  ;;  %2918 = vmatpush.msrb.mxu0 %v2163_v24  ;;  %v2191_v24 = vld [vmem:[%s8967_s7 + $0x210] sm:$0xff] }
 0x385   :  { %2938 = vmatpush.msrb.mxu1 %v2334_v26  ;;  %2956 = vmatpush.msrb.mxu2 %v2523_v30  ;;  %v2551_v26 = vld [vmem:[%s8967_s7 + $0xd50] sm:$0xff]  ;;  %v2577_v30 = vld [vmem:[%s8967_s7 + $0xe20] sm:$0xff] }
 0x386   :  { %2976 = vmatpush.msrb.mxu3 %v2694_v36  ;;  %2788 = vmatmul.f32.gmra.mxu2 %v7468_v27  ;;  %v2114_v41 = vpop.f32.mrf.mxu3  ;;  %v2182_v36 = vld [vmem:[%s8967_s7 + $0x1c8] sm:$0xff] }
 0x387   :  { %2834 = vmatmul.f32.gmra.mxu0 %v7394_v2  ;;  %2939 = vmatpush.msrb.mxu1 %v2325_v37  ;;  %v2115_v23 = vadd.f32 %v2114_v41, %v2092_v38  ;;  %v2353_v37 = vld [vmem:[%s8967_s7 + $0x720] sm:$0xff]  ;;  %v2542_v38 = vld [vmem:[%s8967_s7 + $0xd08] sm:$0xff] }
 0x388   :  { %2919 = vmatpush.msrb.mxu0 %v2154_v39  ;;  %2957 = vmatpush.msrb.mxu2 %v2514_v35  ;;  %v2568_v39 = vld [vmem:[%s8967_s7 + $0xdd8] sm:$0xff]  ;;  %v2173_v35 = vld [vmem:[%s8967_s7 + $0x180] sm:$0xff] }
 0x389   :  { %2977 = vmatpush.msrb.mxu3 %v2685_v54  ;;  %2940 = vmatpush.msrb.mxu1 %v2316_v52  ;;  %v7510_v48 = vmax.f32 %v2115_v23, 0.0  ;;  %v2344_v54 = vld [vmem:[%s8967_s7 + $0x6d8] sm:$0xff]  ;;  %v2533_v41 = vld [vmem:[%s8967_s7 + $0xcc0] sm:$0xff]  ;;  %v2559_v52 = vld [vmem:[%s8967_s7 + $0xd90] sm:$0xff] }
 0x38a   :  { %2920 = vmatpush.msrb.mxu0 %v2145_v44  ;;  %2958 = vmatpush.msrb.mxu2 %v2505_v13  ;;  %v2164_v23 = vld [vmem:[%s8967_s7 + $0x138] sm:$0xff]  ;;  %v2335_v44 = vld [vmem:[%s8967_s7 + $0x690] sm:$0xff] }
 0x38b   :  { %2978 = vmatpush.msrb.mxu3 %v2676_v10  ;;  %2941 = vmatpush.msrb.mxu1 %v2307_v59  ;;  %v2524_v13 = vld [vmem:[%s8967_s7 + $0xc78] sm:$0xff]  ;;  %v2695_v10 = vld [vmem:[%s8967_s7 + $0x11d0] sm:$0xff] }
 0x38c   :  { %2921 = vmatpush.msrb.mxu0 %v2136_v9  ;;  %2959 = vmatpush.msrb.mxu2 %v2496_v61  ;;  %v2155_v59 = vld [vmem:[%s8967_s7 + $0xf0] sm:$0xff]  ;;  %v2326_v9 = vld [vmem:[%s8967_s7 + $0x648] sm:$0xff] }
 0x38d   :  { %2979 = vmatpush.msrb.mxu3 %v2667_v12  ;;  %2857 = vmatmul.f32.gmra.mxu1 %v7417_v20  ;;  %v2515_v61 = vld [vmem:[%s8967_s7 + $0xc30] sm:$0xff]  ;;  %v2686_v12 = vld [vmem:[%s8967_s7 + $0x1188] sm:$0xff] }
 0x38e   :  { %2811 = vmatmul.f32.gmra.mxu3 %v7510_v48  ;;  %2922 = vmatpush.msrb.mxu0 %v2127_v34  ;;  %v2146_v34 = vld [vmem:[%s8967_s7 + $0xa8] sm:$0xff] }
 0x38f   :  { %2942 = vmatpush.msrb.mxu1 %v2298_v8  ;;  %2960 = vmatpush.msrb.mxu2 %v2487_v63  ;;  %v2317_v8 = vld [vmem:[%s8967_s7 + $0x600] sm:$0xff]  ;;  %v2506_v63 = vld [vmem:[%s8967_s7 + $0xbe8] sm:$0xff] }
 0x390   :  { %2980 = vmatpush.msrb.mxu3 %v2658_v50  ;;  %2999 = vmatpush.msra.mxu0 %v2263_v46  ;;  %v2677_v50 = vld [vmem:[%s8967_s7 + $0x1140] sm:$0xff] }
 0x391   :  { %2877 = vmatmul.f32.vlgmr.msra.gmra.mxu2 %v7425_v0  ;;  %2923 = vmatmul.f32.vlgmr.msrb.gmra.mxu0 %v7373_v57  ;;  %v2137_v46 = vld [vmem:[%s8967_s7 + $0x60] sm:$0xff] }
 0x392   :  { %2943 = vmatpush.msrb.mxu1 %v2289_v16  ;;  %2961 = vmatpush.msrb.mxu2 %v2478_v45  ;;  %v2308_v16 = vld [vmem:[%s8967_s7 + $0x5b8] sm:$0xff]  ;;  %v2497_v45 = vld [vmem:[%s8967_s7 + $0xba0] sm:$0xff] }
 0x393   :  { %2981 = vmatpush.msrb.mxu3 %v2649_v53  ;;  %3000 = vmatpush.msra.mxu0 %v2254_v33  ;;  %v2668_v53 = vld [vmem:[%s8967_s7 + $0x10f8] sm:$0xff] }
 0x394   :  { %2944 = vmatpush.msrb.mxu1 %v2280_v55  ;;  %2962 = vmatpush.msrb.mxu2 %v2469_v14  ;;  %v2128_v33 = vld [vmem:[%s8967_s7 + $0x18] sm:$0xff]  ;;  %v2299_v55 = vld [vmem:[%s8967_s7 + $0x570] sm:$0xff] }
 0x395   :  { %2982 = vmatpush.msrb.mxu3 %v2640_v49  ;;  %3001 = vmatpush.msra.mxu0 %v2245_v5  ;;  %v2488_v14 = vld [vmem:[%s8967_s7 + $0xb58] sm:$0xff]  ;;  %v2659_v49 = vld [vmem:[%s8967_s7 + $0x10b0] sm:$0xff] }
 0x396   :  { %2945 = vmatpush.msrb.mxu1 %v2271_v29  ;;  %2963 = vmatpush.msrb.mxu2 %v2460_v15  ;;  %v2264_v5 = vld [vmem:[%s8967_s7 + $0x458] sm:$0xff]  ;;  %v2290_v29 = vld [vmem:[%s8967_s7 + $0x528] sm:$0xff]  ;;  %v2479_v15 = vld [vmem:[%s8967_s7 + $0xb10] sm:$0xff] }
 0x397   :  { %2983 = vmatpush.msrb.mxu3 %v2631_v60  ;;  %3002 = vmatpush.msra.mxu0 %v2236_v21  ;;  %v2650_v60 = vld [vmem:[%s8967_s7 + $0x1068] sm:$0xff]  ;;  %v2255_v21 = vld [vmem:[%s8967_s7 + $0x410] sm:$0xff] }
 0x398   :  { %3022 = vmatpush.msra.mxu1 %v2407_v62  ;;  %2900 = vmatmul.f32.vlgmr.msra.gmra.mxu3 %v7457_v51  ;;  %v2281_v62 = vld [vmem:[%s8967_s7 + $0x4e0] sm:$0xff] }
 0x399   :  { %2946 = vmatmul.f32.vlgmr.msrb.gmra.mxu1 %v7385_v56  ;;  %2964 = vmatpush.msrb.mxu2 %v2451_v40  ;;  %v2470_v40 = vld [vmem:[%s8967_s7 + $0xac8] sm:$0xff] }
 0x39a   :  { %2984 = vmatpush.msrb.mxu3 %v2622_v18  ;;  %3003 = vmatpush.msra.mxu0 %v2227_v1  ;;  %v2641_v18 = vld [vmem:[%s8967_s7 + $0x1020] sm:$0xff]  ;;  %v2246_v1 = vld [vmem:[%s8967_s7 + $0x3c8] sm:$0xff] }
 0x39b   :  { %3023 = vmatpush.msra.mxu1 %v2398_v25  ;;  %2880 = vmatmul.f32.gmra.mxu2 %v7468_v27  ;;  %v2272_v25 = vld [vmem:[%s8967_s7 + $0x498] sm:$0xff] }
 0x39c   :  { %2926 = vmatmul.f32.gmra.mxu0 %v7394_v2  ;;  %2965 = vmatpush.msrb.mxu2 %v2442_v4  ;;  %v2461_v4 = vld [vmem:[%s8967_s7 + $0xa80] sm:$0xff] }
 0x39d   :  { %2985 = vmatpush.msrb.mxu3 %v2613_v19  ;;  %3004 = vmatpush.msra.mxu0 %v2218_v42  ;;  %v2632_v19 = vld [vmem:[%s8967_s7 + $0xfd8] sm:$0xff]  ;;  %v2237_v42 = vld [vmem:[%s8967_s7 + $0x380] sm:$0xff] }
 0x39e   :  { %3024 = vmatpush.msra.mxu1 %v2389_v3  ;;  %2966 = vmatpush.msrb.mxu2 %v2433_v7  ;;  %v2408_v3 = vld [vmem:[%s8967_s7 + $0x8d8] sm:$0xff] }
 0x39f   :  { %2986 = vmatpush.msrb.mxu3 %v2604_v17  ;;  %3005 = vmatpush.msra.mxu0 %v2209_v32  ;;  %v2452_v7 = vld [vmem:[%s8967_s7 + $0xa38] sm:$0xff]  ;;  %v2623_v17 = vld [vmem:[%s8967_s7 + $0xf90] sm:$0xff] }
 0x3a0   :  { %3025 = vmatpush.msra.mxu1 %v2380_v11  ;;  %2967 = vmatpush.msrb.mxu2 %v2424_v43  ;;  %v2228_v32 = vld [vmem:[%s8967_s7 + $0x338] sm:$0xff]  ;;  %v2399_v11 = vld [vmem:[%s8967_s7 + $0x890] sm:$0xff] }
 0x3a1   :  { %2987 = vmatpush.msrb.mxu3 %v2595_v58  ;;  %3006 = vmatpush.msra.mxu0 %v2200_v28  ;;  %v2443_v43 = vld [vmem:[%s8967_s7 + $0x9f0] sm:$0xff]  ;;  %v2614_v58 = vld [vmem:[%s8967_s7 + $0xf48] sm:$0xff] }
 0x3a2   :  { %3026 = vmatpush.msra.mxu1 %v2371_v31  ;;  %2903 = vmatmul.f32.gmra.mxu3 %v7510_v48  ;;  %v2219_v28 = vld [vmem:[%s8967_s7 + $0x2f0] sm:$0xff]  ;;  %v2390_v31 = vld [vmem:[%s8967_s7 + $0x848] sm:$0xff] }
 0x3a3   :  { %2949 = vmatmul.f32.gmra.mxu1 %v7417_v20  ;;  %2968 = vmatpush.msrb.mxu2 %v2415_v47  ;;  %v2434_v47 = vld [vmem:[%s8967_s7 + $0x9a8] sm:$0xff] }
 0x3a4   :  { %2988 = vmatpush.msrb.mxu3 %v2586_v22  ;;  %3007 = vmatpush.msra.mxu0 %v2191_v24  ;;  %v2605_v22 = vld [vmem:[%s8967_s7 + $0xf00] sm:$0xff]  ;;  %v2210_v24 = vld [vmem:[%s8967_s7 + $0x2a8] sm:$0xff] }
 0x3a5   :  { %3027 = vmatpush.msra.mxu1 %v2362_v6  ;;  %3045 = vmatpush.msra.mxu2 %v2551_v26  ;;  %v2381_v6 = vld [vmem:[%s8967_s7 + $0x800] sm:$0xff] }
 0x3a6   :  { %2969 = vmatmul.f32.vlgmr.msrb.gmra.mxu2 %v7425_v0  ;;  %2989 = vmatpush.msrb.mxu3 %v2577_v30  ;;  %v2425_v26 = vld [vmem:[%s8967_s7 + $0x960] sm:$0xff]  ;;  %v2596_v30 = vld [vmem:[%s8967_s7 + $0xeb8] sm:$0xff] }
 0x3a7   :  { %3008 = vmatpush.msra.mxu0 %v2182_v36  ;;  %3028 = vmatpush.msra.mxu1 %v2353_v37  ;;  %v2201_v36 = vld [vmem:[%s8967_s7 + $0x260] sm:$0xff]  ;;  %v2372_v37 = vld [vmem:[%s8967_s7 + $0x7b8] sm:$0xff] }
 0x3a8   :  { %3046 = vmatpush.msra.mxu2 %v2542_v38  ;;  %2990 = vmatpush.msrb.mxu3 %v2568_v39  ;;  %v2416_v38 = vld [vmem:[%s8967_s7 + $0x918] sm:$0xff]  ;;  %v2587_v39 = vld [vmem:[%s8967_s7 + $0xe70] sm:$0xff] }
 0x3a9   :  { %3009 = vmatpush.msra.mxu0 %v2173_v35  ;;  %3029 = vmatpush.msra.mxu1 %v2344_v54  ;;  %v2192_v35 = vld [vmem:[%s8967_s7 + $0x218] sm:$0xff]  ;;  %v2363_v54 = vld [vmem:[%s8967_s7 + $0x770] sm:$0xff] }
 0x3aa   :  { %3047 = vmatpush.msra.mxu2 %v2533_v41  ;;  %2991 = vmatpush.msrb.mxu3 %v2559_v52  ;;  %v2552_v41 = vld [vmem:[%s8967_s7 + $0xd58] sm:$0xff]  ;;  %v2578_v52 = vld [vmem:[%s8967_s7 + $0xe28] sm:$0xff] }
 0x3ab   :  { %3010 = vmatpush.msra.mxu0 %v2164_v23  ;;  %3030 = vmatpush.msra.mxu1 %v2335_v44  ;;  %v2183_v23 = vld [vmem:[%s8967_s7 + $0x1d0] sm:$0xff]  ;;  %v2354_v44 = vld [vmem:[%s8967_s7 + $0x728] sm:$0xff] }
 0x3ac   :  { %3048 = vmatpush.msra.mxu2 %v2524_v13  ;;  %3068 = vmatpush.msra.mxu3 %v2695_v10  ;;  %v2543_v13 = vld [vmem:[%s8967_s7 + $0xd10] sm:$0xff]  ;;  %v2569_v10 = vld [vmem:[%s8967_s7 + $0xde0] sm:$0xff] }
 0x3ad   :  { %2992 = vmatmul.f32.vlgmr.msrb.gmra.mxu3 %v7457_v51  ;;  %3011 = vmatpush.msra.mxu0 %v2155_v59  ;;  %v2174_v59 = vld [vmem:[%s8967_s7 + $0x188] sm:$0xff] }
 0x3ae   :  { %3031 = vmatpush.msra.mxu1 %v2326_v9  ;;  %3049 = vmatpush.msra.mxu2 %v2515_v61  ;;  %v2345_v9 = vld [vmem:[%s8967_s7 + $0x6e0] sm:$0xff]  ;;  %v2534_v61 = vld [vmem:[%s8967_s7 + $0xcc8] sm:$0xff] }
 0x3af   :  { %3069 = vmatpush.msra.mxu3 %v2686_v12  ;;  %2972 = vmatmul.f32.gmra.mxu2 %v7468_v27  ;;  %v2560_v12 = vld [vmem:[%s8967_s7 + $0xd98] sm:$0xff] }
 0x3b0   :  { %3012 = vmatpush.msra.mxu0 %v2146_v34  ;;  %3032 = vmatpush.msra.mxu1 %v2317_v8  ;;  %v2165_v34 = vld [vmem:[%s8967_s7 + $0x140] sm:$0xff]  ;;  %v2336_v8 = vld [vmem:[%s8967_s7 + $0x698] sm:$0xff] }
 0x3b1   :  { %3050 = vmatpush.msra.mxu2 %v2506_v63  ;;  %3070 = vmatpush.msra.mxu3 %v2677_v50  ;;  %v2525_v63 = vld [vmem:[%s8967_s7 + $0xc80] sm:$0xff]  ;;  %v2696_v50 = vld [vmem:[%s8967_s7 + $0x11d8] sm:$0xff] }
 0x3b2   :  { %3013 = vmatpush.msra.mxu0 %v2137_v46  ;;  %3033 = vmatpush.msra.mxu1 %v2308_v16  ;;  %v2156_v46 = vld [vmem:[%s8967_s7 + $0xf8] sm:$0xff]  ;;  %v2327_v16 = vld [vmem:[%s8967_s7 + $0x650] sm:$0xff] }
 0x3b3   :  { %3051 = vmatpush.msra.mxu2 %v2497_v45  ;;  %3071 = vmatpush.msra.mxu3 %v2668_v53  ;;  %v2516_v45 = vld [vmem:[%s8967_s7 + $0xc38] sm:$0xff]  ;;  %v2687_v53 = vld [vmem:[%s8967_s7 + $0x1190] sm:$0xff] }
 0x3b4   :  { %3014 = vmatpush.msra.mxu0 %v2128_v33  ;;  %3034 = vmatpush.msra.mxu1 %v2299_v55  ;;  %v2147_v33 = vld [vmem:[%s8967_s7 + $0xb0] sm:$0xff]  ;;  %v2318_v55 = vld [vmem:[%s8967_s7 + $0x608] sm:$0xff] }
 0x3b5   :  { %3052 = vmatpush.msra.mxu2 %v2488_v14  ;;  %3072 = vmatpush.msra.mxu3 %v2659_v49  ;;  %v2507_v14 = vld [vmem:[%s8967_s7 + $0xbf0] sm:$0xff]  ;;  %v2678_v49 = vld [vmem:[%s8967_s7 + $0x1148] sm:$0xff] }
 0x3b6   :  { %2995 = vmatmul.f32.gmra.mxu3 %v7510_v48  ;;  %3015 = vmatmul.f32.vlgmr.msra.gmra.mxu0 %v7373_v57 }
 0x3b7   :  { %3091 = vmatpush.msrb.mxu0 %v2264_v5  ;;  %3035 = vmatpush.msra.mxu1 %v2290_v29  ;;  %v2138_v5 = vld [vmem:[%s8967_s7 + $0x68] sm:$0xff]  ;;  %v2309_v29 = vld [vmem:[%s8967_s7 + $0x5c0] sm:$0xff] }
 0x3b8   :  { %3053 = vmatpush.msra.mxu2 %v2479_v15  ;;  %3073 = vmatpush.msra.mxu3 %v2650_v60  ;;  %v2498_v15 = vld [vmem:[%s8967_s7 + $0xba8] sm:$0xff]  ;;  %v2669_v60 = vld [vmem:[%s8967_s7 + $0x1100] sm:$0xff] }
 0x3b9   :  { %3092 = vmatpush.msrb.mxu0 %v2255_v21  ;;  %3036 = vmatpush.msra.mxu1 %v2281_v62  ;;  %v2129_v21 = vld [vmem:[%s8967_s7 + $0x20] sm:$0xff]  ;;  %v2300_v62 = vld [vmem:[%s8967_s7 + $0x578] sm:$0xff] }
 0x3ba   :  { %3054 = vmatpush.msra.mxu2 %v2470_v40  ;;  %3074 = vmatpush.msra.mxu3 %v2641_v18  ;;  %v2489_v40 = vld [vmem:[%s8967_s7 + $0xb60] sm:$0xff]  ;;  %v2660_v18 = vld [vmem:[%s8967_s7 + $0x10b8] sm:$0xff] }
 0x3bb   :  { %3093 = vmatpush.msrb.mxu0 %v2246_v1  ;;  %3037 = vmatpush.msra.mxu1 %v2272_v25  ;;  %v2265_v1 = vld [vmem:[%s8967_s7 + $0x460] sm:$0xff]  ;;  %v2291_v25 = vld [vmem:[%s8967_s7 + $0x530] sm:$0xff] }
 0x3bc   :  { %3055 = vmatpush.msra.mxu2 %v2461_v4  ;;  %3075 = vmatpush.msra.mxu3 %v2632_v19  ;;  %v2480_v4 = vld [vmem:[%s8967_s7 + $0xb18] sm:$0xff]  ;;  %v2651_v19 = vld [vmem:[%s8967_s7 + $0x1070] sm:$0xff] }
 0x3bd   :  { %3038 = vmatmul.f32.vlgmr.msra.gmra.mxu1 %v7385_v56  ;;  %3094 = vmatpush.msrb.mxu0 %v2237_v42  ;;  %v2256_v42 = vld [vmem:[%s8967_s7 + $0x418] sm:$0xff] }
 0x3be   :  { %3114 = vmatpush.msrb.mxu1 %v2408_v3  ;;  %3056 = vmatpush.msra.mxu2 %v2452_v7  ;;  %v2282_v3 = vld [vmem:[%s8967_s7 + $0x4e8] sm:$0xff]  ;;  %v2471_v7 = vld [vmem:[%s8967_s7 + $0xad0] sm:$0xff] }
 0x3bf   :  { %3076 = vmatpush.msra.mxu3 %v2623_v17  ;;  %3018 = vmatmul.f32.gmra.mxu0 %v7394_v2  ;;  %v2642_v17 = vld [vmem:[%s8967_s7 + $0x1028] sm:$0xff] }
 0x3c0   :  { %3095 = vmatpush.msrb.mxu0 %v2228_v32  ;;  %3115 = vmatpush.msrb.mxu1 %v2399_v11  ;;  %v2247_v32 = vld [vmem:[%s8967_s7 + $0x3d0] sm:$0xff]  ;;  %v2273_v11 = vld [vmem:[%s8967_s7 + $0x4a0] sm:$0xff] }
 0x3c1   :  { %3057 = vmatpush.msra.mxu2 %v2443_v43  ;;  %3077 = vmatpush.msra.mxu3 %v2614_v58  ;;  %v2462_v43 = vld [vmem:[%s8967_s7 + $0xa88] sm:$0xff]  ;;  %v2633_v58 = vld [vmem:[%s8967_s7 + $0xfe0] sm:$0xff] }
 0x3c2   :  { %3096 = vmatpush.msrb.mxu0 %v2219_v28  ;;  %3116 = vmatpush.msrb.mxu1 %v2390_v31  ;;  %v2238_v28 = vld [vmem:[%s8967_s7 + $0x388] sm:$0xff]  ;;  %v2409_v31 = vld [vmem:[%s8967_s7 + $0x8e0] sm:$0xff] }
 0x3c3   :  { %3058 = vmatpush.msra.mxu2 %v2434_v47  ;;  %3078 = vmatpush.msra.mxu3 %v2605_v22  ;;  %v2453_v47 = vld [vmem:[%s8967_s7 + $0xa40] sm:$0xff]  ;;  %v2624_v22 = vld [vmem:[%s8967_s7 + $0xf98] sm:$0xff] }
 0x3c4   :  { %3097 = vmatpush.msrb.mxu0 %v2210_v24  ;;  %3117 = vmatpush.msrb.mxu1 %v2381_v6  ;;  %v2229_v24 = vld [vmem:[%s8967_s7 + $0x340] sm:$0xff]  ;;  %v2400_v6 = vld [vmem:[%s8967_s7 + $0x898] sm:$0xff] }
 0x3c5   :  { %3059 = vmatpush.msra.mxu2 %v2425_v26  ;;  %3079 = vmatpush.msra.mxu3 %v2596_v30  ;;  %v2444_v26 = vld [vmem:[%s8967_s7 + $0x9f8] sm:$0xff]  ;;  %v2615_v30 = vld [vmem:[%s8967_s7 + $0xf50] sm:$0xff] }
 0x3c6   :  { %3041 = vmatmul.f32.gmra.mxu1 %v7417_v20  ;;  %3098 = vmatpush.msrb.mxu0 %v2201_v36  ;;  %v2220_v36 = vld [vmem:[%s8967_s7 + $0x2f8] sm:$0xff] }
 0x3c7   :  { %3118 = vmatpush.msrb.mxu1 %v2372_v37  ;;  %3060 = vmatpush.msra.mxu2 %v2416_v38  ;;  %v2391_v37 = vld [vmem:[%s8967_s7 + $0x850] sm:$0xff] }
 0x3c8   :  { %3080 = vmatpush.msra.mxu3 %v2587_v39  ;;  %3061 = vmatmul.f32.vlgmr.msra.gmra.mxu2 %v7425_v0  ;;  %v2435_v38 = vld [vmem:[%s8967_s7 + $0x9b0] sm:$0xff]  ;;  %v2606_v39 = vld [vmem:[%s8967_s7 + $0xf08] sm:$0xff] }
 0x3c9   :  { %3099 = vmatpush.msrb.mxu0 %v2192_v35  ;;  %3119 = vmatpush.msrb.mxu1 %v2363_v54  ;;  %v2211_v35 = vld [vmem:[%s8967_s7 + $0x2b0] sm:$0xff]  ;;  %v2382_v54 = vld [vmem:[%s8967_s7 + $0x808] sm:$0xff] }
 0x3ca   :  { %3137 = vmatpush.msrb.mxu2 %v2552_v41  ;;  %3081 = vmatpush.msra.mxu3 %v2578_v52  ;;  %v2426_v41 = vld [vmem:[%s8967_s7 + $0x968] sm:$0xff]  ;;  %v2597_v52 = vld [vmem:[%s8967_s7 + $0xec0] sm:$0xff] }
 0x3cb   :  { %3100 = vmatpush.msrb.mxu0 %v2183_v23  ;;  %3120 = vmatpush.msrb.mxu1 %v2354_v44  ;;  %v2202_v23 = vld [vmem:[%s8967_s7 + $0x268] sm:$0xff]  ;;  %v2373_v44 = vld [vmem:[%s8967_s7 + $0x7c0] sm:$0xff] }
 0x3cc   :  { %3138 = vmatpush.msrb.mxu2 %v2543_v13  ;;  %3082 = vmatpush.msra.mxu3 %v2569_v10  ;;  %v2417_v13 = vld [vmem:[%s8967_s7 + $0x920] sm:$0xff]  ;;  %v2588_v10 = vld [vmem:[%s8967_s7 + $0xe78] sm:$0xff] }
 0x3cd   :  { %3101 = vmatpush.msrb.mxu0 %v2174_v59  ;;  %3121 = vmatpush.msrb.mxu1 %v2345_v9  ;;  %v2193_v59 = vld [vmem:[%s8967_s7 + $0x220] sm:$0xff]  ;;  %v2364_v9 = vld [vmem:[%s8967_s7 + $0x778] sm:$0xff] }
 0x3ce   :  { %3139 = vmatpush.msrb.mxu2 %v2534_v61  ;;  %3083 = vmatpush.msra.mxu3 %v2560_v12  ;;  %v2553_v61 = vld [vmem:[%s8967_s7 + $0xd60] sm:$0xff]  ;;  %v2579_v12 = vld [vmem:[%s8967_s7 + $0xe30] sm:$0xff] }
 0x3cf   :  { %3084 = vmatmul.f32.vlgmr.msra.gmra.mxu3 %v7457_v51  ;;  %3102 = vmatpush.msrb.mxu0 %v2165_v34  ;;  %v2184_v34 = vld [vmem:[%s8967_s7 + $0x1d8] sm:$0xff] }
 0x3d0   :  { %3122 = vmatpush.msrb.mxu1 %v2336_v8  ;;  %3140 = vmatpush.msrb.mxu2 %v2525_v63  ;;  %v2355_v8 = vld [vmem:[%s8967_s7 + $0x730] sm:$0xff]  ;;  %v2544_v63 = vld [vmem:[%s8967_s7 + $0xd18] sm:$0xff] }
 0x3d1   :  { %3160 = vmatpush.msrb.mxu3 %v2696_v50  ;;  %3064 = vmatmul.f32.gmra.mxu2 %v7468_v27  ;;  %v2570_v50 = vld [vmem:[%s8967_s7 + $0xde8] sm:$0xff] }
 0x3d2   :  { %3103 = vmatpush.msrb.mxu0 %v2156_v46  ;;  %3123 = vmatpush.msrb.mxu1 %v2327_v16  ;;  %v2175_v46 = vld [vmem:[%s8967_s7 + $0x190] sm:$0xff]  ;;  %v2346_v16 = vld [vmem:[%s8967_s7 + $0x6e8] sm:$0xff] }
 0x3d3   :  { %3141 = vmatpush.msrb.mxu2 %v2516_v45  ;;  %3161 = vmatpush.msrb.mxu3 %v2687_v53  ;;  %v2535_v45 = vld [vmem:[%s8967_s7 + $0xcd0] sm:$0xff]  ;;  %v2561_v53 = vld [vmem:[%s8967_s7 + $0xda0] sm:$0xff] }
 0x3d4   :  { %3104 = vmatpush.msrb.mxu0 %v2147_v33  ;;  %3124 = vmatpush.msrb.mxu1 %v2318_v55  ;;  %v2166_v33 = vld [vmem:[%s8967_s7 + $0x148] sm:$0xff]  ;;  %v2337_v55 = vld [vmem:[%s8967_s7 + $0x6a0] sm:$0xff] }
 0x3d5   :  { %3142 = vmatpush.msrb.mxu2 %v2507_v14  ;;  %3162 = vmatpush.msrb.mxu3 %v2678_v49  ;;  %v2526_v14 = vld [vmem:[%s8967_s7 + $0xc88] sm:$0xff]  ;;  %v2697_v49 = vld [vmem:[%s8967_s7 + $0x11e0] sm:$0xff] }
 0x3d6   :  { %3105 = vmatpush.msrb.mxu0 %v2138_v5  ;;  %3125 = vmatpush.msrb.mxu1 %v2309_v29  ;;  %v2157_v5 = vld [vmem:[%s8967_s7 + $0x100] sm:$0xff]  ;;  %v2328_v29 = vld [vmem:[%s8967_s7 + $0x658] sm:$0xff] }
 0x3d7   :  { %3143 = vmatpush.msrb.mxu2 %v2498_v15  ;;  %3163 = vmatpush.msrb.mxu3 %v2669_v60  ;;  %v2517_v15 = vld [vmem:[%s8967_s7 + $0xc40] sm:$0xff]  ;;  %v2688_v60 = vld [vmem:[%s8967_s7 + $0x1198] sm:$0xff] }
 0x3d8   :  { %3087 = vmatmul.f32.gmra.mxu3 %v7510_v48  ;;  %3106 = vmatpush.msrb.mxu0 %v2129_v21  ;;  %v2148_v21 = vld [vmem:[%s8967_s7 + $0xb8] sm:$0xff] }
 0x3d9   :  { %3126 = vmatpush.msrb.mxu1 %v2300_v62  ;;  %3144 = vmatpush.msrb.mxu2 %v2489_v40  ;;  %v2319_v62 = vld [vmem:[%s8967_s7 + $0x610] sm:$0xff]  ;;  %v2508_v40 = vld [vmem:[%s8967_s7 + $0xbf8] sm:$0xff] }
 0x3da   :  { %3164 = vmatpush.msrb.mxu3 %v2660_v18  ;;  %3107 = vmatmul.f32.vlgmr.msrb.gmra.mxu0 %v7373_v57  ;;  %v2679_v18 = vld [vmem:[%s8967_s7 + $0x1150] sm:$0xff] }
 0x3db   :  { %3183 = vmatpush.msra.mxu0 %v2265_v1  ;;  %3127 = vmatpush.msrb.mxu1 %v2291_v25  ;;  %v2139_v1 = vld [vmem:[%s8967_s7 + $0x70] sm:$0xff]  ;;  %v2310_v25 = vld [vmem:[%s8967_s7 + $0x5c8] sm:$0xff] }
 0x3dc   :  { %3145 = vmatpush.msrb.mxu2 %v2480_v4  ;;  %3165 = vmatpush.msrb.mxu3 %v2651_v19  ;;  %v2499_v4 = vld [vmem:[%s8967_s7 + $0xbb0] sm:$0xff]  ;;  %v2670_v19 = vld [vmem:[%s8967_s7 + $0x1108] sm:$0xff] }
 0x3dd   :  { %3184 = vmatpush.msra.mxu0 %v2256_v42  ;;  %3128 = vmatpush.msrb.mxu1 %v2282_v3  ;;  %v2130_v42 = vld [vmem:[%s8967_s7 + $0x28] sm:$0xff]  ;;  %v2301_v3 = vld [vmem:[%s8967_s7 + $0x580] sm:$0xff] }
 0x3de   :  { %3146 = vmatpush.msrb.mxu2 %v2471_v7  ;;  %3166 = vmatpush.msrb.mxu3 %v2642_v17  ;;  %v2490_v7 = vld [vmem:[%s8967_s7 + $0xb68] sm:$0xff]  ;;  %v8132_v17 = vld [vmem:[%s8968_s8] sm:$0xff] }
 0x3df   :  { %3185 = vmatpush.msra.mxu0 %v2247_v32  ;;  %3129 = vmatpush.msrb.mxu1 %v2273_v11  ;;  %v2661_v32 = vld [vmem:[%s8967_s7 + $0x10c0] sm:$0xff]  ;;  %v2266_v11 = vld [vmem:[%s8967_s7 + $0x468] sm:$0xff] }
 0x3e0   :  { %3147 = vmatpush.msrb.mxu2 %v2462_v43  ;;  %3167 = vmatpush.msrb.mxu3 %v2633_v58  ;;  %v2292_v43 = vld [vmem:[%s8967_s7 + $0x538] sm:$0xff]  ;;  %v2705_v58 = vperm.slane %v8132_v17, 0 }
 0x3e1   :  { %3130 = vmatmul.f32.vlgmr.msrb.gmra.mxu1 %v7385_v56  ;;  %3186 = vmatpush.msra.mxu0 %v2238_v28  ;;  %v2481_v28 = vld [vmem:[%s8967_s7 + $0xb20] sm:$0xff] }
 0x3e2   :  { %3206 = vmatpush.msra.mxu1 %v2409_v31  ;;  %3148 = vmatpush.msrb.mxu2 %v2453_v47  ;;  %v2652_v31 = vld [vmem:[%s8967_s7 + $0x1078] sm:$0xff] }
 0x3e3   :  { %3168 = vmatpush.msrb.mxu3 %v2624_v22  ;;  %3110 = vmatmul.f32.gmra.mxu0 %v7394_v2  ;;  %v2257_v22 = vld [vmem:[%s8967_s7 + $0x420] sm:$0xff] }
 0x3e4   :  { %3187 = vmatpush.msra.mxu0 %v2229_v24  ;;  %3207 = vmatpush.msra.mxu1 %v2400_v6  ;;  %v2283_v24 = vld [vmem:[%s8967_s7 + $0x4f0] sm:$0xff]  ;;  %v2472_v6 = vld [vmem:[%s8967_s7 + $0xad8] sm:$0xff] }
 0x3e5   :  { %3149 = vmatpush.msrb.mxu2 %v2444_v26  ;;  %3169 = vmatpush.msrb.mxu3 %v2615_v30  ;;  %v2643_v26 = vld [vmem:[%s8967_s7 + $0x1030] sm:$0xff]  ;;  %v2248_v30 = vld [vmem:[%s8967_s7 + $0x3d8] sm:$0xff] }
 0x3e6   :  { %3188 = vmatpush.msra.mxu0 %v2220_v36  ;;  %3208 = vmatpush.msra.mxu1 %v2391_v37  ;;  %v2274_v36 = vld [vmem:[%s8967_s7 + $0x4a8] sm:$0xff] }
 0x3e7   :  { %3150 = vmatpush.msrb.mxu2 %v2435_v38  ;;  %3170 = vmatpush.msrb.mxu3 %v2606_v39  ;;  %v2463_v39 = vld [vmem:[%s8967_s7 + $0xa90] sm:$0xff] }
 0x3e8   :  { %3189 = vmatpush.msra.mxu0 %v2211_v35  ;;  %3209 = vmatpush.msra.mxu1 %v2382_v54  ;;  %v2634_v35 = vld [vmem:[%s8967_s7 + $0xfe8] sm:$0xff]  ;;  %v2239_v54 = vld [vmem:[%s8967_s7 + $0x390] sm:$0xff] }
 0x3e9   :  { %3151 = vmatpush.msrb.mxu2 %v2426_v41  ;;  %3171 = vmatpush.msrb.mxu3 %v2597_v52  ;;  %v2410_v52 = vld [vmem:[%s8967_s7 + $0x8e8] sm:$0xff] }
 0x3ea   :  { %3133 = vmatmul.f32.gmra.mxu1 %v7417_v20  ;;  %3190 = vmatpush.msra.mxu0 %v2202_v23  ;;  %v2740_v47 = vpop.f32.mrf.mxu0 }
 0x3eb   :  { %3210 = vmatpush.msra.mxu1 %v2373_v44  ;;  %3152 = vmatpush.msrb.mxu2 %v2417_v13  ;;  %v2741_v38 = vadd.f32 %v2740_v47, %v2705_v58  ;;  %v2454_v44 = vld [vmem:[%s8967_s7 + $0xa48] sm:$0xff]  ;;  %v2625_v13 = vld [vmem:[%s8967_s7 + $0xfa0] sm:$0xff]  ;;  %v2347_v47 = vld [vmem:[%s8967_s7 + $0x6f0] sm:$0xff] }
 0x3ec   :  { %3172 = vmatpush.msrb.mxu3 %v2588_v10  ;;  %3153 = vmatmul.f32.vlgmr.msrb.gmra.mxu2 %v7425_v0  ;;  %v2230_v10 = vld [vmem:[%s8967_s7 + $0x348] sm:$0xff] }
 0x3ed   :  { %3191 = vmatpush.msra.mxu0 %v2193_v59  ;;  %3211 = vmatpush.msra.mxu1 %v2364_v9  ;;  %v2401_v59 = vld [vmem:[%s8967_s7 + $0x8a0] sm:$0xff] }
 0x3ee   :  { %3229 = vmatpush.msra.mxu2 %v2553_v61  ;;  %3173 = vmatpush.msrb.mxu3 %v2579_v12  ;;  %v2445_v61 = vld [vmem:[%s8967_s7 + $0xa00] sm:$0xff]  ;;  %v2616_v12 = vld [vmem:[%s8967_s7 + $0xf58] sm:$0xff] }
 0x3ef   :  { %3192 = vmatpush.msra.mxu0 %v2184_v34  ;;  %3212 = vmatpush.msra.mxu1 %v2355_v8  ;;  %v2221_v8 = vld [vmem:[%s8967_s7 + $0x300] sm:$0xff] }
 0x3f0   :  { %3230 = vmatpush.msra.mxu2 %v2544_v63  ;;  %3174 = vmatpush.msrb.mxu3 %v2570_v50  ;;  %v2763_v37 = vpop.f32.mrf.mxu1  ;;  %v2392_v63 = vld [vmem:[%s8967_s7 + $0x858] sm:$0xff] }
 0x3f1   :  { %3193 = vmatpush.msra.mxu0 %v2175_v46  ;;  %3213 = vmatpush.msra.mxu1 %v2346_v16  ;;  %v2764_v23 = vadd.f32 %v2763_v37, %v2741_v38  ;;  %v2436_v46 = vld [vmem:[%s8967_s7 + $0x9b8] sm:$0xff]  ;;  %v2607_v16 = vld [vmem:[%s8967_s7 + $0xf10] sm:$0xff]  ;;  %v2338_v37 = vld [vmem:[%s8967_s7 + $0x6a8] sm:$0xff] }
 0x3f2   :  { %3231 = vmatpush.msra.mxu2 %v2535_v45  ;;  %3175 = vmatpush.msrb.mxu3 %v2561_v53  ;;  %v2743_v45 = vpop.f32.mrf.mxu0  ;;  %v2212_v53 = vld [vmem:[%s8967_s7 + $0x2b8] sm:$0xff]  ;;  %v2527_v38 = vld [vmem:[%s8967_s7 + $0xc90] sm:$0xff] }
 0x3f3   :  { %3176 = vmatmul.f32.vlgmr.msrb.gmra.mxu3 %v7457_v51  ;;  %3194 = vmatpush.msra.mxu0 %v2166_v33  ;;  %v2383_v33 = vld [vmem:[%s8967_s7 + $0x810] sm:$0xff] }
 0x3f4   :  { %3214 = vmatpush.msra.mxu1 %v2337_v55  ;;  %3232 = vmatpush.msra.mxu2 %v2526_v14  ;;  %v2427_v14 = vld [vmem:[%s8967_s7 + $0x970] sm:$0xff] }
 0x3f5   :  { %3252 = vmatpush.msra.mxu3 %v2697_v49  ;;  %3156 = vmatmul.f32.gmra.mxu2 %v7468_v27  ;;  %v2598_v49 = vld [vmem:[%s8967_s7 + $0xec8] sm:$0xff] }
 0x3f6   :  { %3195 = vmatpush.msra.mxu0 %v2157_v5  ;;  %3215 = vmatpush.msra.mxu1 %v2328_v29  ;;  %v2203_v5 = vld [vmem:[%s8967_s7 + $0x270] sm:$0xff] }
 0x3f7   :  { %3233 = vmatpush.msra.mxu2 %v2517_v15  ;;  %3253 = vmatpush.msra.mxu3 %v2688_v60  ;;  %v2744_v15 = vadd.f32 %v2743_v45, %v2705_v58  ;;  %v2374_v60 = vld [vmem:[%s8967_s7 + $0x7c8] sm:$0xff] }
 0x3f8   :  { %3196 = vmatpush.msra.mxu0 %v2148_v21  ;;  %3216 = vmatpush.msra.mxu1 %v2319_v62  ;;  %v2766_v29 = vpop.f32.mrf.mxu1  ;;  %v2418_v21 = vld [vmem:[%s8967_s7 + $0x928] sm:$0xff]  ;;  %v2589_v62 = vld [vmem:[%s8967_s7 + $0xe80] sm:$0xff] }
 0x3f9   :  { %3234 = vmatpush.msra.mxu2 %v2508_v40  ;;  %3254 = vmatpush.msra.mxu3 %v2679_v18  ;;  %v2767_v18 = vadd.f32 %v2766_v29, %v2744_v15  ;;  %v2131_v29 = vld [vmem:[%s8967_s7 + $0x30] sm:$0xff] }
 0x3fa   :  { %3197 = vmatpush.msra.mxu0 %v2139_v1  ;;  %3217 = vmatpush.msra.mxu1 %v2310_v25  ;;  %v2194_v1 = vld [vmem:[%s8967_s7 + $0x228] sm:$0xff]  ;;  %v2365_v25 = vld [vmem:[%s8967_s7 + $0x780] sm:$0xff] }
 0x3fb   :  { %3235 = vmatpush.msra.mxu2 %v2499_v4  ;;  %3255 = vmatpush.msra.mxu3 %v2670_v19  ;;  %v2554_v4 = vld [vmem:[%s8967_s7 + $0xd68] sm:$0xff]  ;;  %v2580_v19 = vld [vmem:[%s8967_s7 + $0xe38] sm:$0xff] }
 0x3fc   :  { %3179 = vmatmul.f32.gmra.mxu3 %v7510_v48  ;;  %3198 = vmatpush.msra.mxu0 %v2130_v42  ;;  %v2185_v42 = vld [vmem:[%s8967_s7 + $0x1e0] sm:$0xff] }
 0x3fd   :  { %3218 = vmatpush.msra.mxu1 %v2301_v3  ;;  %3236 = vmatpush.msra.mxu2 %v2490_v7  ;;  %v2356_v3 = vld [vmem:[%s8967_s7 + $0x738] sm:$0xff] }
 0x3fe   :  { %3256 = vmatpush.msra.mxu3 %v2661_v32  ;;  %3199 = vmatmul.f32.vlgmr.msra.gmra.mxu0 %v7373_v57 }
 0x3ff   :  { %3275 = vmatpush.msrb.mxu0 %v2266_v11  ;;  %3219 = vmatpush.msra.mxu1 %v2292_v43  ;;  %v2545_v11 = vld [vmem:[%s8967_s7 + $0xd20] sm:$0xff]  ;;  %v2571_v43 = vld [vmem:[%s8967_s7 + $0xdf0] sm:$0xff] }
 0x400   :  { %3237 = vmatpush.msra.mxu2 %v2481_v28  ;;  %3257 = vmatpush.msra.mxu3 %v2652_v31  ;;  %v2786_v41 = vpop.f32.mrf.mxu2  ;;  %v2706_v28 = vperm.slane %v8132_v17, 1  ;;  %v2176_v31 = vld [vmem:[%s8967_s7 + $0x198] sm:$0xff] }
 0x401   :  { %3276 = vmatpush.msrb.mxu0 %v2257_v22  ;;  %3220 = vmatpush.msra.mxu1 %v2283_v24  ;;  %v2787_v9 = vadd.f32 %v2786_v41, %v2764_v23  ;;  %v2698_v41 = vld [vmem:[%s8967_s7 + $0x11e8] sm:$0xff]  ;;  %v2329_v23 = vld [vmem:[%s8967_s7 + $0x660] sm:$0xff] }
 0x402   :  { %3238 = vmatpush.msra.mxu2 %v2472_v6  ;;  %3258 = vmatpush.msra.mxu3 %v2643_v26  ;;  %v2832_v6 = vpop.f32.mrf.mxu0  ;;  %v2536_v26 = vld [vmem:[%s8967_s7 + $0xcd8] sm:$0xff] }
 0x403   :  { %3277 = vmatpush.msrb.mxu0 %v2248_v30  ;;  %3221 = vmatpush.msra.mxu1 %v2274_v36  ;;  %v2562_v30 = vld [vmem:[%s8967_s7 + $0xda8] sm:$0xff]  ;;  %v2167_v36 = vld [vmem:[%s8967_s7 + $0x150] sm:$0xff] }
 0x404   :  { %3239 = vmatpush.msra.mxu2 %v2463_v39  ;;  %3259 = vmatpush.msra.mxu3 %v2634_v35  ;;  %v2855_v39 = vpop.f32.mrf.mxu1 }
 0x405   :  { %3222 = vmatmul.f32.vlgmr.msra.gmra.mxu1 %v7385_v56  ;;  %3278 = vmatpush.msrb.mxu0 %v2239_v54  ;;  %v2833_v54 = vadd.f32 %v2832_v6, %v2706_v28  ;;  %v2644_v6 = vld [vmem:[%s8967_s7 + $0x1038] sm:$0xff] }
 0x406   :  { %3298 = vmatpush.msrb.mxu1 %v2410_v52  ;;  %3240 = vmatpush.msra.mxu2 %v2454_v44  ;;  %v2809_v34 = vpop.f32.mrf.mxu3  ;;  %v2158_v52 = vld [vmem:[%s8967_s7 + $0x108] sm:$0xff] }
 0x407   :  { %3260 = vmatpush.msra.mxu3 %v2625_v13  ;;  %3202 = vmatmul.f32.gmra.mxu0 %v7394_v2  ;;  %v2810_v50 = vadd.f32 %v2809_v34, %v2787_v9  ;;  %v2856_v13 = vadd.f32 %v2855_v39, %v2833_v54  ;;  %v2149_v9 = vld [vmem:[%s8967_s7 + $0xc0] sm:$0xff]  ;;  %v2635_v39 = vld [vmem:[%s8967_s7 + $0xff0] sm:$0xff] }
 0x408   :  { %3279 = vmatpush.msrb.mxu0 %v2230_v10  ;;  %3299 = vmatpush.msrb.mxu1 %v2401_v59  ;;  %v2518_v10 = vld [vmem:[%s8967_s7 + $0xc48] sm:$0xff]  ;;  %v2689_v59 = vld [vmem:[%s8967_s7 + $0x11a0] sm:$0xff] }
 0x409   :  { %3241 = vmatpush.msra.mxu2 %v2445_v61  ;;  %3261 = vmatpush.msra.mxu3 %v2616_v12  ;;  %v3929_v55 = vmul.f32 -1.442695, %v2810_v50  ;;  %v2789_v40 = vpop.f32.mrf.mxu2  ;;  %v2320_v61 = vld [vmem:[%s8967_s7 + $0x618] sm:$0xff]  ;;  %v2509_v34 = vld [vmem:[%s8967_s7 + $0xc00] sm:$0xff] }
 0x40a   :  { %3280 = vmatpush.msrb.mxu0 %v2221_v8  ;;  %3300 = vmatpush.msrb.mxu1 %v2392_v63  ;;  %v2790_v7 = vadd.f32 %v2789_v40, %v2767_v18  ;;  %v2680_v8 = vld [vmem:[%s8967_s7 + $0x1158] sm:$0xff] }
 0x40b   :  { %3242 = vmatpush.msra.mxu2 %v2436_v46  ;;  %3262 = vmatpush.msra.mxu3 %v2607_v16  ;;  %3951 = vpow2.f32 %v3929_v55  ;;  %v2140_v50 = vld [vmem:[%s8967_s7 + $0x78] sm:$0xff]  ;;  %v2311_v46 = vld [vmem:[%s8967_s7 + $0x5d0] sm:$0xff] }
 0x40c   :  { %3281 = vmatpush.msrb.mxu0 %v2212_v53  ;;  %3301 = vmatpush.msrb.mxu1 %v2383_v33  ;;  %v2500_v53 = vld [vmem:[%s8967_s7 + $0xbb8] sm:$0xff]  ;;  %v2671_v33 = vld [vmem:[%s8967_s7 + $0x1110] sm:$0xff] }
 0x40d   :  { %3243 = vmatpush.msra.mxu2 %v2427_v14  ;;  %3263 = vmatpush.msra.mxu3 %v2598_v49  ;;  %v2835_v49 = vpop.f32.mrf.mxu0 }
 0x40e   :  { %3225 = vmatmul.f32.gmra.mxu1 %v7417_v20  ;;  %3282 = vmatpush.msrb.mxu0 %v2203_v5 }
 0x40f   :  { %3302 = vmatpush.msrb.mxu1 %v2374_v60  ;;  %3244 = vmatpush.msra.mxu2 %v2418_v21  ;;  %v2302_v60 = vld [vmem:[%s8967_s7 + $0x588] sm:$0xff]  ;;  %v2491_v21 = vld [vmem:[%s8967_s7 + $0xb70] sm:$0xff] }
 0x410   :  { %3264 = vmatpush.msra.mxu3 %v2589_v62  ;;  %3245 = vmatmul.f32.vlgmr.msra.gmra.mxu2 %v7425_v0 }
 0x411   :  { %v3952_v32 = vpop.eup %3951  ;;  %3283 = vmatpush.msrb.mxu0 %v2194_v1  ;;  %3303 = vmatpush.msrb.mxu1 %v2365_v25  ;;  %v2812_v58 = vpop.f32.mrf.mxu3  ;;  %v2662_v25 = vld [vmem:[%s8967_s7 + $0x10c8] sm:$0xff] }
 0x412   :  { %3321 = vmatpush.msrb.mxu2 %v2554_v4  ;;  %3265 = vmatpush.msra.mxu3 %v2580_v19  ;;  %v8275_v22 = vadd.f32 1.0, %v3952_v32  ;;  %v2813_v24 = vadd.f32 %v2812_v58, %v2790_v7  ;;  %v2858_v4 = vpop.f32.mrf.mxu1  ;;  %v2836_v19 = vadd.f32 %v2835_v49, %v2706_v28  ;;  %v2482_v32 = vld [vmem:[%s8967_s7 + $0xb28] sm:$0xff] }
 0x413   :  { %3284 = vmatpush.msrb.mxu0 %v2185_v42  ;;  %3304 = vmatpush.msrb.mxu1 %v2356_v3  ;;  %v2267_v42 = vld [vmem:[%s8967_s7 + $0x470] sm:$0xff]  ;;  %v2293_v3 = vld [vmem:[%s8967_s7 + $0x540] sm:$0xff]  ;;  %v2222_v49 = vld [vmem:[%s8967_s7 + $0x308] sm:$0xff] }
 0x414   :  { %3322 = vmatpush.msrb.mxu2 %v2545_v11  ;;  %3266 = vmatpush.msra.mxu3 %v2571_v43  ;;  %3953 = vrcp.f32 %v8275_v22  ;;  %v3938_v35 = vmul.f32 -1.442695, %v2813_v24  ;;  %v2878_v44 = vpop.f32.mrf.mxu2  ;;  %v3634_v15 = vand.u32 2147483648, %v8275_v22  ;;  %v3632_v1 = vand.u32 2147483647, %v8275_v22  ;;  %v2653_v11 = vld [vmem:[%s8967_s7 + $0x1080] sm:$0xff] }
 0x415   :  { %3285 = vmatpush.msrb.mxu0 %v2176_v31  ;;  %3305 = vmatpush.msrb.mxu1 %v2347_v47  ;;  %v2879_v63 = vadd.f32 %v2878_v44, %v2856_v13  ;;  %vm3628_vm1 = vweird.f32 %v8275_v22  ;;  %v2859_v28 = vadd.f32 %v2858_v4, %v2836_v19  ;;  %v2258_v31 = vld [vmem:[%s8967_s7 + $0x428] sm:$0xff]  ;;  %v2284_v47 = vld [vmem:[%s8967_s7 + $0x4f8] sm:$0xff]  ;;  %v2473_v24 = vld [vmem:[%s8967_s7 + $0xae0] sm:$0xff]  ;;  %v2924_v13 = vpop.f32.mrf.mxu0 }
 0x416   :  { %3323 = vmatpush.msrb.mxu2 %v2536_v26  ;;  %3267 = vmatpush.msra.mxu3 %v2562_v30  ;;  %3955 = vpow2.f32 %v3938_v35  ;;  %v3635_v58 = vor.u32 1.1754944e-38, %v3634_v15  ;;  %vm3633_vm3 = vcmp.eq.f32.partialorder %v3632_v1, 8.507059e+37  ;;  %v2249_v30 = vld [vmem:[%s8967_s7 + $0x3e0] sm:$0xff]  ;;  %v2384_v1 = vld [vmem:[%s8967_s7 + $0x818] sm:$0xff]  ;;  %v2599_v4 = vld [vmem:[%s8967_s7 + $0xed0] sm:$0xff] }
 0x417   :  { %3268 = vmatmul.f32.vlgmr.msra.gmra.mxu3 %v7457_v51  ;;  %3286 = vmatpush.msrb.mxu0 %v2167_v36  ;;  %v2275_v36 = vld [vmem:[%s8967_s7 + $0x4b0] sm:$0xff]  ;;  %v2437_v15 = vld [vmem:[%s8967_s7 + $0x9c0] sm:$0xff] }
 0x418   :  { %3306 = vmatpush.msrb.mxu1 %v2338_v37  ;;  %3324 = vmatpush.msrb.mxu2 %v2527_v38  ;;  %v2464_v38 = vld [vmem:[%s8967_s7 + $0xa98] sm:$0xff] }
 0x419   :  { %3344 = vmatpush.msrb.mxu3 %v2698_v41  ;;  %3248 = vmatmul.f32.gmra.mxu2 %v7468_v27  ;;  %v2707_v41 = vperm.slane %v8132_v17, 2 }
 0x41a   :  { %v8318_v12 = vpop.eup %3953  ;;  %3287 = vmatpush.msrb.mxu0 %v2158_v52  ;;  %3307 = vmatpush.msrb.mxu1 %v2329_v23  ;;  %v2240_v52 = vld [vmem:[%s8967_s7 + $0x398] sm:$0xff] }
 0x41b   :  { %3325 = vmatpush.msrb.mxu2 %v2518_v10  ;;  %3345 = vmatpush.msrb.mxu3 %v2689_v59  ;;  %v3624_v16 = vmul.f32 %v8318_v12, %v8275_v22  ;;  %v2901_v45 = vpop.f32.mrf.mxu3  ;;  %vm3629_vm0 = vweird.f32 %v8318_v12  ;;  %v2411_v59 = vld [vmem:[%s8967_s7 + $0x8f0] sm:$0xff] }
 0x41c   :  { %3288 = vmatpush.msrb.mxu0 %v2149_v9  ;;  %3308 = vmatpush.msrb.mxu1 %v2320_v61  ;;  %v2902_v55 = vadd.f32 %v2901_v45, %v2879_v63  ;;  %v3956_v14 = vpop.eup %3955  ;;  %vm3630_vm2 = vmor %vm3628_vm1, %vm3629_vm0  ;;  %v2455_v9 = vld [vmem:[%s8967_s7 + $0xa50] sm:$0xff]  ;;  %v2626_v61 = vld [vmem:[%s8967_s7 + $0xfa8] sm:$0xff]  ;;  %v2947_v63 = vpop.f32.mrf.mxu1 }
 0x41d   :  { %3326 = vmatpush.msrb.mxu2 %v2509_v34  ;;  %3346 = vmatpush.msrb.mxu3 %v2680_v8  ;;  %v3625_v5 = vsub.f32 1.0, %v3624_v16  ;;  %v8350_v62 = vadd.f32 1.0, %v3956_v14  ;;  %v2925_v16 = vadd.f32 %v2924_v13, %v2707_v41 }
 0x41e   :  { %3289 = vmatpush.msrb.mxu0 %v2140_v50  ;;  %3309 = vmatpush.msrb.mxu1 %v2311_v46  ;;  %v3930_v40 = vmul.f32 -1.442695, %v2902_v55  ;;  %v2881_v43 = vpop.f32.mrf.mxu2  ;;  %v2231_v50 = vld [vmem:[%s8967_s7 + $0x350] sm:$0xff]  ;;  %v2402_v46 = vld [vmem:[%s8967_s7 + $0x8a8] sm:$0xff] }
 0x41f   :  { %3327 = vmatpush.msrb.mxu2 %v2500_v53  ;;  %3347 = vmatpush.msrb.mxu3 %v2671_v33  ;;  %v3626_v18 = vmul.f32 %v8318_v12, %v3625_v5  ;;  %3957 = vrcp.f32 %v8350_v62  ;;  %v2882_v37 = vadd.f32 %v2881_v43, %v2859_v28  ;;  %v3769_v45 = vand.u32 2147483648, %v8350_v62  ;;  %v2446_v53 = vld [vmem:[%s8967_s7 + $0xa08] sm:$0xff]  ;;  %v2617_v33 = vld [vmem:[%s8967_s7 + $0xf60] sm:$0xff]  ;;  %v2419_v43 = vld [vmem:[%s8967_s7 + $0x930] sm:$0xff] }
 0x420   :  { %3271 = vmatmul.f32.gmra.mxu3 %v7510_v48  ;;  %3290 = vmatpush.msrb.mxu0 %v2131_v29  ;;  %3959 = vpow2.f32 %v3930_v40  ;;  %v3767_v14 = vand.u32 2147483647, %v8350_v62  ;;  %v2393_v5 = vld [vmem:[%s8967_s7 + $0x860] sm:$0xff]  ;;  %vm3763_vm5 = vweird.f32 %v8350_v62  ;;  %v2948_v40 = vadd.f32 %v2947_v63, %v2925_v16 }
 0x421   :  { %v3627_v7 = vadd.f32 %v8318_v12, %v3626_v18  ;;  %3310 = vmatpush.msrb.mxu1 %v2302_v60  ;;  %3328 = vmatpush.msrb.mxu2 %v2491_v21  ;;  %v2608_v60 = vld [vmem:[%s8967_s7 + $0xf18] sm:$0xff]  ;;  %v2213_v18 = vld [vmem:[%s8967_s7 + $0x2c0] sm:$0xff] }
 0x422   :  { %3348 = vmatpush.msrb.mxu3 %v2662_v25  ;;  %3291 = vmatmul.f32.vlgmr.msrb.gmra.mxu0 %v7373_v57  ;;  %v3770_v25 = vor.u32 1.1754944e-38, %v3769_v45  ;;  %vm3768_vm7 = vcmp.eq.f32.partialorder %v3767_v14, 8.507059e+37 }
 0x423   :  { %v3631_v22 = vsel %vm3630_vm2, %v8318_v12, %v3627_v7  ;;  %3367 = vmatpush.msra.mxu0 %v2267_v42  ;;  %3311 = vmatpush.msrb.mxu1 %v2293_v3  ;;  %v2204_v42 = vld [vmem:[%s8967_s7 + $0x278] sm:$0xff] }
 0x424   :  { %v3636_v26 = vsel %vm3633_vm3, %v3635_v58, %v3631_v22  ;;  %3329 = vmatpush.msrb.mxu2 %v2482_v32  ;;  %3349 = vmatpush.msrb.mxu3 %v2653_v11  ;;  %v2375_v11 = vld [vmem:[%s8967_s7 + $0x7d0] sm:$0xff]  ;;  %v2590_v22 = vld [vmem:[%s8967_s7 + $0xe88] sm:$0xff] }
 0x425   :  { %3893 = vst [vmem:[#allocation2] sm:$0xff] %v3636_v26  ;;  %3368 = vmatpush.msra.mxu0 %v2258_v31  ;;  %3312 = vmatpush.msrb.mxu1 %v2284_v47  ;;  %v2904_v35 = vpop.f32.mrf.mxu3  ;;  %v8404_v54 = vpop.eup %3957  ;;  %v2366_v26 = vld [vmem:[%s8967_s7 + $0x788] sm:$0xff] }
 0x426   :  { %3330 = vmatpush.msrb.mxu2 %v2473_v24  ;;  %3350 = vmatpush.msrb.mxu3 %v2644_v6  ;;  %v2905_v23 = vadd.f32 %v2904_v35, %v2882_v37  ;;  %v3960_v44 = vpop.eup %3959  ;;  %v3759_v10 = vmul.f32 %v8404_v54, %v8350_v62  ;;  %vm3764_vm4 = vweird.f32 %v8404_v54  ;;  %v2428_v62 = vld [vmem:[%s8967_s7 + $0x978] sm:$0xff]  ;;  %v2927_v31 = vpop.f32.mrf.mxu0  ;;  %v2195_v6 = vld [vmem:[%s8967_s7 + $0x230] sm:$0xff] }
 0x427   :  { %3369 = vmatpush.msra.mxu0 %v2249_v30  ;;  %3313 = vmatpush.msrb.mxu1 %v2275_v36  ;;  %v8421_v12 = vadd.f32 1.0, %v3960_v44  ;;  %vm3765_vm6 = vmor %vm3763_vm5, %vm3764_vm4  ;;  %v2950_v37 = vpop.f32.mrf.mxu1  ;;  %v2357_v44 = vld [vmem:[%s8967_s7 + $0x740] sm:$0xff] }
 0x428   :  { %3331 = vmatpush.msrb.mxu2 %v2464_v38  ;;  %3351 = vmatpush.msrb.mxu3 %v2635_v39  ;;  %v3939_v34 = vmul.f32 -1.442695, %v2905_v23  ;;  %v3760_v8 = vsub.f32 1.0, %v3759_v10  ;;  %v2555_v38 = vld [vmem:[%s8967_s7 + $0xd70] sm:$0xff]  ;;  %v2581_v39 = vld [vmem:[%s8967_s7 + $0xe40] sm:$0xff]  ;;  %v2186_v23 = vld [vmem:[%s8967_s7 + $0x1e8] sm:$0xff] }
 0x429   :  { %3314 = vmatmul.f32.vlgmr.msrb.gmra.mxu1 %v7385_v56  ;;  %3370 = vmatpush.msra.mxu0 %v2240_v52  ;;  %3961 = vrcp.f32 %v8421_v12  ;;  %v2970_v29 = vpop.f32.mrf.mxu2  ;;  %v3649_v52 = vand.u32 2147483648, %v8421_v12  ;;  %v2546_v10 = vld [vmem:[%s8967_s7 + $0xd28] sm:$0xff]  ;;  %vm3643_vm9 = vweird.f32 %v8421_v12 }
 0x42a   :  { %3390 = vmatpush.msra.mxu1 %v2411_v59  ;;  %3332 = vmatpush.msrb.mxu2 %v2455_v9  ;;  %v3761_v55 = vmul.f32 %v8404_v54, %v3760_v8  ;;  %3963 = vpow2.f32 %v3939_v34  ;;  %v2971_v3 = vadd.f32 %v2970_v29, %v2948_v40  ;;  %v2572_v59 = vld [vmem:[%s8967_s7 + $0xdf8] sm:$0xff]  ;;  %v2177_v34 = vld [vmem:[%s8967_s7 + $0x1a0] sm:$0xff]  ;;  %v2699_v29 = vld [vmem:[%s8967_s7 + $0x11f0] sm:$0xff] }
 0x42b   :  { %3352 = vmatpush.msrb.mxu3 %v2626_v61  ;;  %3294 = vmatmul.f32.gmra.mxu0 %v7394_v2  ;;  %v2348_v8 = vld [vmem:[%s8967_s7 + $0x6f8] sm:$0xff]  ;;  %v3650_v16 = vor.u32 1.1754944e-38, %v3649_v52  ;;  %v2159_v40 = vld [vmem:[%s8967_s7 + $0x110] sm:$0xff]  ;;  %v2294_v52 = vld [vmem:[%s8967_s7 + $0x548] sm:$0xff] }
 0x42c   :  { %3371 = vmatpush.msra.mxu0 %v2231_v50  ;;  %3391 = vmatpush.msra.mxu1 %v2402_v46  ;;  %v3762_v21 = vadd.f32 %v8404_v54, %v3761_v55  ;;  %v2537_v50 = vld [vmem:[%s8967_s7 + $0xce0] sm:$0xff]  ;;  %v2563_v46 = vld [vmem:[%s8967_s7 + $0xdb0] sm:$0xff]  ;;  %v2528_v55 = vld [vmem:[%s8967_s7 + $0xc98] sm:$0xff] }
 0x42d   :  { %3333 = vmatpush.msrb.mxu2 %v2446_v53  ;;  %3353 = vmatpush.msrb.mxu3 %v2617_v33  ;;  %v2339_v33 = vld [vmem:[%s8967_s7 + $0x6b0] sm:$0xff] }
 0x42e   :  { %3372 = vmatpush.msra.mxu0 %v2222_v49  ;;  %3392 = vmatpush.msra.mxu1 %v2393_v5  ;;  %v3766_v19 = vsel %vm3765_vm6, %v8404_v54, %v3762_v21  ;;  %v2928_v54 = vadd.f32 %v2927_v31, %v2707_v41  ;;  %v3647_v41 = vand.u32 2147483647, %v8421_v12  ;;  %v2312_v31 = vld [vmem:[%s8967_s7 + $0x5d8] sm:$0xff] }
 0x42f   :  { %3334 = vmatpush.msrb.mxu2 %v2437_v15  ;;  %3354 = vmatpush.msrb.mxu3 %v2608_v60  ;;  %v8476_v7 = vpop.eup %3961  ;;  %v3771_v32 = vsel %vm3768_vm7, %v3770_v25, %v3766_v19  ;;  %v2690_v25 = vld [vmem:[%s8967_s7 + $0x11a8] sm:$0xff] }
 0x430   :  { %3373 = vmatpush.msra.mxu0 %v2213_v18  ;;  %3393 = vmatpush.msra.mxu1 %v2384_v1  ;;  %v2993_v58 = vpop.f32.mrf.mxu3  ;;  %v3964_v28 = vpop.eup %3963  ;;  %3902 = vst [vmem:[#allocation2 + $0x48] sm:$0xff] %v3771_v32  ;;  %v3639_v47 = vmul.f32 %v8476_v7, %v8421_v12  ;;  %vm3644_vm8 = vweird.f32 %v8476_v7  ;;  %v2951_v61 = vadd.f32 %v2950_v37, %v2928_v54  ;;  %v2168_v12 = vld [vmem:[%s8967_s7 + $0x158] sm:$0xff]  ;;  %vm3648_vm11 = vcmp.eq.f32.partialorder %v3647_v41, 8.507059e+37  ;;  %v2330_v18 = vld [vmem:[%s8967_s7 + $0x668] sm:$0xff]  ;;  %v2519_v1 = vld [vmem:[%s8967_s7 + $0xc50] sm:$0xff] }
 0x431   :  { %3335 = vmatpush.msrb.mxu2 %v2428_v62  ;;  %3355 = vmatpush.msrb.mxu3 %v2599_v4  ;;  %v2994_v24 = vadd.f32 %v2993_v58, %v2971_v3  ;;  %v8496_v30 = vadd.f32 1.0, %v3964_v28  ;;  %vm3645_vm10 = vmor %vm3643_vm9, %vm3644_vm8  ;;  %v2321_v3 = vld [vmem:[%s8967_s7 + $0x620] sm:$0xff]  ;;  %v2510_v32 = vld [vmem:[%s8967_s7 + $0xc08] sm:$0xff] }
 0x432   :  { %3317 = vmatmul.f32.gmra.mxu1 %v7417_v20  ;;  %3374 = vmatpush.msra.mxu0 %v2204_v42  ;;  %v3640_v36 = vsub.f32 1.0, %v3639_v47  ;;  %v2973_v9 = vpop.f32.mrf.mxu2  ;;  %v2150_v42 = vld [vmem:[%s8967_s7 + $0xc8] sm:$0xff]  ;;  %v2141_v28 = vld [vmem:[%s8967_s7 + $0x80] sm:$0xff]  ;;  %v2492_v37 = vld [vmem:[%s8967_s7 + $0xb78] sm:$0xff] }
 0x433   :  { %3394 = vmatpush.msra.mxu1 %v2375_v11  ;;  %3336 = vmatpush.msrb.mxu2 %v2419_v43  ;;  %v3931_v35 = vmul.f32 -1.442695, %v2994_v24  ;;  %3965 = vrcp.f32 %v8496_v30  ;;  %v2974_v45 = vadd.f32 %v2973_v9, %v2951_v61  ;;  %v2681_v11 = vld [vmem:[%s8967_s7 + $0x1160] sm:$0xff]  ;;  %v3782_v58 = vand.u32 2147483647, %v8496_v30  ;;  %v2268_v54 = vld [vmem:[%s8967_s7 + $0x478] sm:$0xff] }
 0x434   :  { %3356 = vmatpush.msrb.mxu3 %v2590_v22  ;;  %3337 = vmatmul.f32.vlgmr.msrb.gmra.mxu2 %v7425_v0  ;;  %v3641_v13 = vmul.f32 %v8476_v7, %v3640_v36  ;;  %v2501_v47 = vld [vmem:[%s8967_s7 + $0xbc0] sm:$0xff]  ;;  %v2672_v22 = vld [vmem:[%s8967_s7 + $0x1118] sm:$0xff]  ;;  %vm3778_vm13 = vweird.f32 %v8496_v30  ;;  %v2303_v36 = vld [vmem:[%s8967_s7 + $0x590] sm:$0xff] }
 0x435   :  { %3375 = vmatpush.msra.mxu0 %v2195_v6  ;;  %3395 = vmatpush.msra.mxu1 %v2366_v26  ;;  %3967 = vpow2.f32 %v3931_v35  ;;  %v2132_v6 = vld [vmem:[%s8967_s7 + $0x38] sm:$0xff]  ;;  %vm3783_vm15 = vcmp.eq.f32.partialorder %v3782_v58, 8.507059e+37  ;;  %v2654_v41 = vld [vmem:[%s8967_s7 + $0x1088] sm:$0xff] }
 0x436   :  { %3413 = vmatpush.msra.mxu2 %v2555_v38  ;;  %3357 = vmatpush.msrb.mxu3 %v2581_v39  ;;  %v3642_v63 = vadd.f32 %v8476_v7, %v3641_v13  ;;  %v2663_v38 = vld [vmem:[%s8967_s7 + $0x10d0] sm:$0xff]  ;;  %v2438_v58 = vld [vmem:[%s8967_s7 + $0x9c8] sm:$0xff] }
 0x437   :  { %3376 = vmatpush.msra.mxu0 %v2186_v23  ;;  %3396 = vmatpush.msra.mxu1 %v2357_v44  ;;  %v2483_v13 = vld [vmem:[%s8967_s7 + $0xb30] sm:$0xff] }
 0x438   :  { %3414 = vmatpush.msra.mxu2 %v2546_v10  ;;  %3358 = vmatpush.msrb.mxu3 %v2572_v59  ;;  %v3646_v53 = vsel %vm3645_vm10, %v8476_v7, %v3642_v63  ;;  %v3784_v7 = vand.u32 2147483648, %v8496_v30  ;;  %v2259_v10 = vld [vmem:[%s8967_s7 + $0x430] sm:$0xff]  ;;  %v2285_v59 = vld [vmem:[%s8967_s7 + $0x500] sm:$0xff] }
 0x439   :  { %3377 = vmatpush.msra.mxu0 %v2177_v34  ;;  %3397 = vmatpush.msra.mxu1 %v2348_v8  ;;  %v2996_v14 = vpop.f32.mrf.mxu3  ;;  %v3966_v49 = vpop.eup %3965  ;;  %v3651_v5 = vsel %vm3648_vm11, %v3650_v16, %v3646_v53  ;;  %v2474_v34 = vld [vmem:[%s8967_s7 + $0xae8] sm:$0xff]  ;;  %v2645_v8 = vld [vmem:[%s8967_s7 + $0x1040] sm:$0xff] }
 0x43a   :  { %3415 = vmatpush.msra.mxu2 %v2537_v50  ;;  %3359 = vmatpush.msrb.mxu3 %v2563_v46  ;;  %v2997_v15 = vadd.f32 %v2996_v14, %v2974_v45  ;;  %3894 = vst [vmem:[#allocation2 + $0x8] sm:$0xff] %v3651_v5  ;;  %v3774_v21 = vmul.f32 %v3966_v49, %v8496_v30  ;;  %vm3779_vm12 = vweird.f32 %v3966_v49  ;;  %v3785_v26 = vor.u32 1.1754944e-38, %v3784_v7  ;;  %v2250_v50 = vld [vmem:[%s8967_s7 + $0x3e8] sm:$0xff]  ;;  %v2276_v46 = vld [vmem:[%s8967_s7 + $0x4b8] sm:$0xff]  ;;  %v3016_v53 = vpop.f32.mrf.mxu0  ;;  %v2241_v14 = vld [vmem:[%s8967_s7 + $0x3a0] sm:$0xff] }
 0x43b   :  { %v3968_v60 = vpop.eup %3967  ;;  %3360 = vmatmul.f32.vlgmr.msrb.gmra.mxu3 %v7457_v51  ;;  %3378 = vmatpush.msra.mxu0 %v2168_v12  ;;  %vm3780_vm14 = vmor %vm3778_vm13, %vm3779_vm12  ;;  %v2708_v45 = vperm.slane %v8132_v17, 3  ;;  %v2412_v5 = vld [vmem:[%s8967_s7 + $0x8f8] sm:$0xff] }
 0x43c   :  { %3398 = vmatpush.msra.mxu1 %v2339_v33  ;;  %3416 = vmatpush.msra.mxu2 %v2528_v55  ;;  %v8567_v62 = vadd.f32 1.0, %v3968_v60  ;;  %v3940_v4 = vmul.f32 -1.442695, %v2997_v15  ;;  %v3775_v19 = vsub.f32 1.0, %v3774_v21  ;;  %v2465_v33 = vld [vmem:[%s8967_s7 + $0xaa0] sm:$0xff]  ;;  %v2636_v55 = vld [vmem:[%s8967_s7 + $0xff8] sm:$0xff] }
 0x43d   :  { %3436 = vmatpush.msra.mxu3 %v2699_v29  ;;  %3340 = vmatmul.f32.gmra.mxu2 %v7468_v27  ;;  %v3039_v29 = vpop.f32.mrf.mxu1  ;;  %v2456_v15 = vld [vmem:[%s8967_s7 + $0xa58] sm:$0xff]  ;;  %v2627_v21 = vld [vmem:[%s8967_s7 + $0xfb0] sm:$0xff] }
 0x43e   :  { %3379 = vmatpush.msra.mxu0 %v2159_v40  ;;  %3399 = vmatpush.msra.mxu1 %v2330_v18  ;;  %3969 = vrcp.f32 %v8567_v62  ;;  %v3776_v43 = vmul.f32 %v3966_v49, %v3775_v19  ;;  %v3664_v63 = vand.u32 2147483648, %v8567_v62  ;;  %v3662_v12 = vand.u32 2147483647, %v8567_v62  ;;  %v2556_v17 = vld [vmem:[%s8967_s7 + $0xd78] sm:$0xff] }
 0x43f   :  { %3417 = vmatpush.msra.mxu2 %v2519_v1  ;;  %3437 = vmatpush.msra.mxu3 %v2690_v25  ;;  %3971 = vpow2.f32 %v3940_v4  ;;  %vm3658_vm1 = vweird.f32 %v8567_v62  ;;  %v3017_v18 = vadd.f32 %v3016_v53, %v2708_v45  ;;  %v2232_v1 = vld [vmem:[%s8967_s7 + $0x358] sm:$0xff]  ;;  %v2403_v25 = vld [vmem:[%s8967_s7 + $0x8b0] sm:$0xff]  ;;  %v2358_v53 = vld [vmem:[%s8967_s7 + $0x748] sm:$0xff] }
 0x440   :  { %3380 = vmatpush.msra.mxu0 %v2150_v42  ;;  %3400 = vmatpush.msra.mxu1 %v2321_v3  ;;  %v3777_v24 = vadd.f32 %v3966_v49, %v3776_v43  ;;  %v3665_v60 = vor.u32 1.1754944e-38, %v3664_v63  ;;  %vm3663_vm3 = vcmp.eq.f32.partialorder %v3662_v12, 8.507059e+37  ;;  %v2447_v42 = vld [vmem:[%s8967_s7 + $0xa10] sm:$0xff]  ;;  %v2618_v3 = vld [vmem:[%s8967_s7 + $0xf68] sm:$0xff] }
 0x441   :  { %3418 = vmatpush.msra.mxu2 %v2510_v32  ;;  %3438 = vmatpush.msra.mxu3 %v2681_v11  ;;  %v3040_v32 = vadd.f32 %v3039_v29, %v3017_v18  ;;  %v2223_v11 = vld [vmem:[%s8967_s7 + $0x310] sm:$0xff]  ;;  %v2394_v43 = vld [vmem:[%s8967_s7 + $0x868] sm:$0xff] }
 0x442   :  { %3381 = vmatpush.msra.mxu0 %v2141_v28  ;;  %3401 = vmatpush.msra.mxu1 %v2312_v31  ;;  %v3781_v30 = vsel %vm3780_vm14, %v3966_v49, %v3777_v24  ;;  %v2609_v28 = vld [vmem:[%s8967_s7 + $0xf20] sm:$0xff]  ;;  %v2538_v29 = vld [vmem:[%s8967_s7 + $0xce8] sm:$0xff] }
 0x443   :  { %3419 = vmatpush.msra.mxu2 %v2501_v47  ;;  %3439 = vmatpush.msra.mxu3 %v2672_v22  ;;  %v3786_v35 = vsel %vm3783_vm15, %v3785_v26, %v3781_v30  ;;  %v2214_v47 = vld [vmem:[%s8967_s7 + $0x2c8] sm:$0xff]  ;;  %v2385_v22 = vld [vmem:[%s8967_s7 + $0x820] sm:$0xff] }
 0x444   :  { %v8611_v39 = vpop.eup %3969  ;;  %3363 = vmatmul.f32.gmra.mxu3 %v7510_v48  ;;  %3382 = vmatpush.msra.mxu0 %v2132_v6  ;;  %3903 = vst [vmem:[#allocation2 + $0x50] sm:$0xff] %v3786_v35  ;;  %v2429_v26 = vld [vmem:[%s8967_s7 + $0x980] sm:$0xff] }
 0x445   :  { %v3972_v23 = vpop.eup %3971  ;;  %v3654_v44 = vmul.f32 %v8611_v39, %v8567_v62  ;;  %3402 = vmatpush.msra.mxu1 %v2303_v36  ;;  %3420 = vmatpush.msra.mxu2 %v2492_v37  ;;  %vm3659_vm0 = vweird.f32 %v8611_v39  ;;  %v2600_v36 = vld [vmem:[%s8967_s7 + $0xed8] sm:$0xff]  ;;  %v2205_v35 = vld [vmem:[%s8967_s7 + $0x280] sm:$0xff] }
 0x446   :  { %3440 = vmatpush.msra.mxu3 %v2663_v38  ;;  %3383 = vmatmul.f32.vlgmr.msra.gmra.mxu0 %v7373_v57  ;;  %v8635_v9 = vadd.f32 1.0, %v3972_v23  ;;  %vm3660_vm2 = vmor %vm3658_vm1, %vm3659_vm0  ;;  %v2420_v23 = vld [vmem:[%s8967_s7 + $0x938] sm:$0xff] }
 0x447   :  { %v3655_v61 = vsub.f32 1.0, %v3654_v44  ;;  %3459 = vmatpush.msrb.mxu0 %v2268_v54  ;;  %3403 = vmatpush.msra.mxu1 %v2294_v52  ;;  %v2376_v52 = vld [vmem:[%s8967_s7 + $0x7d8] sm:$0xff] }
 0x448   :  { %3421 = vmatpush.msra.mxu2 %v2483_v13  ;;  %3441 = vmatpush.msra.mxu3 %v2654_v41  ;;  %3973 = vrcp.f32 %v8635_v9  ;;  %v3799_v6 = vand.u32 2147483648, %v8635_v9  ;;  %v3797_v38 = vand.u32 2147483647, %v8635_v9  ;;  %vm3793_vm5 = vweird.f32 %v8635_v9  ;;  %v3042_v13 = vpop.f32.mrf.mxu1  ;;  %v2591_v41 = vld [vmem:[%s8967_s7 + $0xe90] sm:$0xff] }
 0x449   :  { %v3656_v16 = vmul.f32 %v8611_v39, %v3655_v61  ;;  %3460 = vmatpush.msrb.mxu0 %v2259_v10  ;;  %3404 = vmatpush.msra.mxu1 %v2285_v59 }
 0x44a   :  { %3422 = vmatpush.msra.mxu2 %v2474_v34  ;;  %3442 = vmatpush.msra.mxu3 %v2645_v8  ;;  %v3800_v61 = vor.u32 1.1754944e-38, %v3799_v6  ;;  %v2367_v8 = vld [vmem:[%s8967_s7 + $0x790] sm:$0xff]  ;;  %vm3798_vm7 = vcmp.eq.f32.partialorder %v3797_v38, 8.507059e+37  ;;  %v2133_v6 = vld [vmem:[%s8967_s7 + $0x40] sm:$0xff] }
 0x44b   :  { %v3657_v49 = vadd.f32 %v8611_v39, %v3656_v16  ;;  %3461 = vmatpush.msrb.mxu0 %v2250_v50  ;;  %3405 = vmatpush.msra.mxu1 %v2276_v46  ;;  %v3062_v62 = vpop.f32.mrf.mxu2  ;;  %v2582_v50 = vld [vmem:[%s8967_s7 + $0xe48] sm:$0xff] }
 0x44c   :  { %3423 = vmatpush.msra.mxu2 %v2465_v33  ;;  %3443 = vmatpush.msra.mxu3 %v2636_v55  ;;  %v3063_v24 = vadd.f32 %v3062_v62, %v3040_v32  ;;  %v2547_v33 = vld [vmem:[%s8967_s7 + $0xd30] sm:$0xff]  ;;  %v2573_v55 = vld [vmem:[%s8967_s7 + $0xe00] sm:$0xff]  ;;  %v2700_v62 = vld [vmem:[%s8967_s7 + $0x11f8] sm:$0xff] }
 0x44d   :  { %v3661_v40 = vsel %vm3660_vm2, %v8611_v39, %v3657_v49  ;;  %3406 = vmatmul.f32.vlgmr.msra.gmra.mxu1 %v7385_v56  ;;  %3462 = vmatpush.msrb.mxu0 %v2241_v14  ;;  %v3019_v39 = vpop.f32.mrf.mxu0  ;;  %v2178_v14 = vld [vmem:[%s8967_s7 + $0x1a8] sm:$0xff]  ;;  %v2349_v49 = vld [vmem:[%s8967_s7 + $0x700] sm:$0xff]  ;;  %v2691_v32 = vld [vmem:[%s8967_s7 + $0x11b0] sm:$0xff] }
 0x44e   :  { %v8687_v4 = vpop.eup %3973  ;;  %v3666_v19 = vsel %vm3663_vm3, %v3665_v60, %v3661_v40  ;;  %3482 = vmatpush.msrb.mxu1 %v2412_v5  ;;  %3424 = vmatpush.msra.mxu2 %v2456_v15  ;;  %v3020_v34 = vadd.f32 %v3019_v39, %v2708_v45  ;;  %v2187_v45 = vld [vmem:[%s8967_s7 + $0x1f0] sm:$0xff]  ;;  %v2564_v15 = vld [vmem:[%s8967_s7 + $0xdb8] sm:$0xff] }
 0x44f   :  { %3895 = vst [vmem:[#allocation2 + $0x10] sm:$0xff] %v3666_v19  ;;  %v3789_v7 = vmul.f32 %v8687_v4, %v8635_v9  ;;  %3444 = vmatpush.msra.mxu3 %v2627_v21  ;;  %3386 = vmatmul.f32.gmra.mxu0 %v7394_v2  ;;  %vm3794_vm4 = vweird.f32 %v8687_v4  ;;  %v2196_v9 = vld [vmem:[%s8967_s7 + $0x238] sm:$0xff]  ;;  %v2169_v21 = vld [vmem:[%s8967_s7 + $0x160] sm:$0xff] }
 0x450   :  { %3463 = vmatpush.msrb.mxu0 %v2232_v1  ;;  %3483 = vmatpush.msrb.mxu1 %v2403_v25  ;;  %vm8742_vm6 = vmor %vm3793_vm5, %vm3794_vm4  ;;  %v3043_v12 = vadd.f32 %v3042_v13, %v3020_v34  ;;  %v2340_v1 = vld [vmem:[%s8967_s7 + $0x6b8] sm:$0xff]  ;;  %v2529_v25 = vld [vmem:[%s8967_s7 + $0xca0] sm:$0xff] }
 0x451   :  { %v3790_v31 = vsub.f32 1.0, %v3789_v7  ;;  %3425 = vmatpush.msra.mxu2 %v2447_v42  ;;  %3445 = vmatpush.msra.mxu3 %v2618_v3  ;;  %v2160_v42 = vld [vmem:[%s8967_s7 + $0x118] sm:$0xff]  ;;  %v2331_v3 = vld [vmem:[%s8967_s7 + $0x670] sm:$0xff]  ;;  %v2277_v34 = vld [vmem:[%s8967_s7 + $0x4c0] sm:$0xff] }
 0x452   :  { %3464 = vmatpush.msrb.mxu0 %v2223_v11  ;;  %3484 = vmatpush.msrb.mxu1 %v2394_v43  ;;  %v3085_v37 = vpop.f32.mrf.mxu3  ;;  %v2520_v7 = vld [vmem:[%s8967_s7 + $0xc58] sm:$0xff]  ;;  %v2151_v11 = vld [vmem:[%s8967_s7 + $0xd0] sm:$0xff]  ;;  %v2322_v43 = vld [vmem:[%s8967_s7 + $0x628] sm:$0xff] }
 0x453   :  { %v3791_v30 = vmul.f32 %v8687_v4, %v3790_v31  ;;  %3426 = vmatpush.msra.mxu2 %v2438_v58  ;;  %3446 = vmatpush.msra.mxu3 %v2609_v28  ;;  %v3086_v54 = vadd.f32 %v3085_v37, %v3063_v24  ;;  %v2511_v58 = vld [vmem:[%s8967_s7 + $0xc10] sm:$0xff]  ;;  %v2682_v28 = vld [vmem:[%s8967_s7 + $0x1168] sm:$0xff]  ;;  %v2673_v24 = vld [vmem:[%s8967_s7 + $0x1120] sm:$0xff] }
 0x454   :  { %3465 = vmatpush.msrb.mxu0 %v2214_v47  ;;  %3485 = vmatpush.msrb.mxu1 %v2385_v22  ;;  %v3065_v46 = vpop.f32.mrf.mxu2  ;;  %v2142_v31 = vld [vmem:[%s8967_s7 + $0x88] sm:$0xff]  ;;  %v2313_v47 = vld [vmem:[%s8967_s7 + $0x5e0] sm:$0xff]  ;;  %v2664_v39 = vld [vmem:[%s8967_s7 + $0x10d8] sm:$0xff] }
 0x455   :  { %v3792_v44 = vadd.f32 %v8687_v4, %v3791_v30  ;;  %3427 = vmatpush.msra.mxu2 %v2429_v26  ;;  %3447 = vmatpush.msra.mxu3 %v2600_v36  ;;  %v3932_v10 = vmul.f32 -1.442695, %v3086_v54  ;;  %v3066_v5 = vadd.f32 %v3065_v46, %v3043_v12  ;;  %v2502_v22 = vld [vmem:[%s8967_s7 + $0xbc8] sm:$0xff]  ;;  %v2304_v36 = vld [vmem:[%s8967_s7 + $0x598] sm:$0xff]  ;;  %v2493_v37 = vld [vmem:[%s8967_s7 + $0xb80] sm:$0xff] }
 0x456   :  { %3409 = vmatmul.f32.gmra.mxu1 %v7417_v20  ;;  %3466 = vmatpush.msrb.mxu0 %v2205_v35  ;;  %v2295_v35 = vld [vmem:[%s8967_s7 + $0x550] sm:$0xff]  ;;  %v2484_v54 = vld [vmem:[%s8967_s7 + $0xb38] sm:$0xff]  ;;  %v2637_v46 = vld [vmem:[%s8967_s7 + $0x1000] sm:$0xff] }
 0x457   :  { %v3796_v63 = vsel %vm8742_vm6, %v8687_v4, %v3792_v44  ;;  %3486 = vmatpush.msrb.mxu1 %v2376_v52  ;;  %3428 = vmatpush.msra.mxu2 %v2420_v23  ;;  %3975 = vpow2.f32 %v3932_v10  ;;  %v2655_v44 = vld [vmem:[%s8967_s7 + $0x1090] sm:$0xff]  ;;  %v2457_v12 = vld [vmem:[%s8967_s7 + $0xa60] sm:$0xff] }
 0x458   :  { %v3801_v16 = vsel %vm3798_vm7, %v3800_v61, %v3796_v63  ;;  %3448 = vmatpush.msra.mxu3 %v2591_v41  ;;  %3429 = vmatmul.f32.vlgmr.msra.gmra.mxu2 %v7425_v0  ;;  %v2286_v41 = vld [vmem:[%s8967_s7 + $0x508] sm:$0xff]  ;;  %v2475_v10 = vld [vmem:[%s8967_s7 + $0xaf0] sm:$0xff]  ;;  %v8890_v63 = vld [vmem:[%s8968_s8] sm:$0xff] }
 0x459   :  { %3904 = vst [vmem:[#allocation2 + $0x58] sm:$0xff] %v3801_v16  ;;  %3467 = vmatpush.msrb.mxu0 %v2196_v9  ;;  %3487 = vmatpush.msrb.mxu1 %v2367_v8  ;;  %v2466_v9 = vld [vmem:[%s8967_s7 + $0xaa8] sm:$0xff] }
 0x45a   :  { %3505 = vmatpush.msrb.mxu2 %v2556_v17  ;;  %3449 = vmatpush.msra.mxu3 %v2582_v50  ;;  %v2709_v17 = vperm.slane %v8890_v63, 4  ;;  %v3108_v50 = vpop.f32.mrf.mxu0 }
 0x45b   :  { %3468 = vmatpush.msrb.mxu0 %v2187_v45  ;;  %3488 = vmatpush.msrb.mxu1 %v2358_v53  ;;  %v3088_v60 = vpop.f32.mrf.mxu3 }
 0x45c   :  { %3506 = vmatpush.msrb.mxu2 %v2547_v33  ;;  %3450 = vmatpush.msra.mxu3 %v2573_v55  ;;  %v3089_v40 = vadd.f32 %v3088_v60, %v3066_v5  ;;  %v2628_v33 = vld [vmem:[%s8967_s7 + $0xfb8] sm:$0xff]  ;;  %v3109_v5 = vadd.f32 %v3108_v50, %v2709_v17 }
 0x45d   :  { %v3976_v18 = vpop.eup %3975  ;;  %3469 = vmatpush.msrb.mxu0 %v2178_v14  ;;  %3489 = vmatpush.msrb.mxu1 %v2349_v49  ;;  %v2448_v49 = vld [vmem:[%s8967_s7 + $0xa18] sm:$0xff] }
 0x45e   :  { %3507 = vmatpush.msrb.mxu2 %v2538_v29  ;;  %3451 = vmatpush.msra.mxu3 %v2564_v15  ;;  %v8801_v4 = vadd.f32 1.0, %v3976_v18  ;;  %v3941_v19 = vmul.f32 -1.442695, %v3089_v40  ;;  %v3131_v53 = vpop.f32.mrf.mxu1  ;;  %v2619_v15 = vld [vmem:[%s8967_s7 + $0xf70] sm:$0xff]  ;;  %v2610_v18 = vld [vmem:[%s8967_s7 + $0xf28] sm:$0xff] }
 0x45f   :  { %3452 = vmatmul.f32.vlgmr.msra.gmra.mxu3 %v7457_v51  ;;  %3470 = vmatpush.msrb.mxu0 %v2169_v21  ;;  %v3132_v40 = vadd.f32 %v3131_v53, %v3109_v5 }
 0x460   :  { %3490 = vmatpush.msrb.mxu1 %v2340_v1  ;;  %3508 = vmatpush.msrb.mxu2 %v2529_v25  ;;  %3977 = vrcp.f32 %v8801_v4  ;;  %v3679_v13 = vand.u32 2147483648, %v8801_v4  ;;  %v3677_v61 = vand.u32 2147483647, %v8801_v4  ;;  %vm3673_vm9 = vweird.f32 %v8801_v4  ;;  %v2430_v25 = vld [vmem:[%s8967_s7 + $0x988] sm:$0xff] }
 0x461   :  { %3528 = vmatpush.msrb.mxu3 %v2700_v62  ;;  %3432 = vmatmul.f32.gmra.mxu2 %v7468_v27  ;;  %3979 = vpow2.f32 %v3941_v19 }
 0x462   :  { %3471 = vmatpush.msrb.mxu0 %v2160_v42  ;;  %3491 = vmatpush.msrb.mxu1 %v2331_v3  ;;  %v3680_v16 = vor.u32 1.1754944e-38, %v3679_v13  ;;  %vm3678_vm11 = vcmp.eq.f32.partialorder %v3677_v61, 8.507059e+37  ;;  %v2421_v42 = vld [vmem:[%s8967_s7 + $0x940] sm:$0xff] }
 0x463   :  { %3509 = vmatpush.msrb.mxu2 %v2520_v7  ;;  %3529 = vmatpush.msrb.mxu3 %v2691_v32  ;;  %v3111_v32 = vpop.f32.mrf.mxu0 }
 0x464   :  { %3472 = vmatpush.msrb.mxu0 %v2151_v11  ;;  %3492 = vmatpush.msrb.mxu1 %v2322_v43  ;;  %v2592_v11 = vld [vmem:[%s8967_s7 + $0xe98] sm:$0xff] }
 0x465   :  { %3510 = vmatpush.msrb.mxu2 %v2511_v58  ;;  %3530 = vmatpush.msrb.mxu3 %v2682_v28 }
 0x466   :  { %v3978_v26 = vpop.eup %3977  ;;  %3473 = vmatpush.msrb.mxu0 %v2142_v31  ;;  %3493 = vmatpush.msrb.mxu1 %v2313_v47  ;;  %v2583_v47 = vld [vmem:[%s8967_s7 + $0xe50] sm:$0xff] }
 0x467   :  { %v3980_v30 = vpop.eup %3979  ;;  %3511 = vmatpush.msrb.mxu2 %v2502_v22  ;;  %3531 = vmatpush.msrb.mxu3 %v2673_v24  ;;  %v3669_v38 = vmul.f32 %v3978_v26, %v8801_v4  ;;  %vm3674_vm8 = vweird.f32 %v3978_v26  ;;  %v2601_v4 = vld [vmem:[%s8967_s7 + $0xee0] sm:$0xff]  ;;  %v3134_v31 = vpop.f32.mrf.mxu1 }
 0x468   :  { %3455 = vmatmul.f32.gmra.mxu3 %v7510_v48  ;;  %3474 = vmatpush.msrb.mxu0 %v2133_v6  ;;  %v8862_v52 = vadd.f32 1.0, %v3980_v30  ;;  %vm3675_vm10 = vmor %vm3673_vm9, %vm3674_vm8  ;;  %v3112_v6 = vadd.f32 %v3111_v32, %v2709_v17 }
 0x469   :  { %v3670_v23 = vsub.f32 1.0, %v3669_v38  ;;  %3494 = vmatpush.msrb.mxu1 %v2304_v36  ;;  %3512 = vmatpush.msrb.mxu2 %v2493_v37  ;;  %v2565_v37 = vld [vmem:[%s8967_s7 + $0xdc0] sm:$0xff] }
 0x46a   :  { %3532 = vmatpush.msrb.mxu3 %v2664_v39  ;;  %3475 = vmatmul.f32.vlgmr.msrb.gmra.mxu0 %v7373_v57  ;;  %3981 = vrcp.f32 %v8862_v52  ;;  %v2646_v57 = vld [vmem:[%s8967_s7 + $0x1048] sm:$0xff]  ;;  %v3814_v1 = vand.u32 2147483648, %v8862_v52  ;;  %vm3808_vm13 = vweird.f32 %v8862_v52  ;;  %v3135_v36 = vadd.f32 %v3134_v31, %v3112_v6 }
 0x46b   :  { %v3671_v59 = vmul.f32 %v3978_v26, %v3670_v23  ;;  %3495 = vmatpush.msrb.mxu1 %v2295_v35  ;;  %3513 = vmatpush.msrb.mxu2 %v2484_v54  ;;  %v2711_v6 = vperm.slane %v8890_v63, 6 }
 0x46c   :  { %3533 = vmatpush.msrb.mxu3 %v2655_v44  ;;  %v3815_v58 = vor.u32 1.1754944e-38, %v3814_v1 }
 0x46d   :  { %v3672_v8 = vadd.f32 %v3978_v26, %v3671_v59  ;;  %3496 = vmatpush.msrb.mxu1 %v2286_v41  ;;  %3514 = vmatpush.msrb.mxu2 %v2475_v10 }
 0x46e   :  { %3534 = vmatpush.msrb.mxu3 %v2646_v57 }
 0x46f   :  { %v3676_v45 = vsel %vm3675_vm10, %v3978_v26, %v3672_v8  ;;  %3497 = vmatpush.msrb.mxu1 %v2277_v34  ;;  %3515 = vmatpush.msrb.mxu2 %v2466_v9  ;;  %v3154_v60 = vpop.f32.mrf.mxu2 }
 0x470   :  { %v3982_v55 = vpop.eup %3981  ;;  %v3681_v14 = vsel %vm3678_vm11, %v3680_v16, %v3676_v45  ;;  %3535 = vmatpush.msrb.mxu3 %v2637_v46  ;;  %3498 = vmatmul.f32.vlgmr.msrb.gmra.mxu1 %v7385_v56  ;;  %v2439_v56 = vld [vmem:[%s8967_s7 + $0x9d0] sm:$0xff]  ;;  %v3155_v19 = vadd.f32 %v3154_v60, %v3132_v40 }
 0x471   :  { %3896 = vst [vmem:[#allocation2 + $0x18] sm:$0xff] %v3681_v14  ;;  %v3804_v29 = vmul.f32 %v3982_v55, %v8862_v52  ;;  %3516 = vmatpush.msrb.mxu2 %v2457_v12  ;;  %vm3809_vm12 = vweird.f32 %v3982_v55 }
 0x472   :  { %3536 = vmatpush.msrb.mxu3 %v2628_v33  ;;  %3478 = vmatmul.f32.gmra.mxu0 %v7394_v2  ;;  %v3812_v2 = vand.u32 2147483647, %v8862_v52  ;;  %vm3810_vm14 = vmor %vm3808_vm13, %vm3809_vm12 }
 0x473   :  { %v3805_v21 = vsub.f32 1.0, %v3804_v29  ;;  %3517 = vmatpush.msrb.mxu2 %v2448_v49 }
 0x474   :  { %3537 = vmatpush.msrb.mxu3 %v2619_v15  ;;  %vm3813_vm15 = vcmp.eq.f32.partialorder %v3812_v2, 8.507059e+37 }
 0x475   :  { %v3806_v62 = vmul.f32 %v3982_v55, %v3805_v21  ;;  %3518 = vmatpush.msrb.mxu2 %v2439_v56 }
 0x476   :  { %3538 = vmatpush.msrb.mxu3 %v2610_v18  ;;  %v3177_v3 = vpop.f32.mrf.mxu3 }
 0x477   :  { %v3807_v7 = vadd.f32 %v3982_v55, %v3806_v62  ;;  %3519 = vmatpush.msrb.mxu2 %v2430_v25  ;;  %v3178_v43 = vadd.f32 %v3177_v3, %v3155_v19 }
 0x478   :  { %3539 = vmatpush.msrb.mxu3 %v2601_v4  ;;  %3501 = vmatmul.f32.gmra.mxu1 %v7417_v20  ;;  %v2574_v20 = vld [vmem:[%s8967_s7 + $0xe08] sm:$0xff]  ;;  %v3157_v26 = vpop.f32.mrf.mxu2 }
 0x479   :  { %v3811_v28 = vsel %vm3810_vm14, %v3982_v55, %v3807_v7  ;;  %3520 = vmatpush.msrb.mxu2 %v2421_v42  ;;  %v3933_v22 = vmul.f32 -1.442695, %v3178_v43  ;;  %v3158_v30 = vadd.f32 %v3157_v26, %v3135_v36 }
 0x47a   :  { %v3816_v24 = vsel %vm3813_vm15, %v3815_v58, %v3811_v28  ;;  %3540 = vmatpush.msrb.mxu3 %v2592_v11  ;;  %3521 = vmatmul.f32.vlgmr.msrb.gmra.mxu2 %v7425_v0 }
 0x47b   :  { %3905 = vst [vmem:[#allocation2 + $0x60] sm:$0xff] %v3816_v24  ;;  %3983 = vpow2.f32 %v3933_v22 }
 0x47c   :  { %3541 = vmatpush.msrb.mxu3 %v2583_v47 }
 0x47e   :  { %3542 = vmatpush.msrb.mxu3 %v2574_v20 }
 0x47f   :  { %v3180_v38 = vpop.f32.mrf.mxu3 }
 0x480   :  { %3543 = vmatpush.msrb.mxu3 %v2565_v37  ;;  %v3181_v39 = vadd.f32 %v3180_v38, %v3158_v30 }
 0x481   :  { %v3984_v35 = vpop.eup %3983  ;;  %3544 = vmatmul.f32.vlgmr.msrb.gmra.mxu3 %v7457_v51  ;;  %v2710_v51 = vperm.slane %v8890_v63, 5 }
 0x482   :  { %3524 = vmatmul.f32.gmra.mxu2 %v7468_v27  ;;  %v3609_v0 = vadd.f32 1.0, %v3984_v35  ;;  %v3942_v54 = vmul.f32 -1.442695, %v3181_v39  ;;  %v3200_v27 = vpop.f32.mrf.mxu0 }
 0x483   :  { %v3201_v50 = vadd.f32 %v3200_v27, %v2710_v51 }
 0x484   :  { %3985 = vrcp.f32 %v3609_v0  ;;  %v3694_v10 = vand.u32 2147483648, %v3609_v0  ;;  %v3692_v61 = vand.u32 2147483647, %v3609_v0  ;;  %vm3688_vm1 = vweird.f32 %v3609_v0 }
 0x485   :  { %3987 = vpow2.f32 %v3942_v54 }
 0x486   :  { %v3695_v34 = vor.u32 1.1754944e-38, %v3694_v10  ;;  %vm3693_vm3 = vcmp.eq.f32.partialorder %v3692_v61, 8.507059e+37 }
 0x489   :  { %3547 = vmatmul.f32.gmra.mxu3 %v7510_v48  ;;  %v3223_v48 = vpop.f32.mrf.mxu1 }
 0x48a   :  { %v3986_v52 = vpop.eup %3985  ;;  %v3224_v45 = vadd.f32 %v3223_v48, %v3201_v50  ;;  %v3203_v29 = vpop.f32.mrf.mxu0 }
 0x48b   :  { %v3988_v23 = vpop.eup %3987  ;;  %v3684_v44 = vmul.f32 %v3986_v52, %v3609_v0  ;;  %vm3689_vm0 = vweird.f32 %v3986_v52  ;;  %v3204_v1 = vadd.f32 %v3203_v29, %v2710_v51 }
 0x48c   :  { %v3618_v13 = vadd.f32 1.0, %v3988_v23  ;;  %vm3690_vm2 = vmor %vm3688_vm1, %vm3689_vm0 }
 0x48d   :  { %v3685_v41 = vsub.f32 1.0, %v3684_v44 }
 0x48e   :  { %3989 = vrcp.f32 %v3618_v13  ;;  %v3829_v53 = vand.u32 2147483648, %v3618_v13  ;;  %v3827_v55 = vand.u32 2147483647, %v3618_v13  ;;  %vm3823_vm5 = vweird.f32 %v3618_v13 }
 0x48f   :  { %v3686_v59 = vmul.f32 %v3986_v52, %v3685_v41 }
 0x490   :  { %v3830_v60 = vor.u32 1.1754944e-38, %v3829_v53  ;;  %vm3828_vm7 = vcmp.eq.f32.partialorder %v3827_v55, 8.507059e+37 }
 0x491   :  { %v3687_v57 = vadd.f32 %v3986_v52, %v3686_v59  ;;  %v3226_v21 = vpop.f32.mrf.mxu1 }
 0x492   :  { %v3227_v62 = vadd.f32 %v3226_v21, %v3204_v1 }
 0x493   :  { %v3691_v9 = vsel %vm3690_vm2, %v3986_v52, %v3687_v57  ;;  %v3246_v16 = vpop.f32.mrf.mxu2 }
 0x494   :  { %v3990_v8 = vpop.eup %3989  ;;  %v3696_v17 = vsel %vm3693_vm3, %v3695_v34, %v3691_v9  ;;  %v3247_v14 = vadd.f32 %v3246_v16, %v3224_v45 }
 0x495   :  { %3897 = vst [vmem:[#allocation2 + $0x20] sm:$0xff] %v3696_v17  ;;  %v3819_v46 = vmul.f32 %v3990_v8, %v3618_v13  ;;  %vm3824_vm4 = vweird.f32 %v3990_v8 }
 0x496   :  { %vm3825_vm6 = vmor %vm3823_vm5, %vm3824_vm4 }
 0x497   :  { %v3820_v12 = vsub.f32 1.0, %v3819_v46 }
 0x499   :  { %v3821_v33 = vmul.f32 %v3990_v8, %v3820_v12 }
 0x49a   :  { %v3269_v49 = vpop.f32.mrf.mxu3 }
 0x49b   :  { %v3822_v5 = vadd.f32 %v3990_v8, %v3821_v33  ;;  %v3270_v15 = vadd.f32 %v3269_v49, %v3247_v14 }
 0x49c   :  { %v3249_v25 = vpop.f32.mrf.mxu2 }
 0x49d   :  { %v3826_v56 = vsel %vm3825_vm6, %v3990_v8, %v3822_v5  ;;  %v3934_v40 = vmul.f32 -1.442695, %v3270_v15  ;;  %v3250_v2 = vadd.f32 %v3249_v25, %v3227_v62 }
 0x49e   :  { %v3831_v18 = vsel %vm3828_vm7, %v3830_v60, %v3826_v56 }
 0x49f   :  { %3906 = vst [vmem:[#allocation2 + $0x68] sm:$0xff] %v3831_v18  ;;  %3991 = vpow2.f32 %v3934_v40  ;;  %v3292_v20 = vpop.f32.mrf.mxu0  ;;  %v2712_v40 = vperm.slane %v8890_v63, 7 }
 0x4a0   :  { %v3293_v39 = vadd.f32 %v3292_v20, %v2711_v6 }
 0x4a3   :  { %v3272_v4 = vpop.f32.mrf.mxu3 }
 0x4a4   :  { %v3273_v19 = vadd.f32 %v3272_v4, %v3250_v2 }
 0x4a5   :  { %v3992_v42 = vpop.eup %3991 }
 0x4a6   :  { %v3610_v3 = vadd.f32 1.0, %v3992_v42  ;;  %v3943_v7 = vmul.f32 -1.442695, %v3273_v19  ;;  %v3315_v37 = vpop.f32.mrf.mxu1 }
 0x4a7   :  { %v3316_v52 = vadd.f32 %v3315_v37, %v3293_v39 }
 0x4a8   :  { %3993 = vrcp.f32 %v3610_v3  ;;  %v3709_v31 = vand.u32 2147483648, %v3610_v3  ;;  %v3707_v22 = vand.u32 2147483647, %v3610_v3  ;;  %vm3703_vm9 = vweird.f32 %v3610_v3  ;;  %v3295_v61 = vpop.f32.mrf.mxu0 }
 0x4a9   :  { %3995 = vpow2.f32 %v3943_v7  ;;  %v3296_v8 = vadd.f32 %v3295_v61, %v2711_v6 }
 0x4aa   :  { %v3710_v26 = vor.u32 1.1754944e-38, %v3709_v31  ;;  %vm3708_vm11 = vcmp.eq.f32.partialorder %v3707_v22, 8.507059e+37 }
 0x4ae   :  { %v3994_v32 = vpop.eup %3993 }
 0x4af   :  { %v3996_v11 = vpop.eup %3995  ;;  %v3699_v43 = vmul.f32 %v3994_v32, %v3610_v3  ;;  %vm3704_vm8 = vweird.f32 %v3994_v32  ;;  %v3318_v34 = vpop.f32.mrf.mxu1 }
 0x4b0   :  { %v3619_v58 = vadd.f32 1.0, %v3996_v11  ;;  %vm3705_vm10 = vmor %vm3703_vm9, %vm3704_vm8  ;;  %v3319_v50 = vadd.f32 %v3318_v34, %v3296_v8  ;;  %v3950_v34 = vld [vmem:[%s8968_s8 + $0x8] ss:$0 sm:$0xff]  ;;  %s4068_s8 = smov [#allocation2]  }
 0x4b1   :  { %v3700_v28 = vsub.f32 1.0, %v3699_v43  ;;  %s3915_s18 = sshll.u32 %s4068_s8, 4  ;;  %s3916_s18 = int_to_ptr.vmem [resolvable:$true] %s3915_s18 }
 0x4b2   :  { %3997 = vrcp.f32 %v3619_v58  ;;  %v3844_v23 = vand.u32 2147483648, %v3619_v58  ;;  %v3842_v13 = vand.u32 2147483647, %v3619_v58  ;;  %vm3838_vm13 = vweird.f32 %v3619_v58 }
 0x4b3   :  { %v3701_v47 = vmul.f32 %v3994_v32, %v3700_v28 }
 0x4b4   :  { %v3845_v51 = vor.u32 1.1754944e-38, %v3844_v23  ;;  %vm3843_vm15 = vcmp.eq.f32.partialorder %v3842_v13, 8.507059e+37 }
 0x4b5   :  { %v3702_v24 = vadd.f32 %v3994_v32, %v3701_v47 }
 0x4b7   :  { %v3706_v36 = vsel %vm3705_vm10, %v3994_v32, %v3702_v24  ;;  %v3338_v0 = vpop.f32.mrf.mxu2 }
 0x4b8   :  { %v3998_v30 = vpop.eup %3997  ;;  %v3711_v38 = vsel %vm3708_vm11, %v3710_v26, %v3706_v36  ;;  %v3339_v41 = vadd.f32 %v3338_v0, %v3316_v52 }
 0x4b9   :  { %3898 = vst [vmem:[#allocation2 + $0x28] sm:$0xff] %v3711_v38  ;;  %v3834_v35 = vmul.f32 %v3998_v30, %v3619_v58  ;;  %vm3839_vm12 = vweird.f32 %v3998_v30 }
 0x4ba   :  { %vm3840_vm14 = vmor %vm3838_vm13, %vm3839_vm12 }
 0x4bb   :  { %v3835_v54 = vsub.f32 1.0, %v3834_v35 }
 0x4bd   :  { %v3836_v44 = vmul.f32 %v3998_v30, %v3835_v54 }
 0x4be   :  { %v3361_v10 = vpop.f32.mrf.mxu3 }
 0x4bf   :  { %v3837_v59 = vadd.f32 %v3998_v30, %v3836_v44  ;;  %v3362_v57 = vadd.f32 %v3361_v10, %v3339_v41 }
 0x4c0   :  { %v3341_v17 = vpop.f32.mrf.mxu2 }
 0x4c1   :  { %v3841_v27 = vsel %vm3840_vm14, %v3998_v30, %v3837_v59  ;;  %v3935_v9 = vmul.f32 -1.442695, %v3362_v57  ;;  %v3342_v46 = vadd.f32 %v3341_v17, %v3319_v50 }
 0x4c2   :  { %v3846_v48 = vsel %vm3843_vm15, %v3845_v51, %v3841_v27 }
 0x4c3   :  { %3907 = vst [vmem:[#allocation2 + $0x70] sm:$0xff] %v3846_v48  ;;  %3999 = vpow2.f32 %v3935_v9  ;;  %v3384_v18 = vpop.f32.mrf.mxu0 }
 0x4c4   :  { %v3385_v19 = vadd.f32 %v3384_v18, %v2712_v40 }
 0x4c7   :  { %v3364_v16 = vpop.f32.mrf.mxu3 }
 0x4c8   :  { %v3365_v12 = vadd.f32 %v3364_v16, %v3342_v46 }
 0x4c9   :  { %v4000_v45 = vpop.eup %3999 }
 0x4ca   :  { %v3611_v53 = vadd.f32 1.0, %v4000_v45  ;;  %v3944_v33 = vmul.f32 -1.442695, %v3365_v12  ;;  %v3407_v62 = vpop.f32.mrf.mxu1 }
 0x4cb   :  { %v3408_v32 = vadd.f32 %v3407_v62, %v3385_v19 }
 0x4cc   :  { %4001 = vrcp.f32 %v3611_v53  ;;  %v3724_v15 = vand.u32 2147483648, %v3611_v53  ;;  %v3722_v56 = vand.u32 2147483647, %v3611_v53  ;;  %vm3718_vm1 = vweird.f32 %v3611_v53  ;;  %v3387_v47 = vpop.f32.mrf.mxu0 }
 0x4cd   :  { %4003 = vpow2.f32 %v3944_v33  ;;  %v3388_v37 = vadd.f32 %v3387_v47, %v2712_v40 }
 0x4ce   :  { %v3725_v1 = vor.u32 1.1754944e-38, %v3724_v15  ;;  %vm3723_vm3 = vcmp.eq.f32.partialorder %v3722_v56, 8.507059e+37 }
 0x4d2   :  { %v4002_v55 = vpop.eup %4001 }
 0x4d3   :  { %v4004_v14 = vpop.eup %4003  ;;  %v3714_v49 = vmul.f32 %v4002_v55, %v3611_v53  ;;  %vm3719_vm0 = vweird.f32 %v4002_v55  ;;  %v3410_v20 = vpop.f32.mrf.mxu1 }
 0x4d4   :  { %v3620_v5 = vadd.f32 1.0, %v4004_v14  ;;  %vm3720_vm2 = vmor %vm3718_vm1, %vm3719_vm0  ;;  %v3411_v38 = vadd.f32 %v3410_v20, %v3388_v37 }
 0x4d5   :  { %v3715_v29 = vsub.f32 1.0, %v3714_v49 }
 0x4d6   :  { %4005 = vrcp.f32 %v3620_v5  ;;  %v3859_v11 = vand.u32 2147483648, %v3620_v5  ;;  %v3857_v58 = vand.u32 2147483647, %v3620_v5  ;;  %vm3853_vm5 = vweird.f32 %v3620_v5 }
 0x4d7   :  { %v3716_v60 = vmul.f32 %v4002_v55, %v3715_v29 }
 0x4d8   :  { %v3860_v24 = vor.u32 1.1754944e-38, %v3859_v11  ;;  %vm3858_vm7 = vcmp.eq.f32.partialorder %v3857_v58, 8.507059e+37 }
 0x4d9   :  { %v3717_v21 = vadd.f32 %v4002_v55, %v3716_v60 }
 0x4db   :  { %v3721_v25 = vsel %vm3720_vm2, %v4002_v55, %v3717_v21  ;;  %v3430_v3 = vpop.f32.mrf.mxu2 }
 0x4dc   :  { %v4006_v2 = vpop.eup %4005  ;;  %v3726_v4 = vsel %vm3723_vm3, %v3725_v1, %v3721_v25  ;;  %v3431_v28 = vadd.f32 %v3430_v3, %v3408_v32 }
 0x4dd   :  { %3899 = vst [vmem:[#allocation2 + $0x30] sm:$0xff] %v3726_v4  ;;  %v3849_v42 = vmul.f32 %v4006_v2, %v3620_v5  ;;  %vm3854_vm4 = vweird.f32 %v4006_v2 }
 0x4de   :  { %vm3855_vm6 = vmor %vm3853_vm5, %vm3854_vm4 }
 0x4df   :  { %v3850_v7 = vsub.f32 1.0, %v3849_v42 }
 0x4e1   :  { %v3851_v43 = vmul.f32 %v4006_v2, %v3850_v7 }
 0x4e2   :  { %v3453_v63 = vpop.f32.mrf.mxu3 }
 0x4e3   :  { %v3852_v31 = vadd.f32 %v4006_v2, %v3851_v43  ;;  %v3454_v22 = vadd.f32 %v3453_v63, %v3431_v28 }
 0x4e4   :  { %v3433_v30 = vpop.f32.mrf.mxu2 }
 0x4e5   :  { %v3856_v6 = vsel %vm3855_vm6, %v4006_v2, %v3852_v31  ;;  %v3936_v26 = vmul.f32 -1.442695, %v3454_v22  ;;  %v3434_v39 = vadd.f32 %v3433_v30, %v3411_v38 }
 0x4e6   :  { %v3861_v36 = vsel %vm3858_vm7, %v3860_v24, %v3856_v6 }
 0x4e7   :  { %3908 = vst [vmem:[#allocation2 + $0x78] sm:$0xff] %v3861_v36  ;;  %4007 = vpow2.f32 %v3936_v26  ;;  %v3476_v57 = vpop.f32.mrf.mxu0 }
 0x4e8   :  { %v3477_v46 = vadd.f32 %v3950_v34, %v3476_v57 }
 0x4eb   :  { %v3456_v35 = vpop.f32.mrf.mxu3 }
 0x4ec   :  { %v3457_v0 = vadd.f32 %v3456_v35, %v3434_v39 }
 0x4ed   :  { %v4008_v54 = vpop.eup %4007  ;;  %v3499_v9 = vpop.f32.mrf.mxu1 }
 0x4ee   :  { %v3612_v52 = vadd.f32 1.0, %v4008_v54  ;;  %v3945_v23 = vmul.f32 -1.442695, %v3457_v0  ;;  %v3500_v53 = vadd.f32 %v3499_v9, %v3477_v46 }
 0x4ef   :  { %v3479_v49 = vpop.f32.mrf.mxu0 }
 0x4f0   :  { %4009 = vrcp.f32 %v3612_v52  ;;  %v3739_v61 = vand.u32 2147483648, %v3612_v52  ;;  %v3737_v27 = vand.u32 2147483647, %v3612_v52  ;;  %vm3733_vm9 = vweird.f32 %v3612_v52 }
 0x4f1   :  { %4011 = vpow2.f32 %v3945_v23  ;;  %v3480_v40 = vadd.f32 %v3950_v34, %v3479_v49 }
 0x4f2   :  { %v3740_v8 = vor.u32 1.1754944e-38, %v3739_v61  ;;  %vm3738_vm11 = vcmp.eq.f32.partialorder %v3737_v27, 8.507059e+37 }
 0x4f5   :  { %v3502_v56 = vpop.f32.mrf.mxu1 }
 0x4f6   :  { %v4010_v44 = vpop.eup %4009  ;;  %v3503_v2 = vadd.f32 %v3502_v56, %v3480_v40 }
 0x4f7   :  { %v4012_v13 = vpop.eup %4011  ;;  %v3729_v41 = vmul.f32 %v4010_v44, %v3612_v52  ;;  %vm3734_vm8 = vweird.f32 %v4010_v44 }
 0x4f8   :  { %v3621_v10 = vadd.f32 1.0, %v4012_v13  ;;  %vm3735_vm10 = vmor %vm3733_vm9, %vm3734_vm8 }
 0x4f9   :  { %v3730_v59 = vsub.f32 1.0, %v3729_v41 }
 0x4fa   :  { %4013 = vrcp.f32 %v3621_v10  ;;  %v3874_v14 = vand.u32 2147483648, %v3621_v10  ;;  %v3872_v15 = vand.u32 2147483647, %v3621_v10  ;;  %vm3868_vm13 = vweird.f32 %v3621_v10 }
 0x4fb   :  { %v3731_v51 = vmul.f32 %v4010_v44, %v3730_v59 }
 0x4fc   :  { %v3875_v1 = vor.u32 1.1754944e-38, %v3874_v14  ;;  %vm3873_vm15 = vcmp.eq.f32.partialorder %v3872_v15, 8.507059e+37 }
 0x4fd   :  { %v3732_v48 = vadd.f32 %v4010_v44, %v3731_v51  ;;  %v3522_v17 = vpop.f32.mrf.mxu2 }
 0x4fe   :  { %v3523_v55 = vadd.f32 %v3522_v17, %v3500_v53 }
 0x4ff   :  { %v3736_v50 = vsel %vm3735_vm10, %v4010_v44, %v3732_v48 }
 0x500   :  { %v4014_v16 = vpop.eup %4013  ;;  %v3741_v12 = vsel %vm3738_vm11, %v3740_v8, %v3736_v50 }
 0x501   :  { %3900 = vst [vmem:[#allocation2 + $0x38] sm:$0xff] %v3741_v12  ;;  %v3864_v45 = vmul.f32 %v4014_v16, %v3621_v10  ;;  %vm3869_vm12 = vweird.f32 %v4014_v16 }
 0x502   :  { %vm3870_vm14 = vmor %vm3868_vm13, %vm3869_vm12 }
 0x503   :  { %v3865_v33 = vsub.f32 1.0, %v3864_v45 }
 0x504   :  { %v3545_v5 = vpop.f32.mrf.mxu3 }
 0x505   :  { %v3866_v29 = vmul.f32 %v4014_v16, %v3865_v33  ;;  %v3546_v60 = vadd.f32 %v3545_v5, %v3523_v55  ;;  %v3525_v25 = vpop.f32.mrf.mxu2 }
 0x506   :  { %v3526_v19 = vadd.f32 %v3525_v25, %v3503_v2 }
 0x507   :  { %v3867_v21 = vadd.f32 %v4014_v16, %v3866_v29  ;;  %v3937_v18 = vmul.f32 -1.442695, %v3546_v60 }
 0x509   :  { %v3871_v62 = vsel %vm3870_vm14, %v4014_v16, %v3867_v21  ;;  %4015 = vpow2.f32 %v3937_v18 }
 0x50a   :  { %v3876_v4 = vsel %vm3873_vm15, %v3875_v1, %v3871_v62 }
 0x50b   :  { %3909 = vst [vmem:[#allocation2 + $0x80] sm:$0xff] %v3876_v4 }
 0x50c   :  { %v3548_v42 = vpop.f32.mrf.mxu3 }
 0x50d   :  { %v3549_v3 = vadd.f32 %v3548_v42, %v3526_v19 }
 0x50f   :  { %v4016_v7 = vpop.eup %4015  ;;  %v3946_v32 = vmul.f32 -1.442695, %v3549_v3 }
 0x510   :  { %v3613_v11 = vadd.f32 1.0, %v4016_v7 }
 0x511   :  { %4017 = vpow2.f32 %v3946_v32 }
 0x512   :  { %4019 = vrcp.f32 %v3613_v11  ;;  %v3754_v47 = vand.u32 2147483648, %v3613_v11  ;;  %v3752_v24 = vand.u32 2147483647, %v3613_v11  ;;  %vm3748_vm1 = vweird.f32 %v3613_v11 }
 0x514   :  { %v3755_v26 = vor.u32 1.1754944e-38, %v3754_v47  ;;  %vm3753_vm3 = vcmp.eq.f32.partialorder %v3752_v24, 8.507059e+37 }
 0x517   :  { %v4018_v43 = vpop.eup %4017 }
 0x518   :  { %v4020_v58 = vpop.eup %4019  ;;  %v3622_v28 = vadd.f32 1.0, %v4018_v43 }
 0x519   :  { %v3744_v63 = vmul.f32 %v4020_v58, %v3613_v11  ;;  %vm3749_vm0 = vweird.f32 %v4020_v58 }
 0x51a   :  { %4021 = vrcp.f32 %v3622_v28  ;;  %vm3750_vm2 = vmor %vm3748_vm1, %vm3749_vm0  ;;  %v3889_v39 = vand.u32 2147483648, %v3622_v28  ;;  %v3887_v0 = vand.u32 2147483647, %v3622_v28  ;;  %vm3883_vm5 = vweird.f32 %v3622_v28 }
 0x51b   :  { %v3745_v31 = vsub.f32 1.0, %v3744_v63 }
 0x51c   :  { %v3890_v52 = vor.u32 1.1754944e-38, %v3889_v39  ;;  %vm3888_vm7 = vcmp.eq.f32.partialorder %v3887_v0, 8.507059e+37 }
 0x51d   :  { %v3746_v22 = vmul.f32 %v4020_v58, %v3745_v31 }
 0x51f   :  { %v3747_v6 = vadd.f32 %v4020_v58, %v3746_v22 }
 0x520   :  { %v4022_v20 = vpop.eup %4021 }
 0x521   :  { %v3751_v36 = vsel %vm3750_vm2, %v4020_v58, %v3747_v6  ;;  %v3879_v37 = vmul.f32 %v4022_v20, %v3622_v28  ;;  %vm3884_vm4 = vweird.f32 %v4022_v20 }
 0x522   :  { %v3756_v30 = vsel %vm3753_vm3, %v3755_v26, %v3751_v36  ;;  %vm3885_vm6 = vmor %vm3883_vm5, %vm3884_vm4 }
 0x523   :  { %3901 = vst [vmem:[#allocation2 + $0x40] sm:$0xff] %v3756_v30  ;;  %v3880_v38 = vsub.f32 1.0, %v3879_v37 }
 0x525   :  { %v3881_v35 = vmul.f32 %v4022_v20, %v3880_v38 }
 0x527   :  { %v3882_v54 = vadd.f32 %v4022_v20, %v3881_v35 }
 0x529   :  { %v3886_v23 = vsel %vm3885_vm6, %v4022_v20, %v3882_v54 }
 0x52a   :  { %v3891_v44 = vsel %vm3888_vm7, %v3890_v52, %v3886_v23 }
 0x52b   :  { %3910 = vst [vmem:[#allocation2 + $0x88] sm:$0xff] %v3891_v44 }
 0x52c   :  { %3923 = dma.vmem_to_hbm [thread:$0]  %s3916_s18, 2304, %s3918_s20, [#allocation3], %s4069_s21, %s4069_s21, %s4070_s22  }
 0x52d   :  { %4066 = dma.done.wait [#allocation3], 2304  }
 0x52e   :  { %4067 = vsyncadd [#allocation3], 4294964992 }
 0x52f   :  { %3928 = vsyncpa [#allocation3], 1 }

</bundles_post_ra>
